<compile_context>
chip_gen: v6e
topology: v6e:2x2x1
jax: 0.10.0
libtpu: 0.0.40
codegen_flags: <defaults>
</compile_context>

<pallas_src>
import jax
import jax.numpy as jnp
from jax.experimental import pallas as pl
from jax.experimental.pallas import tpu as pltpu


# ------------------------------ fused kernel ------------------------------- #
def _make_kernel(h_in, w_in, h1p, w1p, h2p, w2p, w_out):
    """Builds the fused TFblock_v4 kernel for one batch element (one grid step).

    Activation layout everywhere: (C, H*W) -- channels on sublanes, flattened
    spatial on lanes.  Intermediate activations are stored pre-padded for the
    following transpose conv (zero-initialized scratch, interior written).
    """

    def kernel(x_ref, w1_ref, s1_ref, b1_ref, w2_ref, b2_ref, w3_ref, b3_ref,
               o_ref, a1_ref, a2_ref):
        # Padding regions must be zero every grid step.
        a1_ref[...] = jnp.zeros(a1_ref.shape, a1_ref.dtype)
        a2_ref[...] = jnp.zeros(a2_ref.shape, a2_ref.dtype)

        def stage(src_ref, src_hp, src_wp, w_ref, scale, shift,
                  dst_ref, dst_wp, pad_h, pad_w):
            """VALID stride-1 conv of src (C_in, src_hp*src_wp) with taps
            w_ref (kh, kw, C_out, C_in), fused per-channel affine, result
            written into dst_ref interior at (pad_h, pad_w)."""
            kh, kw = w_ref.shape[0], w_ref.shape[1]
            ho, wo = src_hp - kh + 1, src_wp - kw + 1
            length = (ho - 1) * src_wp + wo          # covers all output rows
            cdtype = w_ref.dtype                     # bf16 (or f32) MXU operands

            acc = None
            for di in range(kh):                     # kernel-tap accumulation:
                for dj in range(kw):                 # on-chip "im2col"
                    tap = w_ref[di, dj]              # (C_out, C_in)
                    start = di * src_wp + dj
                    cols = src_ref[:, start:start + length].astype(cdtype)
                    prod = jnp.dot(tap, cols, preferred_element_type=jnp.float32)
                    acc = prod if acc is None else acc + prod

            y = acc
            if scale is not None:                    # folded BatchNorm scale
                y = y * scale
            y = (y + shift).astype(dst_ref.dtype)    # bias / folded BN shift

            # Copy only valid columns (w < wo) of each output row into the
            # (possibly padded) destination layout.
            for hh in range(ho):
                dst = (pad_h + hh) * dst_wp + pad_w
                dst_ref[:, dst:dst + wo] = y[:, hh * src_wp:hh * src_wp + wo]

        # encoder Conv2d(4x2) + BatchNorm (folded affine), padded for decoder.
        stage(x_ref, h_in, w_in, w1_ref, s1_ref[...], b1_ref[...],
              a1_ref, w1p, w2_ref.shape[0] - 1, w2_ref.shape[1] - 1)
        # decoder ConvTranspose2d(3x3) == VALID conv of padded act w/ flipped taps.
        stage(a1_ref, h1p, w1p, w2_ref, None, b2_ref[...],
              a2_ref, w2p, w3_ref.shape[0] - 1, w3_ref.shape[1] - 1)
        # decoder1 ConvTranspose2d(5x5) -> final output (no padding).
        stage(a2_ref, h2p, w2p, w3_ref, None, b3_ref[...],
              o_ref, w_out, 0, 0)

    return kernel


# --------------------------- parameter preparation -------------------------- #
def init_params(key, dim_in=16, dim_inter=32):
    dim_mid = (dim_in + dim_inter) // 2
    ks = jax.random.split(key, 10)
    return {
        # encoder: Conv2d(dim_in, dim_inter, kernel_size=(4, 2))  weight OIHW
        "enc_w": 0.05 * jax.random.normal(ks[0], (dim_inter, dim_in, 4, 2), jnp.float32),
        "enc_b": 0.05 * jax.random.normal(ks[1], (dim_inter,), jnp.float32),
        # bn1: BatchNorm2d(dim_inter)
        "bn_gamma": 1.0 + 0.05 * jax.random.normal(ks[2], (dim_inter,), jnp.float32),
        "bn_beta": 0.05 * jax.random.normal(ks[3], (dim_inter,), jnp.float32),
        "bn_mean": 0.05 * jax.random.normal(ks[4], (dim_inter,), jnp.float32),
        "bn_var": jnp.abs(1.0 + 0.05 * jax.random.normal(ks[5], (dim_inter,), jnp.float32)),
        # decoder: ConvTranspose2d(dim_inter, dim_mid, kernel_size=(3, 3))  weight IOHW
        "dec_w": 0.05 * jax.random.normal(ks[6], (dim_inter, dim_mid, 3, 3), jnp.float32),
        "dec_b": 0.05 * jax.random.normal(ks[7], (dim_mid,), jnp.float32),
        # decoder1: ConvTranspose2d(dim_mid, dim_in, kernel_size=(5, 5))  weight IOHW
        "dec1_w": 0.05 * jax.random.normal(ks[8], (dim_mid, dim_in, 5, 5), jnp.float32),
        "dec1_b": 0.05 * jax.random.normal(ks[9], (dim_in,), jnp.float32),
    }


def prepare_params(params, eps=1e-5, compute_dtype=jnp.bfloat16):
    """One-time weight-side transforms (hoisted out of the forward pass).

    Weights become per-tap (KH, KW, Cout, Cin) tensors in the MXU compute
    dtype; conv bias and BatchNorm (inference) are folded into a per-channel
    (scale, shift) pair applied inside the kernel.
    """
    # encoder Conv2d weight OIHW -> (KH, KW, Cout, Cin)
    w1 = jnp.transpose(params["enc_w"], (2, 3, 0, 1))
    bn_scale = params["bn_gamma"] / jnp.sqrt(params["bn_var"] + eps)
    bn_shift = params["bn_beta"] - params["bn_mean"] * bn_scale
    s1 = bn_scale.reshape(-1, 1).astype(jnp.float32)
    b1 = (params["enc_b"] * bn_scale + bn_shift).reshape(-1, 1).astype(jnp.float32)

    def conv_t_taps(w_iohw):
        # ConvTranspose2d(stride=1, pad=0) == VALID conv of the (k-1)-padded
        # input with the spatially flipped kernel and in/out channels swapped.
        w = jnp.flip(w_iohw, axis=(2, 3))             # (Cin, Cout, KH, KW)
        return jnp.transpose(w, (2, 3, 1, 0))         # (KH, KW, Cout, Cin)

    return {
        "w1": w1.astype(compute_dtype), "s1": s1, "b1": b1,
        "w2": conv_t_taps(params["dec_w"]).astype(compute_dtype),
        "b2": params["dec_b"].reshape(-1, 1).astype(jnp.float32),
        "w3": conv_t_taps(params["dec1_w"]).astype(compute_dtype),
        "b3": params["dec1_b"].reshape(-1, 1).astype(jnp.float32),
    }


# --------------------------------- forward ---------------------------------- #
def tfblock_v4_forward(prep, x_nchw):
    n, ci, h_in, w_in = x_nchw.shape
    kh1, kw1, c1, ci1 = prep["w1"].shape
    kh2, kw2, c2, _ = prep["w2"].shape
    kh3, kw3, c3, _ = prep["w3"].shape
    assert ci1 == ci, (ci1, ci)

    # Static stage geometry.
    h1, w1 = h_in - kh1 + 1, w_in - kw1 + 1              # encoder output
    h1p, w1p = h1 + 2 * (kh2 - 1), w1 + 2 * (kw2 - 1)    # padded for decoder
    h2, w2 = h1p - kh2 + 1, w1p - kw2 + 1                # decoder output
    h2p, w2p = h2 + 2 * (kh3 - 1), w2 + 2 * (kw3 - 1)    # padded for decoder1
    h3, w3 = h2p - kh3 + 1, w2p - kw3 + 1                # decoder1 output

    kernel = _make_kernel(h_in, w_in, h1p, w1p, h2p, w2p, w3)

    # NCHW -> (N, C, H*W): contiguous, free reshape; this *is* the kernel layout.
    x2 = x_nchw.reshape(n, ci, h_in * w_in)

    out = pl.pallas_call(
        kernel,
        out_shape=jax.ShapeDtypeStruct((n, c3, h3 * w3), jnp.float32),
        grid=(n,),
        in_specs=[
            # per-batch activation block (batch dim squeezed)
            pl.BlockSpec((None, ci, h_in * w_in), lambda b: (b, 0, 0)),
            # weights / affine params: constant index_map -> fetched once,
            # stay VMEM-resident across grid steps.
            pl.BlockSpec((kh1, kw1, c1, ci), lambda b: (0, 0, 0, 0)),
            pl.BlockSpec((c1, 1), lambda b: (0, 0)),
            pl.BlockSpec((c1, 1), lambda b: (0, 0)),
            pl.BlockSpec((kh2, kw2, c2, c1), lambda b: (0, 0, 0, 0)),
            pl.BlockSpec((c2, 1), lambda b: (0, 0)),
            pl.BlockSpec((kh3, kw3, c3, c2), lambda b: (0, 0, 0, 0)),
            pl.BlockSpec((c3, 1), lambda b: (0, 0)),
        ],
        out_specs=pl.BlockSpec((None, c3, h3 * w3), lambda b: (b, 0, 0)),
        scratch_shapes=[
            pltpu.VMEM((c1, h1p * w1p), jnp.float32),   # padded encoder output
            pltpu.VMEM((c2, h2p * w2p), jnp.float32),   # padded decoder output
        ],
        compiler_params=pltpu.CompilerParams(
            dimension_semantics=("parallel",)),         # megacore over batch
    )(x2, prep["w1"], prep["s1"], prep["b1"],
      prep["w2"], prep["b2"], prep["w3"], prep["b3"])

    return out.reshape(n, c3, h3, w3)                   # already NCHW


# ------------------------ pure-JAX reference check -------------------------- #
def _reference_forward(params, x_nchw, eps=1e-5):
    dn = ("NCHW", "OIHW", "NCHW")
    x = jax.lax.conv_general_dilated(x_nchw, params["enc_w"], (1, 1), "VALID",
                                     dimension_numbers=dn)
    x = x + params["enc_b"][None, :, None, None]
    s = params["bn_gamma"] / jnp.sqrt(params["bn_var"] + eps)
    t = params["bn_beta"] - params["bn_mean"] * s
    x = x * s[None, :, None, None] + t[None, :, None, None]

    def conv_t(x, w_iohw, b, k):
        w = jnp.transpose(jnp.flip(w_iohw, axis=(2, 3)), (1, 0, 2, 3))   # OIHW
        y = jax.lax.conv_general_dilated(
            x, w, (1, 1), padding=[(k - 1, k - 1), (k - 1, k - 1)],
            dimension_numbers=dn)
        return y + b[None, :, None, None]

    x = conv_t(x, params["dec_w"], params["dec_b"], 3)
    x = conv_t(x, params["dec1_w"], params["dec1_b"], 5)
    return x


if __name__ == "__main__":
    dim_in, dim_inter = 16, 32
    N, H, W = 2, 8, 8

    key = jax.random.PRNGKey(0)
    k_x, k_p = jax.random.split(key)
    x = jax.random.normal(k_x, (N, dim_in, H, W), jnp.float32)
    params = init_params(k_p, dim_in, dim_inter)
    ref = _reference_forward(params, x)

    # bf16 MXU operands (v6e/v7x-preferred), f32 accumulation.
    prep_bf16 = prepare_params(params, compute_dtype=jnp.bfloat16)
    out = jax.block_until_ready(jax.jit(tfblock_v4_forward)(prep_bf16, x))
    # shape: H -3 +2 +4 = H+3, W -1 +2 +4 = W+5
    assert out.shape == (N, dim_in, H + 3, W + 5), out.shape
    assert jnp.allclose(out, ref, atol=5e-2, rtol=5e-2), \
        float(jnp.max(jnp.abs(out - ref)))

    # f32-operand path: proves the fused algorithm matches the XLA reference
    # tightly (bf16 path differs only by operand rounding).
    prep_f32 = prepare_params(params, compute_dtype=jnp.float32)
    out32 = jax.block_until_ready(jax.jit(tfblock_v4_forward)(prep_f32, x))
    assert jnp.allclose(out32, ref, atol=1e-4, rtol=1e-4), \
        float(jnp.max(jnp.abs(out32 - ref)))

    print("KERNEL_OK")
</pallas_src>

<mosaic_0001>
module attributes {stable_mosaic.version = 11 : i64} {
  func.func @kernel(%arg0: i32, %arg1: memref<1x16x64xf32, #tpu.memory_space<vmem>>, %arg2: memref<4x2x32x16xbf16, #tpu.memory_space<vmem>>, %arg3: memref<32x1xf32, #tpu.memory_space<vmem>>, %arg4: memref<32x1xf32, #tpu.memory_space<vmem>>, %arg5: memref<3x3x24x32xbf16, #tpu.memory_space<vmem>>, %arg6: memref<24x1xf32, #tpu.memory_space<vmem>>, %arg7: memref<5x5x16x24xbf16, #tpu.memory_space<vmem>>, %arg8: memref<16x1xf32, #tpu.memory_space<vmem>>, %arg9: memref<1x16x143xf32, #tpu.memory_space<vmem>>, %arg10: memref<32x99xf32, #tpu.memory_space<vmem>>, %arg11: memref<24x255xf32, #tpu.memory_space<vmem>>) attributes {dimension_semantics = [#tpu.dimension_semantics<parallel>], iteration_bounds = array<i64: 2>, scalar_prefetch = 0 : i64, scratch_operands = 2 : i64, tpu.core_type = #tpu.core_type<tc>, window_params = [{transform_indices = @transform_0, window_bounds = array<i64: 1, 16, 64>}, {pipeline_mode = #tpu.pipeline_mode<synchronous>, transform_indices = @transform_1, window_bounds = array<i64: 4, 2, 32, 16>}, {pipeline_mode = #tpu.pipeline_mode<synchronous>, transform_indices = @transform_2, window_bounds = array<i64: 32, 1>}, {pipeline_mode = #tpu.pipeline_mode<synchronous>, transform_indices = @transform_3, window_bounds = array<i64: 32, 1>}, {pipeline_mode = #tpu.pipeline_mode<synchronous>, transform_indices = @transform_4, window_bounds = array<i64: 3, 3, 24, 32>}, {pipeline_mode = #tpu.pipeline_mode<synchronous>, transform_indices = @transform_5, window_bounds = array<i64: 24, 1>}, {pipeline_mode = #tpu.pipeline_mode<synchronous>, transform_indices = @transform_6, window_bounds = array<i64: 5, 5, 16, 24>}, {pipeline_mode = #tpu.pipeline_mode<synchronous>, transform_indices = @transform_7, window_bounds = array<i64: 16, 1>}, {transform_indices = @transform_8, window_bounds = array<i64: 1, 16, 143>}]} {
    %cst = arith.constant 0.000000e+00 : f32
    %0 = vector.broadcast %cst : f32 to vector<32x99xf32>
    %c0 = arith.constant 0 : index
    %c0_0 = arith.constant 0 : index
    %1 = vector.load %arg10[%c0, %c0_0] : memref<32x99xf32, #tpu.memory_space<vmem>>, vector<32x99xf32>
    tpu.vector_store %arg10[%c0, %c0_0], %0 {strides = array<i32>} : memref<32x99xf32, #tpu.memory_space<vmem>>, vector<32x99xf32>,
    %cst_1 = arith.constant 0.000000e+00 : f32
    %2 = vector.broadcast %cst_1 : f32 to vector<24x255xf32>
    %c0_2 = arith.constant 0 : index
    %c0_3 = arith.constant 0 : index
    %3 = vector.load %arg11[%c0_2, %c0_3] : memref<24x255xf32, #tpu.memory_space<vmem>>, vector<24x255xf32>
    tpu.vector_store %arg11[%c0_2, %c0_3], %2 {strides = array<i32>} : memref<24x255xf32, #tpu.memory_space<vmem>>, vector<24x255xf32>,
    %c0_4 = arith.constant 0 : index
    %c0_5 = arith.constant 0 : index
    %4 = vector.load %arg3[%c0_4, %c0_5] : memref<32x1xf32, #tpu.memory_space<vmem>>, vector<32x1xf32>
    %c0_6 = arith.constant 0 : index
    %c0_7 = arith.constant 0 : index
    %5 = vector.load %arg4[%c0_6, %c0_7] : memref<32x1xf32, #tpu.memory_space<vmem>>, vector<32x1xf32>
    %c0_8 = arith.constant 0 : index
    %c0_9 = arith.constant 0 : index
    %c0_10 = arith.constant 0 : index
    %c0_11 = arith.constant 0 : index
    %6 = vector.load %arg2[%c0_8, %c0_9, %c0_10, %c0_11] : memref<4x2x32x16xbf16, #tpu.memory_space<vmem>>, vector<1x1x32x16xbf16>
    %7 = vector.shape_cast %6 : vector<1x1x32x16xbf16> to vector<32x16xbf16>
    %c0_12 = arith.constant 0 : index
    %c0_13 = arith.constant 0 : index
    %c0_14 = arith.constant 0 : index
    %8 = vector.load %arg1[%c0_12, %c0_13, %c0_14] : memref<1x16x64xf32, #tpu.memory_space<vmem>>, vector<1x16x39xf32>
    %9 = vector.shape_cast %8 : vector<1x16x39xf32> to vector<16x39xf32>
    %10 = arith.truncf %9 : vector<16x39xf32> to vector<16x39xbf16>
    %cst_15 = arith.constant dense<0.000000e+00> : vector<32x39xf32>
    %11 = tpu.matmul %7, %10, %cst_15 {dimension_numbers = #tpu.dot_dimension_numbers<[1], [0], [0], [1], [0, 0, 1, 1], [], []>} : vector<32x16xbf16>, vector<16x39xbf16>, vector<32x39xf32> -> vector<32x39xf32>
    %c0_16 = arith.constant 0 : index
    %c1 = arith.constant 1 : index
    %c0_17 = arith.constant 0 : index
    %c0_18 = arith.constant 0 : index
    %12 = vector.load %arg2[%c0_16, %c1, %c0_17, %c0_18] : memref<4x2x32x16xbf16, #tpu.memory_space<vmem>>, vector<1x1x32x16xbf16>
    %13 = vector.shape_cast %12 : vector<1x1x32x16xbf16> to vector<32x16xbf16>
    %c0_19 = arith.constant 0 : index
    %c0_20 = arith.constant 0 : index
    %c1_21 = arith.constant 1 : index
    %14 = vector.load %arg1[%c0_19, %c0_20, %c1_21] : memref<1x16x64xf32, #tpu.memory_space<vmem>>, vector<1x16x39xf32>
    %15 = vector.shape_cast %14 : vector<1x16x39xf32> to vector<16x39xf32>
    %16 = arith.truncf %15 : vector<16x39xf32> to vector<16x39xbf16>
    %cst_22 = arith.constant dense<0.000000e+00> : vector<32x39xf32>
    %17 = tpu.matmul %13, %16, %cst_22 {dimension_numbers = #tpu.dot_dimension_numbers<[1], [0], [0], [1], [0, 0, 1, 1], [], []>} : vector<32x16xbf16>, vector<16x39xbf16>, vector<32x39xf32> -> vector<32x39xf32>
    %18 = arith.addf %11, %17 : vector<32x39xf32>
    %c1_23 = arith.constant 1 : index
    %c0_24 = arith.constant 0 : index
    %c0_25 = arith.constant 0 : index
    %c0_26 = arith.constant 0 : index
    %19 = vector.load %arg2[%c1_23, %c0_24, %c0_25, %c0_26] : memref<4x2x32x16xbf16, #tpu.memory_space<vmem>>, vector<1x1x32x16xbf16>
    %20 = vector.shape_cast %19 : vector<1x1x32x16xbf16> to vector<32x16xbf16>
    %c0_27 = arith.constant 0 : index
    %c0_28 = arith.constant 0 : index
    %c8 = arith.constant 8 : index
    %21 = vector.load %arg1[%c0_27, %c0_28, %c8] : memref<1x16x64xf32, #tpu.memory_space<vmem>>, vector<1x16x39xf32>
    %22 = vector.shape_cast %21 : vector<1x16x39xf32> to vector<16x39xf32>
    %23 = arith.truncf %22 : vector<16x39xf32> to vector<16x39xbf16>
    %cst_29 = arith.constant dense<0.000000e+00> : vector<32x39xf32>
    %24 = tpu.matmul %20, %23, %cst_29 {dimension_numbers = #tpu.dot_dimension_numbers<[1], [0], [0], [1], [0, 0, 1, 1], [], []>} : vector<32x16xbf16>, vector<16x39xbf16>, vector<32x39xf32> -> vector<32x39xf32>
    %25 = arith.addf %18, %24 : vector<32x39xf32>
    %c1_30 = arith.constant 1 : index
    %c1_31 = arith.constant 1 : index
    %c0_32 = arith.constant 0 : index
    %c0_33 = arith.constant 0 : index
    %26 = vector.load %arg2[%c1_30, %c1_31, %c0_32, %c0_33] : memref<4x2x32x16xbf16, #tpu.memory_space<vmem>>, vector<1x1x32x16xbf16>
    %27 = vector.shape_cast %26 : vector<1x1x32x16xbf16> to vector<32x16xbf16>
    %c0_34 = arith.constant 0 : index
    %c0_35 = arith.constant 0 : index
    %c9 = arith.constant 9 : index
    %28 = vector.load %arg1[%c0_34, %c0_35, %c9] : memref<1x16x64xf32, #tpu.memory_space<vmem>>, vector<1x16x39xf32>
    %29 = vector.shape_cast %28 : vector<1x16x39xf32> to vector<16x39xf32>
    %30 = arith.truncf %29 : vector<16x39xf32> to vector<16x39xbf16>
    %cst_36 = arith.constant dense<0.000000e+00> : vector<32x39xf32>
    %31 = tpu.matmul %27, %30, %cst_36 {dimension_numbers = #tpu.dot_dimension_numbers<[1], [0], [0], [1], [0, 0, 1, 1], [], []>} : vector<32x16xbf16>, vector<16x39xbf16>, vector<32x39xf32> -> vector<32x39xf32>
    %32 = arith.addf %25, %31 : vector<32x39xf32>
    %c2 = arith.constant 2 : index
    %c0_37 = arith.constant 0 : index
    %c0_38 = arith.constant 0 : index
    %c0_39 = arith.constant 0 : index
    %33 = vector.load %arg2[%c2, %c0_37, %c0_38, %c0_39] : memref<4x2x32x16xbf16, #tpu.memory_space<vmem>>, vector<1x1x32x16xbf16>
    %34 = vector.shape_cast %33 : vector<1x1x32x16xbf16> to vector<32x16xbf16>
    %c0_40 = arith.constant 0 : index
    %c0_41 = arith.constant 0 : index
    %c16 = arith.constant 16 : index
    %35 = vector.load %arg1[%c0_40, %c0_41, %c16] : memref<1x16x64xf32, #tpu.memory_space<vmem>>, vector<1x16x39xf32>
    %36 = vector.shape_cast %35 : vector<1x16x39xf32> to vector<16x39xf32>
    %37 = arith.truncf %36 : vector<16x39xf32> to vector<16x39xbf16>
    %cst_42 = arith.constant dense<0.000000e+00> : vector<32x39xf32>
    %38 = tpu.matmul %34, %37, %cst_42 {dimension_numbers = #tpu.dot_dimension_numbers<[1], [0], [0], [1], [0, 0, 1, 1], [], []>} : vector<32x16xbf16>, vector<16x39xbf16>, vector<32x39xf32> -> vector<32x39xf32>
    %39 = arith.addf %32, %38 : vector<32x39xf32>
    %c2_43 = arith.constant 2 : index
    %c1_44 = arith.constant 1 : index
    %c0_45 = arith.constant 0 : index
    %c0_46 = arith.constant 0 : index
    %40 = vector.load %arg2[%c2_43, %c1_44, %c0_45, %c0_46] : memref<4x2x32x16xbf16, #tpu.memory_space<vmem>>, vector<1x1x32x16xbf16>
    %41 = vector.shape_cast %40 : vector<1x1x32x16xbf16> to vector<32x16xbf16>
    %c0_47 = arith.constant 0 : index
    %c0_48 = arith.constant 0 : index
    %c17 = arith.constant 17 : index
    %42 = vector.load %arg1[%c0_47, %c0_48, %c17] : memref<1x16x64xf32, #tpu.memory_space<vmem>>, vector<1x16x39xf32>
    %43 = vector.shape_cast %42 : vector<1x16x39xf32> to vector<16x39xf32>
    %44 = arith.truncf %43 : vector<16x39xf32> to vector<16x39xbf16>
    %cst_49 = arith.constant dense<0.000000e+00> : vector<32x39xf32>
    %45 = tpu.matmul %41, %44, %cst_49 {dimension_numbers = #tpu.dot_dimension_numbers<[1], [0], [0], [1], [0, 0, 1, 1], [], []>} : vector<32x16xbf16>, vector<16x39xbf16>, vector<32x39xf32> -> vector<32x39xf32>
    %46 = arith.addf %39, %45 : vector<32x39xf32>
    %c3 = arith.constant 3 : index
    %c0_50 = arith.constant 0 : index
    %c0_51 = arith.constant 0 : index
    %c0_52 = arith.constant 0 : index
    %47 = vector.load %arg2[%c3, %c0_50, %c0_51, %c0_52] : memref<4x2x32x16xbf16, #tpu.memory_space<vmem>>, vector<1x1x32x16xbf16>
    %48 = vector.shape_cast %47 : vector<1x1x32x16xbf16> to vector<32x16xbf16>
    %c0_53 = arith.constant 0 : index
    %c0_54 = arith.constant 0 : index
    %c24 = arith.constant 24 : index
    %49 = vector.load %arg1[%c0_53, %c0_54, %c24] : memref<1x16x64xf32, #tpu.memory_space<vmem>>, vector<1x16x39xf32>
    %50 = vector.shape_cast %49 : vector<1x16x39xf32> to vector<16x39xf32>
    %51 = arith.truncf %50 : vector<16x39xf32> to vector<16x39xbf16>
    %cst_55 = arith.constant dense<0.000000e+00> : vector<32x39xf32>
    %52 = tpu.matmul %48, %51, %cst_55 {dimension_numbers = #tpu.dot_dimension_numbers<[1], [0], [0], [1], [0, 0, 1, 1], [], []>} : vector<32x16xbf16>, vector<16x39xbf16>, vector<32x39xf32> -> vector<32x39xf32>
    %53 = arith.addf %46, %52 : vector<32x39xf32>
    %c3_56 = arith.constant 3 : index
    %c1_57 = arith.constant 1 : index
    %c0_58 = arith.constant 0 : index
    %c0_59 = arith.constant 0 : index
    %54 = vector.load %arg2[%c3_56, %c1_57, %c0_58, %c0_59] : memref<4x2x32x16xbf16, #tpu.memory_space<vmem>>, vector<1x1x32x16xbf16>
    %55 = vector.shape_cast %54 : vector<1x1x32x16xbf16> to vector<32x16xbf16>
    %c0_60 = arith.constant 0 : index
    %c0_61 = arith.constant 0 : index
    %c25 = arith.constant 25 : index
    %56 = vector.load %arg1[%c0_60, %c0_61, %c25] : memref<1x16x64xf32, #tpu.memory_space<vmem>>, vector<1x16x39xf32>
    %57 = vector.shape_cast %56 : vector<1x16x39xf32> to vector<16x39xf32>
    %58 = arith.truncf %57 : vector<16x39xf32> to vector<16x39xbf16>
    %cst_62 = arith.constant dense<0.000000e+00> : vector<32x39xf32>
    %59 = tpu.matmul %55, %58, %cst_62 {dimension_numbers = #tpu.dot_dimension_numbers<[1], [0], [0], [1], [0, 0, 1, 1], [], []>} : vector<32x16xbf16>, vector<16x39xbf16>, vector<32x39xf32> -> vector<32x39xf32>
    %60 = arith.addf %53, %59 : vector<32x39xf32>
    %61 = vector.broadcast %4 : vector<32x1xf32> to vector<32x39xf32>
    %62 = arith.mulf %60, %61 : vector<32x39xf32>
    %63 = vector.broadcast %5 : vector<32x1xf32> to vector<32x39xf32>
    %64 = arith.addf %62, %63 : vector<32x39xf32>
    %65 = vector.extract_strided_slice %64 {offsets = [0, 0], sizes = [32, 7], strides = [1, 1]} : vector<32x39xf32> to vector<32x7xf32>
    %c0_63 = arith.constant 0 : index
    %c24_64 = arith.constant 24 : index
    %66 = vector.load %arg10[%c0_63, %c24_64] : memref<32x99xf32, #tpu.memory_space<vmem>>, vector<32x7xf32>
    tpu.vector_store %arg10[%c0_63, %c24_64], %65 {strides = array<i32>} : memref<32x99xf32, #tpu.memory_space<vmem>>, vector<32x7xf32>,
    %67 = vector.extract_strided_slice %64 {offsets = [0, 8], sizes = [32, 7], strides = [1, 1]} : vector<32x39xf32> to vector<32x7xf32>
    %c0_65 = arith.constant 0 : index
    %c35 = arith.constant 35 : index
    %68 = vector.load %arg10[%c0_65, %c35] : memref<32x99xf32, #tpu.memory_space<vmem>>, vector<32x7xf32>
    tpu.vector_store %arg10[%c0_65, %c35], %67 {strides = array<i32>} : memref<32x99xf32, #tpu.memory_space<vmem>>, vector<32x7xf32>,
    %69 = vector.extract_strided_slice %64 {offsets = [0, 16], sizes = [32, 7], strides = [1, 1]} : vector<32x39xf32> to vector<32x7xf32>
    %c0_66 = arith.constant 0 : index
    %c46 = arith.constant 46 : index
    %70 = vector.load %arg10[%c0_66, %c46] : memref<32x99xf32, #tpu.memory_space<vmem>>, vector<32x7xf32>
    tpu.vector_store %arg10[%c0_66, %c46], %69 {strides = array<i32>} : memref<32x99xf32, #tpu.memory_space<vmem>>, vector<32x7xf32>,
    %71 = vector.extract_strided_slice %64 {offsets = [0, 24], sizes = [32, 7], strides = [1, 1]} : vector<32x39xf32> to vector<32x7xf32>
    %c0_67 = arith.constant 0 : index
    %c57 = arith.constant 57 : index
    %72 = vector.load %arg10[%c0_67, %c57] : memref<32x99xf32, #tpu.memory_space<vmem>>, vector<32x7xf32>
    tpu.vector_store %arg10[%c0_67, %c57], %71 {strides = array<i32>} : memref<32x99xf32, #tpu.memory_space<vmem>>, vector<32x7xf32>,
    %73 = vector.extract_strided_slice %64 {offsets = [0, 32], sizes = [32, 7], strides = [1, 1]} : vector<32x39xf32> to vector<32x7xf32>
    %c0_68 = arith.constant 0 : index
    %c68 = arith.constant 68 : index
    %74 = vector.load %arg10[%c0_68, %c68] : memref<32x99xf32, #tpu.memory_space<vmem>>, vector<32x7xf32>
    tpu.vector_store %arg10[%c0_68, %c68], %73 {strides = array<i32>} : memref<32x99xf32, #tpu.memory_space<vmem>>, vector<32x7xf32>,
    %c0_69 = arith.constant 0 : index
    %c0_70 = arith.constant 0 : index
    %75 = vector.load %arg6[%c0_69, %c0_70] : memref<24x1xf32, #tpu.memory_space<vmem>>, vector<24x1xf32>
    %c0_71 = arith.constant 0 : index
    %c0_72 = arith.constant 0 : index
    %c0_73 = arith.constant 0 : index
    %c0_74 = arith.constant 0 : index
    %76 = vector.load %arg5[%c0_71, %c0_72, %c0_73, %c0_74] : memref<3x3x24x32xbf16, #tpu.memory_space<vmem>>, vector<1x1x24x32xbf16>
    %77 = vector.shape_cast %76 : vector<1x1x24x32xbf16> to vector<24x32xbf16>
    %c0_75 = arith.constant 0 : index
    %c0_76 = arith.constant 0 : index
    %78 = vector.load %arg10[%c0_75, %c0_76] : memref<32x99xf32, #tpu.memory_space<vmem>>, vector<32x75xf32>
    %79 = arith.truncf %78 : vector<32x75xf32> to vector<32x75xbf16>
    %cst_77 = arith.constant dense<0.000000e+00> : vector<24x75xf32>
    %80 = tpu.matmul %77, %79, %cst_77 {dimension_numbers = #tpu.dot_dimension_numbers<[1], [0], [0], [1], [0, 0, 1, 1], [], []>} : vector<24x32xbf16>, vector<32x75xbf16>, vector<24x75xf32> -> vector<24x75xf32>
    %c0_78 = arith.constant 0 : index
    %c1_79 = arith.constant 1 : index
    %c0_80 = arith.constant 0 : index
    %c0_81 = arith.constant 0 : index
    %81 = vector.load %arg5[%c0_78, %c1_79, %c0_80, %c0_81] : memref<3x3x24x32xbf16, #tpu.memory_space<vmem>>, vector<1x1x24x32xbf16>
    %82 = vector.shape_cast %81 : vector<1x1x24x32xbf16> to vector<24x32xbf16>
    %c0_82 = arith.constant 0 : index
    %c1_83 = arith.constant 1 : index
    %83 = vector.load %arg10[%c0_82, %c1_83] : memref<32x99xf32, #tpu.memory_space<vmem>>, vector<32x75xf32>
    %84 = arith.truncf %83 : vector<32x75xf32> to vector<32x75xbf16>
    %cst_84 = arith.constant dense<0.000000e+00> : vector<24x75xf32>
    %85 = tpu.matmul %82, %84, %cst_84 {dimension_numbers = #tpu.dot_dimension_numbers<[1], [0], [0], [1], [0, 0, 1, 1], [], []>} : vector<24x32xbf16>, vector<32x75xbf16>, vector<24x75xf32> -> vector<24x75xf32>
    %86 = arith.addf %80, %85 : vector<24x75xf32>
    %c0_85 = arith.constant 0 : index
    %c2_86 = arith.constant 2 : index
    %c0_87 = arith.constant 0 : index
    %c0_88 = arith.constant 0 : index
    %87 = vector.load %arg5[%c0_85, %c2_86, %c0_87, %c0_88] : memref<3x3x24x32xbf16, #tpu.memory_space<vmem>>, vector<1x1x24x32xbf16>
    %88 = vector.shape_cast %87 : vector<1x1x24x32xbf16> to vector<24x32xbf16>
    %c0_89 = arith.constant 0 : index
    %c2_90 = arith.constant 2 : index
    %89 = vector.load %arg10[%c0_89, %c2_90] : memref<32x99xf32, #tpu.memory_space<vmem>>, vector<32x75xf32>
    %90 = arith.truncf %89 : vector<32x75xf32> to vector<32x75xbf16>
    %cst_91 = arith.constant dense<0.000000e+00> : vector<24x75xf32>
    %91 = tpu.matmul %88, %90, %cst_91 {dimension_numbers = #tpu.dot_dimension_numbers<[1], [0], [0], [1], [0, 0, 1, 1], [], []>} : vector<24x32xbf16>, vector<32x75xbf16>, vector<24x75xf32> -> vector<24x75xf32>
    %92 = arith.addf %86, %91 : vector<24x75xf32>
    %c1_92 = arith.constant 1 : index
    %c0_93 = arith.constant 0 : index
    %c0_94 = arith.constant 0 : index
    %c0_95 = arith.constant 0 : index
    %93 = vector.load %arg5[%c1_92, %c0_93, %c0_94, %c0_95] : memref<3x3x24x32xbf16, #tpu.memory_space<vmem>>, vector<1x1x24x32xbf16>
    %94 = vector.shape_cast %93 : vector<1x1x24x32xbf16> to vector<24x32xbf16>
    %c0_96 = arith.constant 0 : index
    %c11 = arith.constant 11 : index
    %95 = vector.load %arg10[%c0_96, %c11] : memref<32x99xf32, #tpu.memory_space<vmem>>, vector<32x75xf32>
    %96 = arith.truncf %95 : vector<32x75xf32> to vector<32x75xbf16>
    %cst_97 = arith.constant dense<0.000000e+00> : vector<24x75xf32>
    %97 = tpu.matmul %94, %96, %cst_97 {dimension_numbers = #tpu.dot_dimension_numbers<[1], [0], [0], [1], [0, 0, 1, 1], [], []>} : vector<24x32xbf16>, vector<32x75xbf16>, vector<24x75xf32> -> vector<24x75xf32>
    %98 = arith.addf %92, %97 : vector<24x75xf32>
    %c1_98 = arith.constant 1 : index
    %c1_99 = arith.constant 1 : index
    %c0_100 = arith.constant 0 : index
    %c0_101 = arith.constant 0 : index
    %99 = vector.load %arg5[%c1_98, %c1_99, %c0_100, %c0_101] : memref<3x3x24x32xbf16, #tpu.memory_space<vmem>>, vector<1x1x24x32xbf16>
    %100 = vector.shape_cast %99 : vector<1x1x24x32xbf16> to vector<24x32xbf16>
    %c0_102 = arith.constant 0 : index
    %c12 = arith.constant 12 : index
    %101 = vector.load %arg10[%c0_102, %c12] : memref<32x99xf32, #tpu.memory_space<vmem>>, vector<32x75xf32>
    %102 = arith.truncf %101 : vector<32x75xf32> to vector<32x75xbf16>
    %cst_103 = arith.constant dense<0.000000e+00> : vector<24x75xf32>
    %103 = tpu.matmul %100, %102, %cst_103 {dimension_numbers = #tpu.dot_dimension_numbers<[1], [0], [0], [1], [0, 0, 1, 1], [], []>} : vector<24x32xbf16>, vector<32x75xbf16>, vector<24x75xf32> -> vector<24x75xf32>
    %104 = arith.addf %98, %103 : vector<24x75xf32>
    %c1_104 = arith.constant 1 : index
    %c2_105 = arith.constant 2 : index
    %c0_106 = arith.constant 0 : index
    %c0_107 = arith.constant 0 : index
    %105 = vector.load %arg5[%c1_104, %c2_105, %c0_106, %c0_107] : memref<3x3x24x32xbf16, #tpu.memory_space<vmem>>, vector<1x1x24x32xbf16>
    %106 = vector.shape_cast %105 : vector<1x1x24x32xbf16> to vector<24x32xbf16>
    %c0_108 = arith.constant 0 : index
    %c13 = arith.constant 13 : index
    %107 = vector.load %arg10[%c0_108, %c13] : memref<32x99xf32, #tpu.memory_space<vmem>>, vector<32x75xf32>
    %108 = arith.truncf %107 : vector<32x75xf32> to vector<32x75xbf16>
    %cst_109 = arith.constant dense<0.000000e+00> : vector<24x75xf32>
    %109 = tpu.matmul %106, %108, %cst_109 {dimension_numbers = #tpu.dot_dimension_numbers<[1], [0], [0], [1], [0, 0, 1, 1], [], []>} : vector<24x32xbf16>, vector<32x75xbf16>, vector<24x75xf32> -> vector<24x75xf32>
    %110 = arith.addf %104, %109 : vector<24x75xf32>
    %c2_110 = arith.constant 2 : index
    %c0_111 = arith.constant 0 : index
    %c0_112 = arith.constant 0 : index
    %c0_113 = arith.constant 0 : index
    %111 = vector.load %arg5[%c2_110, %c0_111, %c0_112, %c0_113] : memref<3x3x24x32xbf16, #tpu.memory_space<vmem>>, vector<1x1x24x32xbf16>
    %112 = vector.shape_cast %111 : vector<1x1x24x32xbf16> to vector<24x32xbf16>
    %c0_114 = arith.constant 0 : index
    %c22 = arith.constant 22 : index
    %113 = vector.load %arg10[%c0_114, %c22] : memref<32x99xf32, #tpu.memory_space<vmem>>, vector<32x75xf32>
    %114 = arith.truncf %113 : vector<32x75xf32> to vector<32x75xbf16>
    %cst_115 = arith.constant dense<0.000000e+00> : vector<24x75xf32>
    %115 = tpu.matmul %112, %114, %cst_115 {dimension_numbers = #tpu.dot_dimension_numbers<[1], [0], [0], [1], [0, 0, 1, 1], [], []>} : vector<24x32xbf16>, vector<32x75xbf16>, vector<24x75xf32> -> vector<24x75xf32>
    %116 = arith.addf %110, %115 : vector<24x75xf32>
    %c2_116 = arith.constant 2 : index
    %c1_117 = arith.constant 1 : index
    %c0_118 = arith.constant 0 : index
    %c0_119 = arith.constant 0 : index
    %117 = vector.load %arg5[%c2_116, %c1_117, %c0_118, %c0_119] : memref<3x3x24x32xbf16, #tpu.memory_space<vmem>>, vector<1x1x24x32xbf16>
    %118 = vector.shape_cast %117 : vector<1x1x24x32xbf16> to vector<24x32xbf16>
    %c0_120 = arith.constant 0 : index
    %c23 = arith.constant 23 : index
    %119 = vector.load %arg10[%c0_120, %c23] : memref<32x99xf32, #tpu.memory_space<vmem>>, vector<32x75xf32>
    %120 = arith.truncf %119 : vector<32x75xf32> to vector<32x75xbf16>
    %cst_121 = arith.constant dense<0.000000e+00> : vector<24x75xf32>
    %121 = tpu.matmul %118, %120, %cst_121 {dimension_numbers = #tpu.dot_dimension_numbers<[1], [0], [0], [1], [0, 0, 1, 1], [], []>} : vector<24x32xbf16>, vector<32x75xbf16>, vector<24x75xf32> -> vector<24x75xf32>
    %122 = arith.addf %116, %121 : vector<24x75xf32>
    %c2_122 = arith.constant 2 : index
    %c2_123 = arith.constant 2 : index
    %c0_124 = arith.constant 0 : index
    %c0_125 = arith.constant 0 : index
    %123 = vector.load %arg5[%c2_122, %c2_123, %c0_124, %c0_125] : memref<3x3x24x32xbf16, #tpu.memory_space<vmem>>, vector<1x1x24x32xbf16>
    %124 = vector.shape_cast %123 : vector<1x1x24x32xbf16> to vector<24x32xbf16>
    %c0_126 = arith.constant 0 : index
    %c24_127 = arith.constant 24 : index
    %125 = vector.load %arg10[%c0_126, %c24_127] : memref<32x99xf32, #tpu.memory_space<vmem>>, vector<32x75xf32>
    %126 = arith.truncf %125 : vector<32x75xf32> to vector<32x75xbf16>
    %cst_128 = arith.constant dense<0.000000e+00> : vector<24x75xf32>
    %127 = tpu.matmul %124, %126, %cst_128 {dimension_numbers = #tpu.dot_dimension_numbers<[1], [0], [0], [1], [0, 0, 1, 1], [], []>} : vector<24x32xbf16>, vector<32x75xbf16>, vector<24x75xf32> -> vector<24x75xf32>
    %128 = arith.addf %122, %127 : vector<24x75xf32>
    %129 = vector.broadcast %75 : vector<24x1xf32> to vector<24x75xf32>
    %130 = arith.addf %128, %129 : vector<24x75xf32>
    %131 = vector.extract_strided_slice %130 {offsets = [0, 0], sizes = [24, 9], strides = [1, 1]} : vector<24x75xf32> to vector<24x9xf32>
    %c0_129 = arith.constant 0 : index
    %c72 = arith.constant 72 : index
    %132 = vector.load %arg11[%c0_129, %c72] : memref<24x255xf32, #tpu.memory_space<vmem>>, vector<24x9xf32>
    tpu.vector_store %arg11[%c0_129, %c72], %131 {strides = array<i32>} : memref<24x255xf32, #tpu.memory_space<vmem>>, vector<24x9xf32>,
    %133 = vector.extract_strided_slice %130 {offsets = [0, 11], sizes = [24, 9], strides = [1, 1]} : vector<24x75xf32> to vector<24x9xf32>
    %c0_130 = arith.constant 0 : index
    %c89 = arith.constant 89 : index
    %134 = vector.load %arg11[%c0_130, %c89] : memref<24x255xf32, #tpu.memory_space<vmem>>, vector<24x9xf32>
    tpu.vector_store %arg11[%c0_130, %c89], %133 {strides = array<i32>} : memref<24x255xf32, #tpu.memory_space<vmem>>, vector<24x9xf32>,
    %135 = vector.extract_strided_slice %130 {offsets = [0, 22], sizes = [24, 9], strides = [1, 1]} : vector<24x75xf32> to vector<24x9xf32>
    %c0_131 = arith.constant 0 : index
    %c106 = arith.constant 106 : index
    %136 = vector.load %arg11[%c0_131, %c106] : memref<24x255xf32, #tpu.memory_space<vmem>>, vector<24x9xf32>
    tpu.vector_store %arg11[%c0_131, %c106], %135 {strides = array<i32>} : memref<24x255xf32, #tpu.memory_space<vmem>>, vector<24x9xf32>,
    %137 = vector.extract_strided_slice %130 {offsets = [0, 33], sizes = [24, 9], strides = [1, 1]} : vector<24x75xf32> to vector<24x9xf32>
    %c0_132 = arith.constant 0 : index
    %c123 = arith.constant 123 : index
    %138 = vector.load %arg11[%c0_132, %c123] : memref<24x255xf32, #tpu.memory_space<vmem>>, vector<24x9xf32>
    tpu.vector_store %arg11[%c0_132, %c123], %137 {strides = array<i32>} : memref<24x255xf32, #tpu.memory_space<vmem>>, vector<24x9xf32>,
    %139 = vector.extract_strided_slice %130 {offsets = [0, 44], sizes = [24, 9], strides = [1, 1]} : vector<24x75xf32> to vector<24x9xf32>
    %c0_133 = arith.constant 0 : index
    %c140 = arith.constant 140 : index
    %140 = vector.load %arg11[%c0_133, %c140] : memref<24x255xf32, #tpu.memory_space<vmem>>, vector<24x9xf32>
    tpu.vector_store %arg11[%c0_133, %c140], %139 {strides = array<i32>} : memref<24x255xf32, #tpu.memory_space<vmem>>, vector<24x9xf32>,
    %141 = vector.extract_strided_slice %130 {offsets = [0, 55], sizes = [24, 9], strides = [1, 1]} : vector<24x75xf32> to vector<24x9xf32>
    %c0_134 = arith.constant 0 : index
    %c157 = arith.constant 157 : index
    %142 = vector.load %arg11[%c0_134, %c157] : memref<24x255xf32, #tpu.memory_space<vmem>>, vector<24x9xf32>
    tpu.vector_store %arg11[%c0_134, %c157], %141 {strides = array<i32>} : memref<24x255xf32, #tpu.memory_space<vmem>>, vector<24x9xf32>,
    %143 = vector.extract_strided_slice %130 {offsets = [0, 66], sizes = [24, 9], strides = [1, 1]} : vector<24x75xf32> to vector<24x9xf32>
    %c0_135 = arith.constant 0 : index
    %c174 = arith.constant 174 : index
    %144 = vector.load %arg11[%c0_135, %c174] : memref<24x255xf32, #tpu.memory_space<vmem>>, vector<24x9xf32>
    tpu.vector_store %arg11[%c0_135, %c174], %143 {strides = array<i32>} : memref<24x255xf32, #tpu.memory_space<vmem>>, vector<24x9xf32>,
    %c0_136 = arith.constant 0 : index
    %c0_137 = arith.constant 0 : index
    %145 = vector.load %arg8[%c0_136, %c0_137] : memref<16x1xf32, #tpu.memory_space<vmem>>, vector<16x1xf32>
    %c0_138 = arith.constant 0 : index
    %c0_139 = arith.constant 0 : index
    %c0_140 = arith.constant 0 : index
    %c0_141 = arith.constant 0 : index
    %146 = vector.load %arg7[%c0_138, %c0_139, %c0_140, %c0_141] : memref<5x5x16x24xbf16, #tpu.memory_space<vmem>>, vector<1x1x16x24xbf16>
    %147 = vector.shape_cast %146 : vector<1x1x16x24xbf16> to vector<16x24xbf16>
    %c0_142 = arith.constant 0 : index
    %c0_143 = arith.constant 0 : index
    %148 = vector.load %arg11[%c0_142, %c0_143] : memref<24x255xf32, #tpu.memory_space<vmem>>, vector<24x183xf32>
    %149 = arith.truncf %148 : vector<24x183xf32> to vector<24x183xbf16>
    %cst_144 = arith.constant dense<0.000000e+00> : vector<16x183xf32>
    %150 = tpu.matmul %147, %149, %cst_144 {dimension_numbers = #tpu.dot_dimension_numbers<[1], [0], [0], [1], [0, 0, 1, 1], [], []>} : vector<16x24xbf16>, vector<24x183xbf16>, vector<16x183xf32> -> vector<16x183xf32>
    %c0_145 = arith.constant 0 : index
    %c1_146 = arith.constant 1 : index
    %c0_147 = arith.constant 0 : index
    %c0_148 = arith.constant 0 : index
    %151 = vector.load %arg7[%c0_145, %c1_146, %c0_147, %c0_148] : memref<5x5x16x24xbf16, #tpu.memory_space<vmem>>, vector<1x1x16x24xbf16>
    %152 = vector.shape_cast %151 : vector<1x1x16x24xbf16> to vector<16x24xbf16>
    %c0_149 = arith.constant 0 : index
    %c1_150 = arith.constant 1 : index
    %153 = vector.load %arg11[%c0_149, %c1_150] : memref<24x255xf32, #tpu.memory_space<vmem>>, vector<24x183xf32>
    %154 = arith.truncf %153 : vector<24x183xf32> to vector<24x183xbf16>
    %cst_151 = arith.constant dense<0.000000e+00> : vector<16x183xf32>
    %155 = tpu.matmul %152, %154, %cst_151 {dimension_numbers = #tpu.dot_dimension_numbers<[1], [0], [0], [1], [0, 0, 1, 1], [], []>} : vector<16x24xbf16>, vector<24x183xbf16>, vector<16x183xf32> -> vector<16x183xf32>
    %156 = arith.addf %150, %155 : vector<16x183xf32>
    %c0_152 = arith.constant 0 : index
    %c2_153 = arith.constant 2 : index
    %c0_154 = arith.constant 0 : index
    %c0_155 = arith.constant 0 : index
    %157 = vector.load %arg7[%c0_152, %c2_153, %c0_154, %c0_155] : memref<5x5x16x24xbf16, #tpu.memory_space<vmem>>, vector<1x1x16x24xbf16>
    %158 = vector.shape_cast %157 : vector<1x1x16x24xbf16> to vector<16x24xbf16>
    %c0_156 = arith.constant 0 : index
    %c2_157 = arith.constant 2 : index
    %159 = vector.load %arg11[%c0_156, %c2_157] : memref<24x255xf32, #tpu.memory_space<vmem>>, vector<24x183xf32>
    %160 = arith.truncf %159 : vector<24x183xf32> to vector<24x183xbf16>
    %cst_158 = arith.constant dense<0.000000e+00> : vector<16x183xf32>
    %161 = tpu.matmul %158, %160, %cst_158 {dimension_numbers = #tpu.dot_dimension_numbers<[1], [0], [0], [1], [0, 0, 1, 1], [], []>} : vector<16x24xbf16>, vector<24x183xbf16>, vector<16x183xf32> -> vector<16x183xf32>
    %162 = arith.addf %156, %161 : vector<16x183xf32>
    %c0_159 = arith.constant 0 : index
    %c3_160 = arith.constant 3 : index
    %c0_161 = arith.constant 0 : index
    %c0_162 = arith.constant 0 : index
    %163 = vector.load %arg7[%c0_159, %c3_160, %c0_161, %c0_162] : memref<5x5x16x24xbf16, #tpu.memory_space<vmem>>, vector<1x1x16x24xbf16>
    %164 = vector.shape_cast %163 : vector<1x1x16x24xbf16> to vector<16x24xbf16>
    %c0_163 = arith.constant 0 : index
    %c3_164 = arith.constant 3 : index
    %165 = vector.load %arg11[%c0_163, %c3_164] : memref<24x255xf32, #tpu.memory_space<vmem>>, vector<24x183xf32>
    %166 = arith.truncf %165 : vector<24x183xf32> to vector<24x183xbf16>
    %cst_165 = arith.constant dense<0.000000e+00> : vector<16x183xf32>
    %167 = tpu.matmul %164, %166, %cst_165 {dimension_numbers = #tpu.dot_dimension_numbers<[1], [0], [0], [1], [0, 0, 1, 1], [], []>} : vector<16x24xbf16>, vector<24x183xbf16>, vector<16x183xf32> -> vector<16x183xf32>
    %168 = arith.addf %162, %167 : vector<16x183xf32>
    %c0_166 = arith.constant 0 : index
    %c4 = arith.constant 4 : index
    %c0_167 = arith.constant 0 : index
    %c0_168 = arith.constant 0 : index
    %169 = vector.load %arg7[%c0_166, %c4, %c0_167, %c0_168] : memref<5x5x16x24xbf16, #tpu.memory_space<vmem>>, vector<1x1x16x24xbf16>
    %170 = vector.shape_cast %169 : vector<1x1x16x24xbf16> to vector<16x24xbf16>
    %c0_169 = arith.constant 0 : index
    %c4_170 = arith.constant 4 : index
    %171 = vector.load %arg11[%c0_169, %c4_170] : memref<24x255xf32, #tpu.memory_space<vmem>>, vector<24x183xf32>
    %172 = arith.truncf %171 : vector<24x183xf32> to vector<24x183xbf16>
    %cst_171 = arith.constant dense<0.000000e+00> : vector<16x183xf32>
    %173 = tpu.matmul %170, %172, %cst_171 {dimension_numbers = #tpu.dot_dimension_numbers<[1], [0], [0], [1], [0, 0, 1, 1], [], []>} : vector<16x24xbf16>, vector<24x183xbf16>, vector<16x183xf32> -> vector<16x183xf32>
    %174 = arith.addf %168, %173 : vector<16x183xf32>
    %c1_172 = arith.constant 1 : index
    %c0_173 = arith.constant 0 : index
    %c0_174 = arith.constant 0 : index
    %c0_175 = arith.constant 0 : index
    %175 = vector.load %arg7[%c1_172, %c0_173, %c0_174, %c0_175] : memref<5x5x16x24xbf16, #tpu.memory_space<vmem>>, vector<1x1x16x24xbf16>
    %176 = vector.shape_cast %175 : vector<1x1x16x24xbf16> to vector<16x24xbf16>
    %c0_176 = arith.constant 0 : index
    %c17_177 = arith.constant 17 : index
    %177 = vector.load %arg11[%c0_176, %c17_177] : memref<24x255xf32, #tpu.memory_space<vmem>>, vector<24x183xf32>
    %178 = arith.truncf %177 : vector<24x183xf32> to vector<24x183xbf16>
    %cst_178 = arith.constant dense<0.000000e+00> : vector<16x183xf32>
    %179 = tpu.matmul %176, %178, %cst_178 {dimension_numbers = #tpu.dot_dimension_numbers<[1], [0], [0], [1], [0, 0, 1, 1], [], []>} : vector<16x24xbf16>, vector<24x183xbf16>, vector<16x183xf32> -> vector<16x183xf32>
    %180 = arith.addf %174, %179 : vector<16x183xf32>
    %c1_179 = arith.constant 1 : index
    %c1_180 = arith.constant 1 : index
    %c0_181 = arith.constant 0 : index
    %c0_182 = arith.constant 0 : index
    %181 = vector.load %arg7[%c1_179, %c1_180, %c0_181, %c0_182] : memref<5x5x16x24xbf16, #tpu.memory_space<vmem>>, vector<1x1x16x24xbf16>
    %182 = vector.shape_cast %181 : vector<1x1x16x24xbf16> to vector<16x24xbf16>
    %c0_183 = arith.constant 0 : index
    %c18 = arith.constant 18 : index
    %183 = vector.load %arg11[%c0_183, %c18] : memref<24x255xf32, #tpu.memory_space<vmem>>, vector<24x183xf32>
    %184 = arith.truncf %183 : vector<24x183xf32> to vector<24x183xbf16>
    %cst_184 = arith.constant dense<0.000000e+00> : vector<16x183xf32>
    %185 = tpu.matmul %182, %184, %cst_184 {dimension_numbers = #tpu.dot_dimension_numbers<[1], [0], [0], [1], [0, 0, 1, 1], [], []>} : vector<16x24xbf16>, vector<24x183xbf16>, vector<16x183xf32> -> vector<16x183xf32>
    %186 = arith.addf %180, %185 : vector<16x183xf32>
    %c1_185 = arith.constant 1 : index
    %c2_186 = arith.constant 2 : index
    %c0_187 = arith.constant 0 : index
    %c0_188 = arith.constant 0 : index
    %187 = vector.load %arg7[%c1_185, %c2_186, %c0_187, %c0_188] : memref<5x5x16x24xbf16, #tpu.memory_space<vmem>>, vector<1x1x16x24xbf16>
    %188 = vector.shape_cast %187 : vector<1x1x16x24xbf16> to vector<16x24xbf16>
    %c0_189 = arith.constant 0 : index
    %c19 = arith.constant 19 : index
    %189 = vector.load %arg11[%c0_189, %c19] : memref<24x255xf32, #tpu.memory_space<vmem>>, vector<24x183xf32>
    %190 = arith.truncf %189 : vector<24x183xf32> to vector<24x183xbf16>
    %cst_190 = arith.constant dense<0.000000e+00> : vector<16x183xf32>
    %191 = tpu.matmul %188, %190, %cst_190 {dimension_numbers = #tpu.dot_dimension_numbers<[1], [0], [0], [1], [0, 0, 1, 1], [], []>} : vector<16x24xbf16>, vector<24x183xbf16>, vector<16x183xf32> -> vector<16x183xf32>
    %192 = arith.addf %186, %191 : vector<16x183xf32>
    %c1_191 = arith.constant 1 : index
    %c3_192 = arith.constant 3 : index
    %c0_193 = arith.constant 0 : index
    %c0_194 = arith.constant 0 : index
    %193 = vector.load %arg7[%c1_191, %c3_192, %c0_193, %c0_194] : memref<5x5x16x24xbf16, #tpu.memory_space<vmem>>, vector<1x1x16x24xbf16>
    %194 = vector.shape_cast %193 : vector<1x1x16x24xbf16> to vector<16x24xbf16>
    %c0_195 = arith.constant 0 : index
    %c20 = arith.constant 20 : index
    %195 = vector.load %arg11[%c0_195, %c20] : memref<24x255xf32, #tpu.memory_space<vmem>>, vector<24x183xf32>
    %196 = arith.truncf %195 : vector<24x183xf32> to vector<24x183xbf16>
    %cst_196 = arith.constant dense<0.000000e+00> : vector<16x183xf32>
    %197 = tpu.matmul %194, %196, %cst_196 {dimension_numbers = #tpu.dot_dimension_numbers<[1], [0], [0], [1], [0, 0, 1, 1], [], []>} : vector<16x24xbf16>, vector<24x183xbf16>, vector<16x183xf32> -> vector<16x183xf32>
    %198 = arith.addf %192, %197 : vector<16x183xf32>
    %c1_197 = arith.constant 1 : index
    %c4_198 = arith.constant 4 : index
    %c0_199 = arith.constant 0 : index
    %c0_200 = arith.constant 0 : index
    %199 = vector.load %arg7[%c1_197, %c4_198, %c0_199, %c0_200] : memref<5x5x16x24xbf16, #tpu.memory_space<vmem>>, vector<1x1x16x24xbf16>
    %200 = vector.shape_cast %199 : vector<1x1x16x24xbf16> to vector<16x24xbf16>
    %c0_201 = arith.constant 0 : index
    %c21 = arith.constant 21 : index
    %201 = vector.load %arg11[%c0_201, %c21] : memref<24x255xf32, #tpu.memory_space<vmem>>, vector<24x183xf32>
    %202 = arith.truncf %201 : vector<24x183xf32> to vector<24x183xbf16>
    %cst_202 = arith.constant dense<0.000000e+00> : vector<16x183xf32>
    %203 = tpu.matmul %200, %202, %cst_202 {dimension_numbers = #tpu.dot_dimension_numbers<[1], [0], [0], [1], [0, 0, 1, 1], [], []>} : vector<16x24xbf16>, vector<24x183xbf16>, vector<16x183xf32> -> vector<16x183xf32>
    %204 = arith.addf %198, %203 : vector<16x183xf32>
    %c2_203 = arith.constant 2 : index
    %c0_204 = arith.constant 0 : index
    %c0_205 = arith.constant 0 : index
    %c0_206 = arith.constant 0 : index
    %205 = vector.load %arg7[%c2_203, %c0_204, %c0_205, %c0_206] : memref<5x5x16x24xbf16, #tpu.memory_space<vmem>>, vector<1x1x16x24xbf16>
    %206 = vector.shape_cast %205 : vector<1x1x16x24xbf16> to vector<16x24xbf16>
    %c0_207 = arith.constant 0 : index
    %c34 = arith.constant 34 : index
    %207 = vector.load %arg11[%c0_207, %c34] : memref<24x255xf32, #tpu.memory_space<vmem>>, vector<24x183xf32>
    %208 = arith.truncf %207 : vector<24x183xf32> to vector<24x183xbf16>
    %cst_208 = arith.constant dense<0.000000e+00> : vector<16x183xf32>
    %209 = tpu.matmul %206, %208, %cst_208 {dimension_numbers = #tpu.dot_dimension_numbers<[1], [0], [0], [1], [0, 0, 1, 1], [], []>} : vector<16x24xbf16>, vector<24x183xbf16>, vector<16x183xf32> -> vector<16x183xf32>
    %210 = arith.addf %204, %209 : vector<16x183xf32>
    %c2_209 = arith.constant 2 : index
    %c1_210 = arith.constant 1 : index
    %c0_211 = arith.constant 0 : index
    %c0_212 = arith.constant 0 : index
    %211 = vector.load %arg7[%c2_209, %c1_210, %c0_211, %c0_212] : memref<5x5x16x24xbf16, #tpu.memory_space<vmem>>, vector<1x1x16x24xbf16>
    %212 = vector.shape_cast %211 : vector<1x1x16x24xbf16> to vector<16x24xbf16>
    %c0_213 = arith.constant 0 : index
    %c35_214 = arith.constant 35 : index
    %213 = vector.load %arg11[%c0_213, %c35_214] : memref<24x255xf32, #tpu.memory_space<vmem>>, vector<24x183xf32>
    %214 = arith.truncf %213 : vector<24x183xf32> to vector<24x183xbf16>
    %cst_215 = arith.constant dense<0.000000e+00> : vector<16x183xf32>
    %215 = tpu.matmul %212, %214, %cst_215 {dimension_numbers = #tpu.dot_dimension_numbers<[1], [0], [0], [1], [0, 0, 1, 1], [], []>} : vector<16x24xbf16>, vector<24x183xbf16>, vector<16x183xf32> -> vector<16x183xf32>
    %216 = arith.addf %210, %215 : vector<16x183xf32>
    %c2_216 = arith.constant 2 : index
    %c2_217 = arith.constant 2 : index
    %c0_218 = arith.constant 0 : index
    %c0_219 = arith.constant 0 : index
    %217 = vector.load %arg7[%c2_216, %c2_217, %c0_218, %c0_219] : memref<5x5x16x24xbf16, #tpu.memory_space<vmem>>, vector<1x1x16x24xbf16>
    %218 = vector.shape_cast %217 : vector<1x1x16x24xbf16> to vector<16x24xbf16>
    %c0_220 = arith.constant 0 : index
    %c36 = arith.constant 36 : index
    %219 = vector.load %arg11[%c0_220, %c36] : memref<24x255xf32, #tpu.memory_space<vmem>>, vector<24x183xf32>
    %220 = arith.truncf %219 : vector<24x183xf32> to vector<24x183xbf16>
    %cst_221 = arith.constant dense<0.000000e+00> : vector<16x183xf32>
    %221 = tpu.matmul %218, %220, %cst_221 {dimension_numbers = #tpu.dot_dimension_numbers<[1], [0], [0], [1], [0, 0, 1, 1], [], []>} : vector<16x24xbf16>, vector<24x183xbf16>, vector<16x183xf32> -> vector<16x183xf32>
    %222 = arith.addf %216, %221 : vector<16x183xf32>
    %c2_222 = arith.constant 2 : index
    %c3_223 = arith.constant 3 : index
    %c0_224 = arith.constant 0 : index
    %c0_225 = arith.constant 0 : index
    %223 = vector.load %arg7[%c2_222, %c3_223, %c0_224, %c0_225] : memref<5x5x16x24xbf16, #tpu.memory_space<vmem>>, vector<1x1x16x24xbf16>
    %224 = vector.shape_cast %223 : vector<1x1x16x24xbf16> to vector<16x24xbf16>
    %c0_226 = arith.constant 0 : index
    %c37 = arith.constant 37 : index
    %225 = vector.load %arg11[%c0_226, %c37] : memref<24x255xf32, #tpu.memory_space<vmem>>, vector<24x183xf32>
    %226 = arith.truncf %225 : vector<24x183xf32> to vector<24x183xbf16>
    %cst_227 = arith.constant dense<0.000000e+00> : vector<16x183xf32>
    %227 = tpu.matmul %224, %226, %cst_227 {dimension_numbers = #tpu.dot_dimension_numbers<[1], [0], [0], [1], [0, 0, 1, 1], [], []>} : vector<16x24xbf16>, vector<24x183xbf16>, vector<16x183xf32> -> vector<16x183xf32>
    %228 = arith.addf %222, %227 : vector<16x183xf32>
    %c2_228 = arith.constant 2 : index
    %c4_229 = arith.constant 4 : index
    %c0_230 = arith.constant 0 : index
    %c0_231 = arith.constant 0 : index
    %229 = vector.load %arg7[%c2_228, %c4_229, %c0_230, %c0_231] : memref<5x5x16x24xbf16, #tpu.memory_space<vmem>>, vector<1x1x16x24xbf16>
    %230 = vector.shape_cast %229 : vector<1x1x16x24xbf16> to vector<16x24xbf16>
    %c0_232 = arith.constant 0 : index
    %c38 = arith.constant 38 : index
    %231 = vector.load %arg11[%c0_232, %c38] : memref<24x255xf32, #tpu.memory_space<vmem>>, vector<24x183xf32>
    %232 = arith.truncf %231 : vector<24x183xf32> to vector<24x183xbf16>
    %cst_233 = arith.constant dense<0.000000e+00> : vector<16x183xf32>
    %233 = tpu.matmul %230, %232, %cst_233 {dimension_numbers = #tpu.dot_dimension_numbers<[1], [0], [0], [1], [0, 0, 1, 1], [], []>} : vector<16x24xbf16>, vector<24x183xbf16>, vector<16x183xf32> -> vector<16x183xf32>
    %234 = arith.addf %228, %233 : vector<16x183xf32>
    %c3_234 = arith.constant 3 : index
    %c0_235 = arith.constant 0 : index
    %c0_236 = arith.constant 0 : index
    %c0_237 = arith.constant 0 : index
    %235 = vector.load %arg7[%c3_234, %c0_235, %c0_236, %c0_237] : memref<5x5x16x24xbf16, #tpu.memory_space<vmem>>, vector<1x1x16x24xbf16>
    %236 = vector.shape_cast %235 : vector<1x1x16x24xbf16> to vector<16x24xbf16>
    %c0_238 = arith.constant 0 : index
    %c51 = arith.constant 51 : index
    %237 = vector.load %arg11[%c0_238, %c51] : memref<24x255xf32, #tpu.memory_space<vmem>>, vector<24x183xf32>
    %238 = arith.truncf %237 : vector<24x183xf32> to vector<24x183xbf16>
    %cst_239 = arith.constant dense<0.000000e+00> : vector<16x183xf32>
    %239 = tpu.matmul %236, %238, %cst_239 {dimension_numbers = #tpu.dot_dimension_numbers<[1], [0], [0], [1], [0, 0, 1, 1], [], []>} : vector<16x24xbf16>, vector<24x183xbf16>, vector<16x183xf32> -> vector<16x183xf32>
    %240 = arith.addf %234, %239 : vector<16x183xf32>
    %c3_240 = arith.constant 3 : index
    %c1_241 = arith.constant 1 : index
    %c0_242 = arith.constant 0 : index
    %c0_243 = arith.constant 0 : index
    %241 = vector.load %arg7[%c3_240, %c1_241, %c0_242, %c0_243] : memref<5x5x16x24xbf16, #tpu.memory_space<vmem>>, vector<1x1x16x24xbf16>
    %242 = vector.shape_cast %241 : vector<1x1x16x24xbf16> to vector<16x24xbf16>
    %c0_244 = arith.constant 0 : index
    %c52 = arith.constant 52 : index
    %243 = vector.load %arg11[%c0_244, %c52] : memref<24x255xf32, #tpu.memory_space<vmem>>, vector<24x183xf32>
    %244 = arith.truncf %243 : vector<24x183xf32> to vector<24x183xbf16>
    %cst_245 = arith.constant dense<0.000000e+00> : vector<16x183xf32>
    %245 = tpu.matmul %242, %244, %cst_245 {dimension_numbers = #tpu.dot_dimension_numbers<[1], [0], [0], [1], [0, 0, 1, 1], [], []>} : vector<16x24xbf16>, vector<24x183xbf16>, vector<16x183xf32> -> vector<16x183xf32>
    %246 = arith.addf %240, %245 : vector<16x183xf32>
    %c3_246 = arith.constant 3 : index
    %c2_247 = arith.constant 2 : index
    %c0_248 = arith.constant 0 : index
    %c0_249 = arith.constant 0 : index
    %247 = vector.load %arg7[%c3_246, %c2_247, %c0_248, %c0_249] : memref<5x5x16x24xbf16, #tpu.memory_space<vmem>>, vector<1x1x16x24xbf16>
    %248 = vector.shape_cast %247 : vector<1x1x16x24xbf16> to vector<16x24xbf16>
    %c0_250 = arith.constant 0 : index
    %c53 = arith.constant 53 : index
    %249 = vector.load %arg11[%c0_250, %c53] : memref<24x255xf32, #tpu.memory_space<vmem>>, vector<24x183xf32>
    %250 = arith.truncf %249 : vector<24x183xf32> to vector<24x183xbf16>
    %cst_251 = arith.constant dense<0.000000e+00> : vector<16x183xf32>
    %251 = tpu.matmul %248, %250, %cst_251 {dimension_numbers = #tpu.dot_dimension_numbers<[1], [0], [0], [1], [0, 0, 1, 1], [], []>} : vector<16x24xbf16>, vector<24x183xbf16>, vector<16x183xf32> -> vector<16x183xf32>
    %252 = arith.addf %246, %251 : vector<16x183xf32>
    %c3_252 = arith.constant 3 : index
    %c3_253 = arith.constant 3 : index
    %c0_254 = arith.constant 0 : index
    %c0_255 = arith.constant 0 : index
    %253 = vector.load %arg7[%c3_252, %c3_253, %c0_254, %c0_255] : memref<5x5x16x24xbf16, #tpu.memory_space<vmem>>, vector<1x1x16x24xbf16>
    %254 = vector.shape_cast %253 : vector<1x1x16x24xbf16> to vector<16x24xbf16>
    %c0_256 = arith.constant 0 : index
    %c54 = arith.constant 54 : index
    %255 = vector.load %arg11[%c0_256, %c54] : memref<24x255xf32, #tpu.memory_space<vmem>>, vector<24x183xf32>
    %256 = arith.truncf %255 : vector<24x183xf32> to vector<24x183xbf16>
    %cst_257 = arith.constant dense<0.000000e+00> : vector<16x183xf32>
    %257 = tpu.matmul %254, %256, %cst_257 {dimension_numbers = #tpu.dot_dimension_numbers<[1], [0], [0], [1], [0, 0, 1, 1], [], []>} : vector<16x24xbf16>, vector<24x183xbf16>, vector<16x183xf32> -> vector<16x183xf32>
    %258 = arith.addf %252, %257 : vector<16x183xf32>
    %c3_258 = arith.constant 3 : index
    %c4_259 = arith.constant 4 : index
    %c0_260 = arith.constant 0 : index
    %c0_261 = arith.constant 0 : index
    %259 = vector.load %arg7[%c3_258, %c4_259, %c0_260, %c0_261] : memref<5x5x16x24xbf16, #tpu.memory_space<vmem>>, vector<1x1x16x24xbf16>
    %260 = vector.shape_cast %259 : vector<1x1x16x24xbf16> to vector<16x24xbf16>
    %c0_262 = arith.constant 0 : index
    %c55 = arith.constant 55 : index
    %261 = vector.load %arg11[%c0_262, %c55] : memref<24x255xf32, #tpu.memory_space<vmem>>, vector<24x183xf32>
    %262 = arith.truncf %261 : vector<24x183xf32> to vector<24x183xbf16>
    %cst_263 = arith.constant dense<0.000000e+00> : vector<16x183xf32>
    %263 = tpu.matmul %260, %262, %cst_263 {dimension_numbers = #tpu.dot_dimension_numbers<[1], [0], [0], [1], [0, 0, 1, 1], [], []>} : vector<16x24xbf16>, vector<24x183xbf16>, vector<16x183xf32> -> vector<16x183xf32>
    %264 = arith.addf %258, %263 : vector<16x183xf32>
    %c4_264 = arith.constant 4 : index
    %c0_265 = arith.constant 0 : index
    %c0_266 = arith.constant 0 : index
    %c0_267 = arith.constant 0 : index
    %265 = vector.load %arg7[%c4_264, %c0_265, %c0_266, %c0_267] : memref<5x5x16x24xbf16, #tpu.memory_space<vmem>>, vector<1x1x16x24xbf16>
    %266 = vector.shape_cast %265 : vector<1x1x16x24xbf16> to vector<16x24xbf16>
    %c0_268 = arith.constant 0 : index
    %c68_269 = arith.constant 68 : index
    %267 = vector.load %arg11[%c0_268, %c68_269] : memref<24x255xf32, #tpu.memory_space<vmem>>, vector<24x183xf32>
    %268 = arith.truncf %267 : vector<24x183xf32> to vector<24x183xbf16>
    %cst_270 = arith.constant dense<0.000000e+00> : vector<16x183xf32>
    %269 = tpu.matmul %266, %268, %cst_270 {dimension_numbers = #tpu.dot_dimension_numbers<[1], [0], [0], [1], [0, 0, 1, 1], [], []>} : vector<16x24xbf16>, vector<24x183xbf16>, vector<16x183xf32> -> vector<16x183xf32>
    %270 = arith.addf %264, %269 : vector<16x183xf32>
    %c4_271 = arith.constant 4 : index
    %c1_272 = arith.constant 1 : index
    %c0_273 = arith.constant 0 : index
    %c0_274 = arith.constant 0 : index
    %271 = vector.load %arg7[%c4_271, %c1_272, %c0_273, %c0_274] : memref<5x5x16x24xbf16, #tpu.memory_space<vmem>>, vector<1x1x16x24xbf16>
    %272 = vector.shape_cast %271 : vector<1x1x16x24xbf16> to vector<16x24xbf16>
    %c0_275 = arith.constant 0 : index
    %c69 = arith.constant 69 : index
    %273 = vector.load %arg11[%c0_275, %c69] : memref<24x255xf32, #tpu.memory_space<vmem>>, vector<24x183xf32>
    %274 = arith.truncf %273 : vector<24x183xf32> to vector<24x183xbf16>
    %cst_276 = arith.constant dense<0.000000e+00> : vector<16x183xf32>
    %275 = tpu.matmul %272, %274, %cst_276 {dimension_numbers = #tpu.dot_dimension_numbers<[1], [0], [0], [1], [0, 0, 1, 1], [], []>} : vector<16x24xbf16>, vector<24x183xbf16>, vector<16x183xf32> -> vector<16x183xf32>
    %276 = arith.addf %270, %275 : vector<16x183xf32>
    %c4_277 = arith.constant 4 : index
    %c2_278 = arith.constant 2 : index
    %c0_279 = arith.constant 0 : index
    %c0_280 = arith.constant 0 : index
    %277 = vector.load %arg7[%c4_277, %c2_278, %c0_279, %c0_280] : memref<5x5x16x24xbf16, #tpu.memory_space<vmem>>, vector<1x1x16x24xbf16>
    %278 = vector.shape_cast %277 : vector<1x1x16x24xbf16> to vector<16x24xbf16>
    %c0_281 = arith.constant 0 : index
    %c70 = arith.constant 70 : index
    %279 = vector.load %arg11[%c0_281, %c70] : memref<24x255xf32, #tpu.memory_space<vmem>>, vector<24x183xf32>
    %280 = arith.truncf %279 : vector<24x183xf32> to vector<24x183xbf16>
    %cst_282 = arith.constant dense<0.000000e+00> : vector<16x183xf32>
    %281 = tpu.matmul %278, %280, %cst_282 {dimension_numbers = #tpu.dot_dimension_numbers<[1], [0], [0], [1], [0, 0, 1, 1], [], []>} : vector<16x24xbf16>, vector<24x183xbf16>, vector<16x183xf32> -> vector<16x183xf32>
    %282 = arith.addf %276, %281 : vector<16x183xf32>
    %c4_283 = arith.constant 4 : index
    %c3_284 = arith.constant 3 : index
    %c0_285 = arith.constant 0 : index
    %c0_286 = arith.constant 0 : index
    %283 = vector.load %arg7[%c4_283, %c3_284, %c0_285, %c0_286] : memref<5x5x16x24xbf16, #tpu.memory_space<vmem>>, vector<1x1x16x24xbf16>
    %284 = vector.shape_cast %283 : vector<1x1x16x24xbf16> to vector<16x24xbf16>
    %c0_287 = arith.constant 0 : index
    %c71 = arith.constant 71 : index
    %285 = vector.load %arg11[%c0_287, %c71] : memref<24x255xf32, #tpu.memory_space<vmem>>, vector<24x183xf32>
    %286 = arith.truncf %285 : vector<24x183xf32> to vector<24x183xbf16>
    %cst_288 = arith.constant dense<0.000000e+00> : vector<16x183xf32>
    %287 = tpu.matmul %284, %286, %cst_288 {dimension_numbers = #tpu.dot_dimension_numbers<[1], [0], [0], [1], [0, 0, 1, 1], [], []>} : vector<16x24xbf16>, vector<24x183xbf16>, vector<16x183xf32> -> vector<16x183xf32>
    %288 = arith.addf %282, %287 : vector<16x183xf32>
    %c4_289 = arith.constant 4 : index
    %c4_290 = arith.constant 4 : index
    %c0_291 = arith.constant 0 : index
    %c0_292 = arith.constant 0 : index
    %289 = vector.load %arg7[%c4_289, %c4_290, %c0_291, %c0_292] : memref<5x5x16x24xbf16, #tpu.memory_space<vmem>>, vector<1x1x16x24xbf16>
    %290 = vector.shape_cast %289 : vector<1x1x16x24xbf16> to vector<16x24xbf16>
    %c0_293 = arith.constant 0 : index
    %c72_294 = arith.constant 72 : index
    %291 = vector.load %arg11[%c0_293, %c72_294] : memref<24x255xf32, #tpu.memory_space<vmem>>, vector<24x183xf32>
    %292 = arith.truncf %291 : vector<24x183xf32> to vector<24x183xbf16>
    %cst_295 = arith.constant dense<0.000000e+00> : vector<16x183xf32>
    %293 = tpu.matmul %290, %292, %cst_295 {dimension_numbers = #tpu.dot_dimension_numbers<[1], [0], [0], [1], [0, 0, 1, 1], [], []>} : vector<16x24xbf16>, vector<24x183xbf16>, vector<16x183xf32> -> vector<16x183xf32>
    %294 = arith.addf %288, %293 : vector<16x183xf32>
    %295 = vector.broadcast %145 : vector<16x1xf32> to vector<16x183xf32>
    %296 = arith.addf %294, %295 : vector<16x183xf32>
    %297 = vector.extract_strided_slice %296 {offsets = [0, 0], sizes = [16, 13], strides = [1, 1]} : vector<16x183xf32> to vector<16x13xf32>
    %c0_296 = arith.constant 0 : index
    %c0_297 = arith.constant 0 : index
    %c0_298 = arith.constant 0 : index
    %298 = vector.load %arg9[%c0_296, %c0_297, %c0_298] : memref<1x16x143xf32, #tpu.memory_space<vmem>>, vector<1x16x13xf32>
    %299 = vector.shape_cast %298 : vector<1x16x13xf32> to vector<16x13xf32>
    %300 = vector.shape_cast %297 : vector<16x13xf32> to vector<1x16x13xf32>
    tpu.vector_store %arg9[%c0_296, %c0_297, %c0_298], %300 {strides = array<i32>} : memref<1x16x143xf32, #tpu.memory_space<vmem>>, vector<1x16x13xf32>,
    %301 = vector.extract_strided_slice %296 {offsets = [0, 17], sizes = [16, 13], strides = [1, 1]} : vector<16x183xf32> to vector<16x13xf32>
    %c0_299 = arith.constant 0 : index
    %c0_300 = arith.constant 0 : index
    %c13_301 = arith.constant 13 : index
    %302 = vector.load %arg9[%c0_299, %c0_300, %c13_301] : memref<1x16x143xf32, #tpu.memory_space<vmem>>, vector<1x16x13xf32>
    %303 = vector.shape_cast %302 : vector<1x16x13xf32> to vector<16x13xf32>
    %304 = vector.shape_cast %301 : vector<16x13xf32> to vector<1x16x13xf32>
    tpu.vector_store %arg9[%c0_299, %c0_300, %c13_301], %304 {strides = array<i32>} : memref<1x16x143xf32, #tpu.memory_space<vmem>>, vector<1x16x13xf32>,
    %305 = vector.extract_strided_slice %296 {offsets = [0, 34], sizes = [16, 13], strides = [1, 1]} : vector<16x183xf32> to vector<16x13xf32>
    %c0_302 = arith.constant 0 : index
    %c0_303 = arith.constant 0 : index
    %c26 = arith.constant 26 : index
    %306 = vector.load %arg9[%c0_302, %c0_303, %c26] : memref<1x16x143xf32, #tpu.memory_space<vmem>>, vector<1x16x13xf32>
    %307 = vector.shape_cast %306 : vector<1x16x13xf32> to vector<16x13xf32>
    %308 = vector.shape_cast %305 : vector<16x13xf32> to vector<1x16x13xf32>
    tpu.vector_store %arg9[%c0_302, %c0_303, %c26], %308 {strides = array<i32>} : memref<1x16x143xf32, #tpu.memory_space<vmem>>, vector<1x16x13xf32>,
    %309 = vector.extract_strided_slice %296 {offsets = [0, 51], sizes = [16, 13], strides = [1, 1]} : vector<16x183xf32> to vector<16x13xf32>
    %c0_304 = arith.constant 0 : index
    %c0_305 = arith.constant 0 : index
    %c39 = arith.constant 39 : index
    %310 = vector.load %arg9[%c0_304, %c0_305, %c39] : memref<1x16x143xf32, #tpu.memory_space<vmem>>, vector<1x16x13xf32>
    %311 = vector.shape_cast %310 : vector<1x16x13xf32> to vector<16x13xf32>
    %312 = vector.shape_cast %309 : vector<16x13xf32> to vector<1x16x13xf32>
    tpu.vector_store %arg9[%c0_304, %c0_305, %c39], %312 {strides = array<i32>} : memref<1x16x143xf32, #tpu.memory_space<vmem>>, vector<1x16x13xf32>,
    %313 = vector.extract_strided_slice %296 {offsets = [0, 68], sizes = [16, 13], strides = [1, 1]} : vector<16x183xf32> to vector<16x13xf32>
    %c0_306 = arith.constant 0 : index
    %c0_307 = arith.constant 0 : index
    %c52_308 = arith.constant 52 : index
    %314 = vector.load %arg9[%c0_306, %c0_307, %c52_308] : memref<1x16x143xf32, #tpu.memory_space<vmem>>, vector<1x16x13xf32>
    %315 = vector.shape_cast %314 : vector<1x16x13xf32> to vector<16x13xf32>
    %316 = vector.shape_cast %313 : vector<16x13xf32> to vector<1x16x13xf32>
    tpu.vector_store %arg9[%c0_306, %c0_307, %c52_308], %316 {strides = array<i32>} : memref<1x16x143xf32, #tpu.memory_space<vmem>>, vector<1x16x13xf32>,
    %317 = vector.extract_strided_slice %296 {offsets = [0, 85], sizes = [16, 13], strides = [1, 1]} : vector<16x183xf32> to vector<16x13xf32>
    %c0_309 = arith.constant 0 : index
    %c0_310 = arith.constant 0 : index
    %c65 = arith.constant 65 : index
    %318 = vector.load %arg9[%c0_309, %c0_310, %c65] : memref<1x16x143xf32, #tpu.memory_space<vmem>>, vector<1x16x13xf32>
    %319 = vector.shape_cast %318 : vector<1x16x13xf32> to vector<16x13xf32>
    %320 = vector.shape_cast %317 : vector<16x13xf32> to vector<1x16x13xf32>
    tpu.vector_store %arg9[%c0_309, %c0_310, %c65], %320 {strides = array<i32>} : memref<1x16x143xf32, #tpu.memory_space<vmem>>, vector<1x16x13xf32>,
    %321 = vector.extract_strided_slice %296 {offsets = [0, 102], sizes = [16, 13], strides = [1, 1]} : vector<16x183xf32> to vector<16x13xf32>
    %c0_311 = arith.constant 0 : index
    %c0_312 = arith.constant 0 : index
    %c78 = arith.constant 78 : index
    %322 = vector.load %arg9[%c0_311, %c0_312, %c78] : memref<1x16x143xf32, #tpu.memory_space<vmem>>, vector<1x16x13xf32>
    %323 = vector.shape_cast %322 : vector<1x16x13xf32> to vector<16x13xf32>
    %324 = vector.shape_cast %321 : vector<16x13xf32> to vector<1x16x13xf32>
    tpu.vector_store %arg9[%c0_311, %c0_312, %c78], %324 {strides = array<i32>} : memref<1x16x143xf32, #tpu.memory_space<vmem>>, vector<1x16x13xf32>,
    %325 = vector.extract_strided_slice %296 {offsets = [0, 119], sizes = [16, 13], strides = [1, 1]} : vector<16x183xf32> to vector<16x13xf32>
    %c0_313 = arith.constant 0 : index
    %c0_314 = arith.constant 0 : index
    %c91 = arith.constant 91 : index
    %326 = vector.load %arg9[%c0_313, %c0_314, %c91] : memref<1x16x143xf32, #tpu.memory_space<vmem>>, vector<1x16x13xf32>
    %327 = vector.shape_cast %326 : vector<1x16x13xf32> to vector<16x13xf32>
    %328 = vector.shape_cast %325 : vector<16x13xf32> to vector<1x16x13xf32>
    tpu.vector_store %arg9[%c0_313, %c0_314, %c91], %328 {strides = array<i32>} : memref<1x16x143xf32, #tpu.memory_space<vmem>>, vector<1x16x13xf32>,
    %329 = vector.extract_strided_slice %296 {offsets = [0, 136], sizes = [16, 13], strides = [1, 1]} : vector<16x183xf32> to vector<16x13xf32>
    %c0_315 = arith.constant 0 : index
    %c0_316 = arith.constant 0 : index
    %c104 = arith.constant 104 : index
    %330 = vector.load %arg9[%c0_315, %c0_316, %c104] : memref<1x16x143xf32, #tpu.memory_space<vmem>>, vector<1x16x13xf32>
    %331 = vector.shape_cast %330 : vector<1x16x13xf32> to vector<16x13xf32>
    %332 = vector.shape_cast %329 : vector<16x13xf32> to vector<1x16x13xf32>
    tpu.vector_store %arg9[%c0_315, %c0_316, %c104], %332 {strides = array<i32>} : memref<1x16x143xf32, #tpu.memory_space<vmem>>, vector<1x16x13xf32>,
    %333 = vector.extract_strided_slice %296 {offsets = [0, 153], sizes = [16, 13], strides = [1, 1]} : vector<16x183xf32> to vector<16x13xf32>
    %c0_317 = arith.constant 0 : index
    %c0_318 = arith.constant 0 : index
    %c117 = arith.constant 117 : index
    %334 = vector.load %arg9[%c0_317, %c0_318, %c117] : memref<1x16x143xf32, #tpu.memory_space<vmem>>, vector<1x16x13xf32>
    %335 = vector.shape_cast %334 : vector<1x16x13xf32> to vector<16x13xf32>
    %336 = vector.shape_cast %333 : vector<16x13xf32> to vector<1x16x13xf32>
    tpu.vector_store %arg9[%c0_317, %c0_318, %c117], %336 {strides = array<i32>} : memref<1x16x143xf32, #tpu.memory_space<vmem>>, vector<1x16x13xf32>,
    %337 = vector.extract_strided_slice %296 {offsets = [0, 170], sizes = [16, 13], strides = [1, 1]} : vector<16x183xf32> to vector<16x13xf32>
    %c0_319 = arith.constant 0 : index
    %c0_320 = arith.constant 0 : index
    %c130 = arith.constant 130 : index
    %338 = vector.load %arg9[%c0_319, %c0_320, %c130] : memref<1x16x143xf32, #tpu.memory_space<vmem>>, vector<1x16x13xf32>
    %339 = vector.shape_cast %338 : vector<1x16x13xf32> to vector<16x13xf32>
    %340 = vector.shape_cast %337 : vector<16x13xf32> to vector<1x16x13xf32>
    tpu.vector_store %arg9[%c0_319, %c0_320, %c130], %340 {strides = array<i32>} : memref<1x16x143xf32, #tpu.memory_space<vmem>>, vector<1x16x13xf32>,
    return
  }
  func.func @transform_0(%arg0: i32) -> (i32, i32, i32) {
    %c0_i32 = arith.constant 0 : i32
    %c0_i32_0 = arith.constant 0 : i32
    %c0_i32_1 = arith.constant 0 : i32
    return %arg0, %c0_i32, %c0_i32_0 : i32, i32, i32
  }
  func.func @transform_1(%arg0: i32) -> (i32, i32, i32, i32) {
    %c0_i32 = arith.constant 0 : i32
    %c0_i32_0 = arith.constant 0 : i32
    %c0_i32_1 = arith.constant 0 : i32
    %c0_i32_2 = arith.constant 0 : i32
    %c0_i32_3 = arith.constant 0 : i32
    return %c0_i32, %c0_i32_0, %c0_i32_1, %c0_i32_2 : i32, i32, i32, i32
  }
  func.func @transform_2(%arg0: i32) -> (i32, i32) {
    %c0_i32 = arith.constant 0 : i32
    %c0_i32_0 = arith.constant 0 : i32
    %c0_i32_1 = arith.constant 0 : i32
    return %c0_i32, %c0_i32_0 : i32, i32
  }
  func.func @transform_3(%arg0: i32) -> (i32, i32) {
    %c0_i32 = arith.constant 0 : i32
    %c0_i32_0 = arith.constant 0 : i32
    %c0_i32_1 = arith.constant 0 : i32
    return %c0_i32, %c0_i32_0 : i32, i32
  }
  func.func @transform_4(%arg0: i32) -> (i32, i32, i32, i32) {
    %c0_i32 = arith.constant 0 : i32
    %c0_i32_0 = arith.constant 0 : i32
    %c0_i32_1 = arith.constant 0 : i32
    %c0_i32_2 = arith.constant 0 : i32
    %c0_i32_3 = arith.constant 0 : i32
    return %c0_i32, %c0_i32_0, %c0_i32_1, %c0_i32_2 : i32, i32, i32, i32
  }
  func.func @transform_5(%arg0: i32) -> (i32, i32) {
    %c0_i32 = arith.constant 0 : i32
    %c0_i32_0 = arith.constant 0 : i32
    %c0_i32_1 = arith.constant 0 : i32
    return %c0_i32, %c0_i32_0 : i32, i32
  }
  func.func @transform_6(%arg0: i32) -> (i32, i32, i32, i32) {
    %c0_i32 = arith.constant 0 : i32
    %c0_i32_0 = arith.constant 0 : i32
    %c0_i32_1 = arith.constant 0 : i32
    %c0_i32_2 = arith.constant 0 : i32
    %c0_i32_3 = arith.constant 0 : i32
    return %c0_i32, %c0_i32_0, %c0_i32_1, %c0_i32_2 : i32, i32, i32, i32
  }
  func.func @transform_7(%arg0: i32) -> (i32, i32) {
    %c0_i32 = arith.constant 0 : i32
    %c0_i32_0 = arith.constant 0 : i32
    %c0_i32_1 = arith.constant 0 : i32
    return %c0_i32, %c0_i32_0 : i32, i32
  }
  func.func @transform_8(%arg0: i32) -> (i32, i32, i32) {
    %c0_i32 = arith.constant 0 : i32
    %c0_i32_0 = arith.constant 0 : i32
    %c0_i32_1 = arith.constant 0 : i32
    return %arg0, %c0_i32, %c0_i32_0 : i32, i32, i32
  }
}

</mosaic_0001>

<bundles_post_ra>
// kernel: tfblock_v4_forward.1
= control target key start
LH: loop header
LB: loop body
LE: loop exit
PB: predicated region body
PF: predicated region fallthrough
CT: control target
= control target key end

     0   :  { %s4614_s27 = smov 0   ;;  %s5585_s0 = inlined_call_operand.vmem [shape: f32[2,16,64], index: 0, kind: input, shape index: {}]   ;;  %s5586_s1 = inlined_call_operand.vmem [shape: bf16[4,2,32,16], index: 1, kind: input, shape index: {}]   ;;  %s5587_s2 = inlined_call_operand.vmem [shape: f32[32,1], index: 2, kind: input, shape index: {}]   ;;  %s5588_s3 = inlined_call_operand.vmem [shape: f32[32,1], index: 3, kind: input, shape index: {}]   ;;  %s5589_s4 = inlined_call_operand.vmem [shape: bf16[3,3,24,32], index: 4, kind: input, shape index: {}]   ;;  %s5590_s5 = inlined_call_operand.vmem [shape: f32[24,1], index: 5, kind: input, shape index: {}]   ;;  %s5591_s6 = inlined_call_operand.vmem [shape: bf16[5,5,16,24], index: 6, kind: input, shape index: {}]   ;;  %s5592_s7 = inlined_call_operand.vmem [shape: f32[16,1], index: 7, kind: input, shape index: {}]   ;;  %s5593_s8 = inlined_call_operand.vmem [shape: f32[2,16,143], index: 8, kind: output, shape index: {}]  }
   0x1 LB: > { %s3960_s28 = sadd.s32 4294967295, %s4519_s27   ;;  %p3964_p0 = scmp.ge.s32.totalorder %s4519_s27, 1  ;;  %s4519_s27 = sphi %s4614_s27, %s18_s27  }
   0x2   : > { %p262_p1 = scmp.lt.s32.totalorder %s4519_s27, 3 }
   0x4   : > { %p263_p2 = pnand %p3964_p0, %p262_p1 }
   0x6   : > { %266 = sbr.rel (%p263_p2) target bundleno = 1675 (0x68b), region = 52 }
   0xb   : > { %p296_p3 = scmp.lt.s32.totalorder %s3960_s28, 1  ;;  %vm353_vm0 = vcmask 130048   ;;  %v4454_v0 = vld [vmem:[%s5586_s1] sm:$0xff]   ;;  %v4456_v1 = vld [vmem:[%s5586_s1 + $0x10] sm:$0xff]   ;;  %s4521_s15 = smov 127   ;;  %v4455_v5 = vld [vmem:[%s5586_s1 + $0x8] sm:$0xff]  }
   0xc   : > { %4284 = vmatprep.mubr.msk.bf16.mxu1 %vm353_vm0, %v4454_v0  ;;  %4278 = vmatprep.mubr.msk.bf16.mxu0 %vm353_vm0, %v4456_v1  ;;  %s4522_s16 = smov 119   ;;  %v4458_v6 = vld [vmem:[%s5586_s1 + $0x30] sm:$0xff]   ;;  %s5602_s21 = smov 120   ;;  %v4528_v8 = vmov 0   ;;  %v322_v9 = vld [vmem:[%s5587_s2 + $0x18] sm:$0xff]  ;;  %v319_v11 = vld [vmem:[%s5587_s2] sm:$0xff] }
   0xd   : > { %s5626_s28 = smov (!%p296_p3, %s3960_s28), 1  ;;  %s5598_s22 = smov 112   ;;  %v321_v7 = vld [vmem:[%s5587_s2 + $0x10] sm:$0xff]  ;;  %4452 = vset.pattern.permute.xlu1 %v4528_v8  ;;  %4453 = vset.pattern.permute.xlu0 %v4528_v8  ;;  %v326_v12 = vld [vmem:[%s5588_s3 + $0x18] sm:$0xff]  ;;  %v323_v13 = vld [vmem:[%s5588_s3] sm:$0xff]  ;;  %vm307_vm1 = vcmask 809984  }
   0xe   : > { %s4214_s11 = sshll.u32 %s5626_s28, 4  ;;  %s4525_s23 = smov 111   ;;  %v325_v10 = vld [vmem:[%s5588_s3 + $0x10] sm:$0xff]  ;;  %v320_v14 = vld [vmem:[%s5587_s2 + $0x8] sm:$0xff]  ;;  %v4457_v18 = vld [vmem:[%s5586_s1 + $0x18] sm:$0xff]   ;;  %v4529_v35 = vmov 0.0  }
   0xf   : > { %s300_s14 = scalar_lea.vmem %s5585_s0, %s4214_s11  ;;  %s5596_s24 = smov 104   ;;  %v324_v15 = vld [vmem:[%s5588_s3 + $0x8] sm:$0xff]  ;;  %v4459_v19 = vld [vmem:[%s5586_s1 + $0x38] sm:$0xff]   ;;  %v4460_v20 = vld [vmem:[%s5586_s1 + $0x20] sm:$0xff]   ;;  %310 = vst.msk [vmem:[#allocation2 + $0x10] sm:$0xff] %vm307_vm1, %v4529_v35  ;;  %vm1000_vm2 = vcmask 253120  }
  0x10   : > { %v331_v2 = vld [vmem:[%s300_s14] sm:$0xff]  ;;  %v332_v3 = vld [vmem:[%s300_s14 + $0x8] sm:$0xff]  ;;  %s4527_s25 = smov 103   ;;  %v4462_v23 = vld [vmem:[%s5586_s1 + $0x50] sm:$0xff]   ;;  %308 = vst.msk [vmem:[#allocation2] sm:$0xff] %vm307_vm1, %v4529_v35  ;;  %s4530_s17 = smov 24  }
  0x11   : > { %v333_v4 = vpack.c.bf16 %v332_v3, %v331_v2  ;;  %v4461_v25 = vld [vmem:[%s5586_s1 + $0x28] sm:$0xff]   ;;  %v4463_v26 = vld [vmem:[%s5586_s1 + $0x58] sm:$0xff]   ;;  %v4464_v27 = vld [vmem:[%s5586_s1 + $0x40] sm:$0xff]   ;;  %309 = vst.msk [vmem:[#allocation2 + $0x8] sm:$0xff] %vm307_vm1, %v4529_v35  ;;  %s4531_s18 = smov 27   ;;  %s4532_s19 = smov 30  }
  0x12   : > { %v4466_v30 = vld [vmem:[%s5586_s1 + $0x70] sm:$0xff]   ;;  %v4465_v31 = vld [vmem:[%s5586_s1 + $0x48] sm:$0xff]   ;;  %v4467_v32 = vld [vmem:[%s5586_s1 + $0x78] sm:$0xff]   ;;  %311 = vst.msk [vmem:[#allocation2 + $0x18] sm:$0xff] %vm307_vm1, %v4529_v35  ;;  %s4533_s20 = smov 33   ;;  %vm1017_vm3 = vcmask 343320  }
  0x13   : > { %350 = vrot.lane.b32.xlu0 %v333_v4, %s4521_s15  ;;  %566 = vrot.lane.b32.xlu1 %v333_v4, %s4522_s16  ;;  %v4468_v33 = vld [vmem:[%s5586_s1 + $0x60] sm:$0xff]   ;;  %v4469_v34 = vld [vmem:[%s5586_s1 + $0x68] sm:$0xff]   ;;  %312 = vst [vmem:[#allocation3] sm:$0xff] %v4529_v35  ;;  %315 = vst [vmem:[#allocation3 + $0x10] sm:$0xff] %v4529_v35  ;;  %vm1034_vm4 = vcmask 433520   ;;  %vm1051_vm5 = vcmask 523720  }
  0x14   : > { %4282 = vmatprep.subr.bf16.mxu1 %v333_v4  ;;  %317 = vst [vmem:[#allocation3 + $0x20] sm:$0xff] %v4529_v35  ;;  %vm1068_vm6 = vcmask 613920   ;;  %vm1105_vm7 = vcmask 261120   ;;  %s4535_s30 = smov 126   ;;  %s4536_s9 = smov 117   ;;  %vm313_vm8 = vcmask 1039360  }
  0x15   : > { %4283 = vmatpush3.bf16.msra.mxu1 %v333_v4  ;;  %318 = vst.msk [vmem:[#allocation3 + $0x28] sm:$0xff] %vm313_vm8, %v4529_v35  ;;  %314 = vst.msk [vmem:[#allocation3 + $0x8] sm:$0xff] %vm313_vm8, %v4529_v35  ;;  %s4541_s14 = smov 90   ;;  %s4542_s16 = smov 72   ;;  %vm1777_vm9 = vcmask 663104   ;;  %vm1818_vm10 = vcmask 31744  }
  0x16   : > { %316 = vst.msk [vmem:[#allocation3 + $0x18] sm:$0xff] %vm313_vm8, %v4529_v35  ;;  %s4547_s26 = smov 108   ;;  %vm1790_vm11 = vcmask 802504   ;;  %vm1833_vm12 = vcmask 171104   ;;  %vm1803_vm13 = vcmask 941904   ;;  %vm1846_vm14 = vcmask 310504  }
  0x17   : > { %489 = vrot.lane.b32.xlu0 %v333_v4, %s5602_s21  ;;  %643 = vrot.lane.b32.xlu1 %v333_v4, %s5598_s22  ;;  %vm1816_vm15 = vcmask 1048536   ;;  %vm1906_vm1 = vcmask 1043456   ;;  %s4548_s29 = smov 125   ;;  %s4550_s10 = smov 110  }
  0x18   : > { %4285 = vmatmul.mubr.msk.bf16.vlgmr.msra.gmra.mxu1 %vm353_vm0, %v4455_v5  ;;  %s4551_s11 = smov 109   ;;  %s4556_s12 = smov 91  }
  0x19   : > { %4296 = vmatprep.mubr.msk.bf16.mxu1 %vm353_vm0, %v4458_v6  ;;  %s4557_s13 = smov 77   ;;  %s5606_s22 = smov 74  }
  0x1a   : > { %s4562_s21 = smov 60  }
  0x1b   : > { %720 = vrot.lane.b32.xlu0 %v333_v4, %s4525_s23  ;;  %797 = vrot.lane.b32.xlu1 %v333_v4, %s5596_s24 }
  0x1f   : > { %874 = vrot.lane.b32.xlu0 %v333_v4, %s4527_s25  ;;  %948 = vperm.xlu1 %4452, %v321_v7   ;;  %s4534_s25 = smov 36  }
  0x23   : > { %953 = vperm.xlu0 %4453, %v322_v9   ;;  %972 = vperm.xlu1 %4452, %v325_v10  }
  0x27   : > { %938 = vperm.xlu0 %4453, %v319_v11   ;;  %977 = vperm.xlu1 %4452, %v326_v12  }
  0x2b   : > { %962 = vperm.xlu0 %4453, %v323_v13   ;;  %943 = vperm.xlu1 %4452, %v320_v14  }
  0x2f   : > { %967 = vperm.xlu1 %4452, %v324_v15  }
  0x85   : > { %v351_v16 = vpop.permute.xlu0 %350  ;;  %v567_v17 = vpop.permute.xlu1 %566 }
  0x86   : > { %4276 = vmatprep.subr.bf16.mxu0 %v351_v16  ;;  %4294 = vmatprep.subr.bf16.mxu1 %v567_v17 }
  0x87   : > { %4277 = vmatpush3.bf16.msra.mxu0 %v351_v16  ;;  %4295 = vmatpush3.bf16.msra.mxu1 %v567_v17 }
  0x89   : > { %v490_v21 = vpop.permute.xlu0 %489  ;;  %v644_v22 = vpop.permute.xlu1 %643 }
  0x8a   : > { %4279 = vmatmul.mubr.msk.bf16.vlgmr.msra.gmra.mxu0 %vm353_vm0, %v4457_v18  ;;  %4288 = vmatprep.subr.bf16.mxu0 %v490_v21 }
  0x8b   : > { %4289 = vmatpush3.bf16.msra.mxu0 %v490_v21  ;;  %4297 = vmatmul.mubr.msk.bf16.vlgmr.msra.gmra.mxu1 %vm353_vm0, %v4459_v19 }
  0x8c   : > { %4290 = vmatprep.mubr.msk.bf16.mxu0 %vm353_vm0, %v4460_v20  ;;  %4300 = vmatprep.subr.bf16.mxu0 %v644_v22 }
  0x8d   : > { %v721_v24 = vpop.permute.xlu0 %720  ;;  %4308 = vmatprep.mubr.msk.bf16.mxu1 %vm353_vm0, %v4462_v23  ;;  %v798_v28 = vpop.permute.xlu1 %797 }
  0x8e   : > { %4306 = vmatprep.subr.bf16.mxu1 %v721_v24 }
  0x8f   : > { %4307 = vmatpush3.bf16.msra.mxu1 %v721_v24 }
  0x91   : > { %v875_v29 = vpop.permute.xlu0 %874 }
  0x92   : > { %4291 = vmatmul.mubr.msk.bf16.vlgmr.msra.gmra.mxu0 %vm353_vm0, %v4461_v25  ;;  %4318 = vmatprep.subr.bf16.mxu1 %v875_v29 }
  0x93   : > { %4301 = vmatpush3.bf16.msra.mxu0 %v644_v22  ;;  %4309 = vmatmul.mubr.msk.bf16.vlgmr.msra.gmra.mxu1 %vm353_vm0, %v4463_v26 }
  0x94   : > { %4302 = vmatprep.mubr.msk.bf16.mxu0 %vm353_vm0, %v4464_v27  ;;  %4312 = vmatprep.subr.bf16.mxu0 %v798_v28 }
  0x95   : > { %4319 = vmatpush3.bf16.msra.mxu1 %v875_v29  ;;  %4320 = vmatprep.mubr.msk.bf16.mxu1 %vm353_vm0, %v4466_v30 }
  0x9a   : > { %4303 = vmatmul.mubr.msk.bf16.vlgmr.msra.gmra.mxu0 %vm353_vm0, %v4465_v31  ;;  %v949_v1 = vpop.permute.xlu1 %948 }
  0x9b   : > { %4313 = vmatpush3.bf16.msra.mxu0 %v798_v28  ;;  %4321 = vmatmul.mubr.msk.bf16.vlgmr.msra.gmra.mxu1 %vm353_vm0, %v4467_v32 }
  0x9c   : > { %4314 = vmatprep.mubr.msk.bf16.mxu0 %vm353_vm0, %v4468_v33 }
  0x9e   : > { %v973_v16 = vpop.permute.xlu1 %972  ;;  %v954_v26 = vpop.permute.xlu0 %953 }
  0xa2   : > { %4315 = vmatmul.mubr.msk.bf16.vlgmr.msra.gmra.mxu0 %vm353_vm0, %v4469_v34  ;;  %v978_v29 = vpop.permute.xlu1 %977  ;;  %vm1859_vm0 = vcmask 449904  }
  0xd8   : > { %v4286_v36 = vpop.f32.mrf.mxu1 }
  0xda   : > { %v459_v37 = vpop.f32.mrf.mxu1 }
  0xdc   : > { %v4287_v38 = vpop.f32.mrf.mxu1 }
  0xde   : > { %v462_v39 = vpop.f32.mrf.mxu1 }
 0x14a   : > { %v4280_v40 = vpop.f32.mrf.mxu0 }
 0x14b   : > { %v4298_v41 = vpop.f32.mrf.mxu1  ;;  %v468_v51 = vadd.f32 %v4286_v36, %v4280_v40 }
 0x14c   : > { %v394_v42 = vpop.f32.mrf.mxu0 }
 0x14d   : > { %v609_v43 = vpop.f32.mrf.mxu1  ;;  %v460_v9 = vadd.f32 %v459_v37, %v394_v42 }
 0x14e   : > { %v4281_v44 = vpop.f32.mrf.mxu0 }
 0x14f   : > { %v4299_v45 = vpop.f32.mrf.mxu1  ;;  %v471_v57 = vadd.f32 %v4287_v38, %v4281_v44  ;;  %v939_v38 = vpop.permute.xlu0 %938 }
 0x150   : > { %v397_v46 = vpop.f32.mrf.mxu0  ;;  %v944_v44 = vpop.permute.xlu1 %943 }
 0x151   : > { %v612_v47 = vpop.f32.mrf.mxu1  ;;  %v463_v18 = vadd.f32 %v462_v39, %v397_v46 }
 0x152   : > { %v4292_v48 = vpop.f32.mrf.mxu0 }
 0x153   : > { %v4310_v49 = vpop.f32.mrf.mxu1  ;;  %v549_v54 = vadd.f32 %v4292_v48, %v468_v51 }
 0x154   : > { %v532_v50 = vpop.f32.mrf.mxu0  ;;  %v968_v48 = vpop.permute.xlu1 %967 }
 0x155   : > { %v763_v52 = vpop.f32.mrf.mxu1  ;;  %v626_v60 = vadd.f32 %v4298_v41, %v549_v54  ;;  %v547_v13 = vadd.f32 %v532_v50, %v460_v9 }
 0x156   : > { %v4293_v53 = vpop.f32.mrf.mxu0 }
 0x157   : > { %v4311_v56 = vpop.f32.mrf.mxu1  ;;  %v550_v59 = vadd.f32 %v4293_v53, %v471_v57  ;;  %v624_v23 = vadd.f32 %v609_v43, %v547_v13 }
 0x158   : > { %v535_v55 = vpop.f32.mrf.mxu0 }
 0x159   : > { %v766_v62 = vpop.f32.mrf.mxu1  ;;  %v627_v2 = vadd.f32 %v4299_v45, %v550_v59  ;;  %v548_v22 = vadd.f32 %v535_v55, %v463_v18  ;;  %v963_v45 = vpop.permute.xlu0 %962  ;;  %v1074_v18 = vld [vmem:[%s5590_s5 + $0x8] sm:$0xff] }
 0x15a   : > { %v4304_v58 = vpop.f32.mrf.mxu0 }
 0x15b   : > { %v703_v63 = vadd.f32 %v4304_v58, %v626_v60  ;;  %v4322_v3 = vpop.f32.mrf.mxu1  ;;  %v625_v30 = vadd.f32 %v612_v47, %v548_v22 }
 0x15c   : > { %v686_v61 = vpop.f32.mrf.mxu0 }
 0x15d   : > { %v780_v6 = vadd.f32 %v4310_v49, %v703_v63  ;;  %v917_v11 = vpop.f32.mrf.mxu1  ;;  %v701_v27 = vadd.f32 %v686_v61, %v624_v23  ;;  %v4470_v63 = vld [vmem:[%s5589_s4] sm:$0xff]  }
 0x15e   : > { %v4305_v0 = vpop.f32.mrf.mxu0  ;;  %4336 = vmatprep.mubr.msk.bf16.mxu1 %vm1105_vm7, %v4470_v63 }
 0x15f   : > { %v704_v5 = vadd.f32 %v4305_v0, %v627_v2  ;;  %v4323_v21 = vpop.f32.mrf.mxu1  ;;  %v778_v33 = vadd.f32 %v763_v52, %v701_v27 }
 0x160   : > { %v689_v4 = vpop.f32.mrf.mxu0 }
 0x161   : > { %v781_v15 = vadd.f32 %v4311_v56, %v704_v5  ;;  %v702_v32 = vadd.f32 %v689_v4, %v625_v30  ;;  %v920_v41 = vpop.f32.mrf.mxu1  ;;  %v4478_v30 = vld [vmem:[%s5589_s4 + $0x3c] sm:$0xff]  }
 0x162   : > { %v4316_v7 = vpop.f32.mrf.mxu0 }
 0x163   : > { %v857_v10 = vadd.f32 %v4316_v7, %v780_v6  ;;  %v779_v37 = vadd.f32 %v766_v62, %v702_v32 }
 0x164   : > { %v840_v12 = vpop.f32.mrf.mxu0 }
 0x165   : > { %v934_v14 = vadd.f32 %v4322_v3, %v857_v10  ;;  %v855_v34 = vadd.f32 %v840_v12, %v778_v33  ;;  %v4477_v33 = vld [vmem:[%s5589_s4 + $0x20] ss:$0 sps:$4 sm:$0xff]  }
 0x166   : > { %v4317_v17 = vpop.f32.mrf.mxu0 }
 0x167   : > { %v958_v19 = vmul.f32 %v949_v1, %v934_v14  ;;  %v858_v20 = vadd.f32 %v4317_v17, %v781_v15  ;;  %v932_v39 = vadd.f32 %v917_v11, %v855_v34  ;;  %v4472_v11 = vld [vmem:[%s5589_s4 + $0xc] sm:$0xff]   ;;  %v4471_v15 = vld [vmem:[%s5589_s4 + $0x8] ss:$0 sps:$4 sm:$0xff]   ;;  %v4479_v34 = vld [vmem:[%s5589_s4 + $0x44] ss:$0 sps:$4 sm:$0xff]  }
 0x168   : > { %v843_v36 = vpop.f32.mrf.mxu0  ;;  %4328 = vmatprep.mubr.msk.bf16.mxu0 %vm1105_vm7, %v4472_v11  ;;  %v1075_v17 = vld [vmem:[%s5590_s5 + $0x10] sm:$0xff] }
 0x169   : > { %v982_v24 = vadd.f32 %v973_v16, %v958_v19  ;;  %v935_v25 = vadd.f32 %v4323_v21, %v858_v20  ;;  %v856_v40 = vadd.f32 %v843_v36, %v779_v37  ;;  %v956_v42 = vmul.f32 %v939_v38, %v932_v39  ;;  %v4474_v16 = vld [vmem:[%s5589_s4 + $0x24] sm:$0xff]   ;;  %v4480_v38 = vld [vmem:[%s5589_s4 + $0x30] sm:$0xff]  }
 0x16a   : > { %v1073_v19 = vld [vmem:[%s5590_s5] sm:$0xff]  ;;  %v4483_v39 = vld [vmem:[%s5589_s4 + $0x54] sm:$0xff]  }
 0x16b   : > { %v959_v28 = vmul.f32 %v954_v26, %v935_v25  ;;  %992 = vrot.lane.b32.xlu0 %v982_v24, %s4530_s17  ;;  %v933_v43 = vadd.f32 %v920_v41, %v856_v40  ;;  %v980_v47 = vadd.f32 %v963_v45, %v956_v42  ;;  %v4473_v25 = vld [vmem:[%s5589_s4 + $0x14] ss:$0 sps:$4 sm:$0xff]   ;;  %v4475_v26 = vld [vmem:[%s5589_s4 + $0x2c] ss:$0 sps:$4 sm:$0xff]   ;;  %v4481_v42 = vld [vmem:[%s5589_s4 + $0x38] ss:$0 sps:$4 sm:$0xff]  }
 0x16d   : > { %v983_v31 = vadd.f32 %v978_v29, %v959_v28  ;;  %v957_v46 = vmul.f32 %v944_v44, %v933_v43  ;;  %v4476_v29 = vld [vmem:[%s5589_s4 + $0x18] sm:$0xff]   ;;  %v4482_v43 = vld [vmem:[%s5589_s4 + $0x48] sm:$0xff]  }
 0x16e   : > { %v4485_v44 = vld [vmem:[%s5589_s4 + $0x5c] ss:$0 sps:$4 sm:$0xff]  }
 0x16f   : > { %1009 = vrot.lane.b32.xlu0 %v982_v24, %s4531_s18  ;;  %994 = vrot.lane.b32.xlu1 %v983_v31, %s4530_s17  ;;  %v981_v49 = vadd.f32 %v968_v48, %v957_v46  ;;  %v4486_v48 = vld [vmem:[%s5589_s4 + $0x60] sm:$0xff]  }
 0x173   : > { %1026 = vrot.lane.b32.xlu0 %v982_v24, %s4532_s19  ;;  %1011 = vrot.lane.b32.xlu1 %v983_v31, %s4531_s18 }
 0x177   : > { %1043 = vrot.lane.b32.xlu0 %v982_v24, %s4533_s20  ;;  %1028 = vrot.lane.b32.xlu1 %v983_v31, %s4532_s19 }
 0x17b   : > { %1060 = vrot.lane.b32.xlu0 %v982_v24, %s4534_s25  ;;  %1045 = vrot.lane.b32.xlu1 %v983_v31, %s4533_s20 }
 0x17f   : > { %1062 = vrot.lane.b32.xlu1 %v983_v31, %s4534_s25  ;;  %988 = vrot.lane.b32.xlu0 %v980_v47, %s4530_s17 }
 0x183   : > { %990 = vrot.lane.b32.xlu1 %v981_v49, %s4530_s17  ;;  %1005 = vrot.lane.b32.xlu0 %v980_v47, %s4531_s18  ;;  %s4537_s17 = smov 115  }
 0x187   : > { %1007 = vrot.lane.b32.xlu1 %v981_v49, %s4531_s18  ;;  %1022 = vrot.lane.b32.xlu0 %v980_v47, %s4532_s19  ;;  %s5600_s18 = smov 116  }
 0x18b   : > { %1024 = vrot.lane.b32.xlu1 %v981_v49, %s4532_s19  ;;  %1039 = vrot.lane.b32.xlu0 %v980_v47, %s4533_s20  ;;  %s4539_s19 = smov 105  }
 0x18f   : > { %1041 = vrot.lane.b32.xlu1 %v981_v49, %s4533_s20  ;;  %1056 = vrot.lane.b32.xlu0 %v980_v47, %s4534_s25  ;;  %s4540_s20 = smov 106   ;;  %v4484_v47 = vld [vmem:[%s5589_s4 + $0x50] ss:$0 sps:$4 sm:$0xff]  }
 0x193   : > { %1058 = vrot.lane.b32.xlu1 %v981_v49, %s4534_s25  ;;  %s4546_s25 = smov 84  }
 0x1dd   : > { %v993_v50 = vpop.permute.xlu0 %992 }
 0x1de   : > { %1003 = vst.msk [vmem:[#allocation2 + $0x10] sm:$0xff] %vm1000_vm2, %v993_v50  ;;  %v4487_v50 = vld [vmem:[%s5589_s4 + $0x68] ss:$0 sps:$4 sm:$0xff]  }
 0x1e1   : > { %v1010_v51 = vpop.permute.xlu0 %1009  ;;  %v995_v52 = vpop.permute.xlu1 %994 }
 0x1e2   : > { %1020 = vst.msk [vmem:[#allocation2 + $0x10] sm:$0xff] %vm1017_vm3, %v1010_v51 }
 0x1e3   : > { %1004 = vst.msk [vmem:[#allocation2 + $0x18] sm:$0xff] %vm1000_vm2, %v995_v52 }
 0x1e5   : > { %v1027_v53 = vpop.permute.xlu0 %1026  ;;  %v1012_v54 = vpop.permute.xlu1 %1011 }
 0x1e6   : > { %1037 = vst.msk [vmem:[#allocation2 + $0x10] sm:$0xff] %vm1034_vm4, %v1027_v53 }
 0x1e7   : > { %1021 = vst.msk [vmem:[#allocation2 + $0x18] sm:$0xff] %vm1017_vm3, %v1012_v54 }
 0x1e9   : > { %v1044_v55 = vpop.permute.xlu0 %1043  ;;  %v1029_v56 = vpop.permute.xlu1 %1028 }
 0x1ea   : > { %1054 = vst.msk [vmem:[#allocation2 + $0x10] sm:$0xff] %vm1051_vm5, %v1044_v55 }
 0x1eb   : > { %1038 = vst.msk [vmem:[#allocation2 + $0x18] sm:$0xff] %vm1034_vm4, %v1029_v56 }
 0x1ed   : > { %v1061_v57 = vpop.permute.xlu0 %1060  ;;  %v1046_v58 = vpop.permute.xlu1 %1045 }
 0x1ee   : > { %1071 = vst.msk [vmem:[#allocation2 + $0x10] sm:$0xff] %vm1068_vm6, %v1061_v57 }
 0x1ef   : > { %1055 = vst.msk [vmem:[#allocation2 + $0x18] sm:$0xff] %vm1051_vm5, %v1046_v58 }
 0x1f1   : > { %v1063_v59 = vpop.permute.xlu1 %1062  ;;  %v989_v60 = vpop.permute.xlu0 %988 }
 0x1f2   : > { %1072 = vst.msk [vmem:[#allocation2 + $0x18] sm:$0xff] %vm1068_vm6, %v1063_v59 }
 0x1f3   : > { %1001 = vst.msk [vmem:[#allocation2] sm:$0xff] %vm1000_vm2, %v989_v60 }
 0x1f5   : > { %v991_v61 = vpop.permute.xlu1 %990  ;;  %v1006_v62 = vpop.permute.xlu0 %1005  ;;  %v1081_v0 = vld [vmem:[#allocation2 + $0x10] sm:$0xff] }
 0x1f6   : > { %1002 = vst.msk [vmem:[#allocation2 + $0x8] sm:$0xff] %vm1000_vm2, %v991_v61  ;;  %vm1902_vm2 = vcmask 195584  }
 0x1f7   : > { %1018 = vst.msk [vmem:[#allocation2] sm:$0xff] %vm1017_vm3, %v1006_v62 }
 0x1f9   : > { %v1082_v1 = vld [vmem:[#allocation2 + $0x18] sm:$0xff]  ;;  %v1008_v2 = vpop.permute.xlu1 %1007  ;;  %v1023_v3 = vpop.permute.xlu0 %1022 }
 0x1fa   : > { %v1084_v4 = vpack.c.bf16 %v1082_v1, %v1081_v0  ;;  %1019 = vst.msk [vmem:[#allocation2 + $0x8] sm:$0xff] %vm1017_vm3, %v1008_v2  ;;  %vm2106_vm3 = vcmask 1022976  }
 0x1fb   : > { %1035 = vst.msk [vmem:[#allocation2] sm:$0xff] %vm1034_vm4, %v1023_v3 }
 0x1fc   : > { %4332 = vmatprep.subr.bf16.mxu1 %v1084_v4  ;;  %1101 = vrot.lane.b32.xlu0 %v1084_v4, %s4521_s15 }
 0x1fd   : > { %4333 = vmatpush3.bf16.msra.mxu1 %v1084_v4  ;;  %v1025_v5 = vpop.permute.xlu1 %1024  ;;  %v1040_v6 = vpop.permute.xlu0 %1039 }
 0x1fe   : > { %1036 = vst.msk [vmem:[#allocation2 + $0x8] sm:$0xff] %vm1034_vm4, %v1025_v5  ;;  %vm2029_vm4 = vcmask 1031168  }
 0x1ff   : > { %1052 = vst.msk [vmem:[#allocation2] sm:$0xff] %vm1051_vm5, %v1040_v6 }
 0x200   : > { %1236 = vrot.lane.b32.xlu0 %v1084_v4, %s4535_s30 }
 0x201   : > { %v1042_v7 = vpop.permute.xlu1 %1041  ;;  %v1057_v9 = vpop.permute.xlu0 %1056 }
 0x202   : > { %1053 = vst.msk [vmem:[#allocation2 + $0x8] sm:$0xff] %vm1051_vm5, %v1042_v7  ;;  %vm2183_vm5 = vcmask 1014784  }
 0x203   : > { %1069 = vst.msk [vmem:[#allocation2] sm:$0xff] %vm1068_vm6, %v1057_v9 }
 0x204   : > { %1311 = vrot.lane.b32.xlu0 %v1084_v4, %s4536_s9 }
 0x205   : > { %v1059_v10 = vpop.permute.xlu1 %1058 }
 0x206   : > { %1070 = vst.msk [vmem:[#allocation2 + $0x8] sm:$0xff] %vm1068_vm6, %v1059_v10  ;;  %vm2260_vm6 = vcmask 908288  }
 0x20a   : > { %v1079_v12 = vld [vmem:[#allocation2] sm:$0xff] }
 0x20d   : > { %v1080_v13 = vld [vmem:[#allocation2 + $0x8] sm:$0xff] }
 0x20e   : > { %v1083_v14 = vpack.c.bf16 %v1080_v13, %v1079_v12 }
 0x210   : > { %1309 = vrot.lane.b32.xlu0 %v1083_v14, %s4536_s9  ;;  %1099 = vrot.lane.b32.xlu1 %v1083_v14, %s4521_s15  ;;  %s4549_s9 = smov 124  }
 0x211   : > { %4334 = vmatprep.subr.bf16.mxu1 %v1083_v14 }
 0x212   : > { %4335 = vmatpush3.bf16.msra.mxu1 %v1083_v14 }
 0x214   : > { %1461 = vrot.lane.b32.xlu0 %v1084_v4, %s4537_s17  ;;  %1234 = vrot.lane.b32.xlu1 %v1083_v14, %s4535_s30 }
 0x215   : > { %4337 = vmatmul.mubr.msk.bf16.vlgmr.msra.gmra.mxu1 %vm1105_vm7, %v4471_v15 }
 0x216   : > { %4352 = vmatprep.mubr.msk.bf16.mxu1 %vm1105_vm7, %v4474_v16 }
 0x218   : > { %1459 = vrot.lane.b32.xlu0 %v1083_v14, %s4537_s17  ;;  %1386 = vrot.lane.b32.xlu1 %v1084_v4, %s5600_s18  ;;  %s5594_s17 = smov 96  }
 0x21c   : > { %1611 = vrot.lane.b32.xlu0 %v1084_v4, %s4539_s19  ;;  %1384 = vrot.lane.b32.xlu1 %v1083_v14, %s5600_s18  ;;  %s5608_s18 = smov 73  }
 0x220   : > { %1609 = vrot.lane.b32.xlu0 %v1083_v14, %s4539_s19  ;;  %1536 = vrot.lane.b32.xlu1 %v1084_v4, %s4540_s20  ;;  %s4544_s19 = smov 78  }
 0x224   : > { %1759 = vperm.xlu0 %4453, %v1075_v17   ;;  %1534 = vrot.lane.b32.xlu1 %v1083_v14, %s4540_s20  ;;  %s4545_s20 = smov 102  }
 0x228   : > { %1754 = vperm.xlu0 %4453, %v1074_v18   ;;  %1686 = vrot.lane.b32.xlu1 %v1084_v4, %s5596_s24 }
 0x22c   : > { %1684 = vrot.lane.b32.xlu1 %v1083_v14, %s5596_s24  ;;  %s5604_s24 = smov 75  }
 0x230   : > { %1749 = vperm.xlu1 %4452, %v1073_v19  }
 0x26e   : > { %v1102_v20 = vpop.permute.xlu0 %1101 }
 0x26f   : > { %4324 = vmatprep.subr.bf16.mxu0 %v1102_v20 }
 0x270   : > { %4325 = vmatpush3.bf16.msra.mxu0 %v1102_v20 }
 0x272   : > { %v1237_v21 = vpop.permute.xlu0 %1236 }
 0x276   : > { %v1312_v22 = vpop.permute.xlu0 %1311 }
 0x277   : > { %4348 = vmatprep.subr.bf16.mxu1 %v1312_v22 }
 0x278   : > { %4349 = vmatpush3.bf16.msra.mxu1 %v1312_v22 }
 0x282   : > { %v1100_v23 = vpop.permute.xlu1 %1099  ;;  %v1310_v24 = vpop.permute.xlu0 %1309 }
 0x283   : > { %4326 = vmatprep.subr.bf16.mxu0 %v1100_v23  ;;  %4350 = vmatprep.subr.bf16.mxu1 %v1310_v24 }
 0x284   : > { %4327 = vmatpush3.bf16.msra.mxu0 %v1100_v23  ;;  %4351 = vmatpush3.bf16.msra.mxu1 %v1310_v24 }
 0x285   : > { %4340 = vmatprep.subr.bf16.mxu0 %v1237_v21 }
 0x286   : > { %v1235_v27 = vpop.permute.xlu1 %1234  ;;  %v1462_v28 = vpop.permute.xlu0 %1461 }
 0x287   : > { %4329 = vmatmul.mubr.msk.bf16.vlgmr.msra.gmra.mxu0 %vm1105_vm7, %v4473_v25  ;;  %4364 = vmatprep.subr.bf16.mxu1 %v1462_v28 }
 0x288   : > { %4341 = vmatpush3.bf16.msra.mxu0 %v1237_v21  ;;  %4353 = vmatmul.mubr.msk.bf16.vlgmr.msra.gmra.mxu1 %vm1105_vm7, %v4475_v26 }
 0x289   : > { %4365 = vmatpush3.bf16.msra.mxu1 %v1462_v28  ;;  %4342 = vmatprep.subr.bf16.mxu0 %v1235_v27 }
 0x28a   : > { %v1387_v31 = vpop.permute.xlu1 %1386  ;;  %v1460_v32 = vpop.permute.xlu0 %1459  ;;  %4344 = vmatprep.mubr.msk.bf16.mxu0 %vm1105_vm7, %v4476_v29  ;;  %4368 = vmatprep.mubr.msk.bf16.mxu1 %vm1105_vm7, %v4478_v30 }
 0x28b   : > { %4366 = vmatprep.subr.bf16.mxu1 %v1460_v32 }
 0x28c   : > { %4343 = vmatpush3.bf16.msra.mxu0 %v1235_v27 }
 0x28d   : > { %4367 = vmatpush3.bf16.msra.mxu1 %v1460_v32  ;;  %4356 = vmatprep.subr.bf16.mxu0 %v1387_v31 }
 0x28e   : > { %v1385_v36 = vpop.permute.xlu1 %1384  ;;  %v1612_v37 = vpop.permute.xlu0 %1611 }
 0x28f   : > { %4345 = vmatmul.mubr.msk.bf16.vlgmr.msra.gmra.mxu0 %vm1105_vm7, %v4477_v33  ;;  %4380 = vmatprep.subr.bf16.mxu1 %v1612_v37 }
 0x290   : > { %4357 = vmatpush3.bf16.msra.mxu0 %v1387_v31  ;;  %4369 = vmatmul.mubr.msk.bf16.vlgmr.msra.gmra.mxu1 %vm1105_vm7, %v4479_v34 }
 0x291   : > { %4381 = vmatpush3.bf16.msra.mxu1 %v1612_v37  ;;  %4358 = vmatprep.subr.bf16.mxu0 %v1385_v36 }
 0x292   : > { %v1537_v40 = vpop.permute.xlu1 %1536  ;;  %v1610_v41 = vpop.permute.xlu0 %1609  ;;  %4360 = vmatprep.mubr.msk.bf16.mxu0 %vm1105_vm7, %v4480_v38  ;;  %4384 = vmatprep.mubr.msk.bf16.mxu1 %vm1105_vm7, %v4483_v39 }
 0x293   : > { %4382 = vmatprep.subr.bf16.mxu1 %v1610_v41 }
 0x294   : > { %4359 = vmatpush3.bf16.msra.mxu0 %v1385_v36 }
 0x295   : > { %4383 = vmatpush3.bf16.msra.mxu1 %v1610_v41  ;;  %4372 = vmatprep.subr.bf16.mxu0 %v1537_v40 }
 0x296   : > { %v1535_v45 = vpop.permute.xlu1 %1534 }
 0x297   : > { %4361 = vmatmul.mubr.msk.bf16.vlgmr.msra.gmra.mxu0 %vm1105_vm7, %v4481_v42 }
 0x298   : > { %4373 = vmatpush3.bf16.msra.mxu0 %v1537_v40  ;;  %4376 = vmatprep.mubr.msk.bf16.mxu0 %vm1105_vm7, %v4482_v43 }
 0x299   : > { %4374 = vmatprep.subr.bf16.mxu0 %v1535_v45  ;;  %4385 = vmatmul.mubr.msk.bf16.vlgmr.msra.gmra.mxu1 %vm1105_vm7, %v4485_v44 }
 0x29a   : > { %v1687_v46 = vpop.permute.xlu1 %1686  ;;  %1945 = vmatprep.mubr.bf16.mxu1 %v4528_v8 }
 0x29c   : > { %4375 = vmatpush3.bf16.msra.mxu0 %v1535_v45 }
 0x29d   : > { %4388 = vmatprep.subr.bf16.mxu0 %v1687_v46 }
 0x29e   : > { %v1685_v49 = vpop.permute.xlu1 %1684 }
 0x29f   : > { %4377 = vmatmul.mubr.msk.bf16.vlgmr.msra.gmra.mxu0 %vm1105_vm7, %v4484_v47  ;;  %v1760_v36 = vpop.permute.xlu0 %1759 }
 0x2a0   : > { %4389 = vmatpush3.bf16.msra.mxu0 %v1687_v46  ;;  %4392 = vmatprep.mubr.msk.bf16.mxu0 %vm1105_vm7, %v4486_v48 }
 0x2a1   : > { %4390 = vmatprep.subr.bf16.mxu0 %v1685_v49 }
 0x2a4   : > { %4391 = vmatpush3.bf16.msra.mxu0 %v1685_v49 }
 0x2a7   : > { %4393 = vmatmul.mubr.msk.bf16.vlgmr.msra.gmra.mxu0 %vm1105_vm7, %v4487_v50  ;;  %vm2337_vm7 = vcmask 900096  }
 0x2a8   : > { %2002 = vmatprep.mubr.bf16.mxu0 %v4528_v8 }
 0x2ab   : > { %v1750_v49 = vpop.permute.xlu1 %1749 }
 0x2d5   : > { %v4338_v51 = vpop.f32.mrf.mxu1 }
 0x2d7   : > { %v1208_v52 = vpop.f32.mrf.mxu1 }
 0x2d9   : > { %v4339_v53 = vpop.f32.mrf.mxu1 }
 0x2db   : > { %v1211_v54 = vpop.f32.mrf.mxu1 }
 0x347   : > { %v4330_v55 = vpop.f32.mrf.mxu0 }
 0x348   : > { %v4354_v56 = vpop.f32.mrf.mxu1  ;;  %v1217_v4 = vadd.f32 %v4338_v51, %v4330_v55 }
 0x349   : > { %v1146_v57 = vpop.f32.mrf.mxu0 }
 0x34a   : > { %v1355_v58 = vpop.f32.mrf.mxu1  ;;  %v1209_v19 = vadd.f32 %v1208_v52, %v1146_v57  ;;  %v1755_v52 = vpop.permute.xlu0 %1754 }
 0x34b   : > { %v4331_v59 = vpop.f32.mrf.mxu0 }
 0x34c   : > { %v4355_v60 = vpop.f32.mrf.mxu1 }
 0x34d   : > { %v1149_v61 = vpop.f32.mrf.mxu0 }
 0x34e   : > { %v1358_v62 = vpop.f32.mrf.mxu1  ;;  %v1212_v24 = vadd.f32 %v1211_v54, %v1149_v61 }
 0x34f   : > { %v4346_v63 = vpop.f32.mrf.mxu0 }
 0x350   : > { %v4370_v0 = vpop.f32.mrf.mxu1  ;;  %v1296_v7 = vadd.f32 %v4346_v63, %v1217_v4 }
 0x351   : > { %v1280_v1 = vpop.f32.mrf.mxu0 }
 0x352   : > { %v1505_v2 = vpop.f32.mrf.mxu1  ;;  %v1371_v13 = vadd.f32 %v4354_v56, %v1296_v7  ;;  %v1294_v21 = vadd.f32 %v1280_v1, %v1209_v19 }
 0x353   : > { %v4347_v3 = vpop.f32.mrf.mxu0 }
 0x354   : > { %v4371_v5 = vpop.f32.mrf.mxu1  ;;  %v1369_v27 = vadd.f32 %v1355_v58, %v1294_v21 }
 0x355   : > { %v1283_v6 = vpop.f32.mrf.mxu0 }
 0x356   : > { %v1508_v9 = vpop.f32.mrf.mxu1  ;;  %v1295_v28 = vadd.f32 %v1283_v6, %v1212_v24 }
 0x357   : > { %v4362_v10 = vpop.f32.mrf.mxu0 }
 0x358   : > { %v1446_v16 = vadd.f32 %v4362_v10, %v1371_v13  ;;  %v1370_v33 = vadd.f32 %v1358_v62, %v1295_v28 }
 0x359   : > { %v1430_v11 = vpop.f32.mrf.mxu0  ;;  %v4386_v12 = vpop.f32.mrf.mxu1 }
 0x35a   : > { %v1521_v22 = vadd.f32 %v4370_v0, %v1446_v16  ;;  %v1444_v30 = vadd.f32 %v1430_v11, %v1369_v27 }
 0x35b   : > { %v4363_v14 = vpop.f32.mrf.mxu0  ;;  %v1655_v15 = vpop.f32.mrf.mxu1 }
 0x35c   : > { %v1519_v38 = vadd.f32 %v1505_v2, %v1444_v30 }
 0x35d   : > { %v1433_v17 = vpop.f32.mrf.mxu0  ;;  %v4387_v18 = vpop.f32.mrf.mxu1 }
 0x35e   : > { %v1445_v39 = vadd.f32 %v1433_v17, %v1370_v33 }
 0x35f   : > { %v4378_v20 = vpop.f32.mrf.mxu0  ;;  %v1658_v46 = vpop.f32.mrf.mxu1 }
 0x360   : > { %v1596_v25 = vadd.f32 %v4378_v20, %v1521_v22  ;;  %v1520_v42 = vadd.f32 %v1508_v9, %v1445_v39 }
 0x361   : > { %v1580_v23 = vpop.f32.mrf.mxu0 }
 0x362   : > { %v1671_v31 = vadd.f32 %v4386_v12, %v1596_v25  ;;  %v1594_v41 = vadd.f32 %v1580_v23, %v1519_v38  ;;  %v4488_v23 = vld [vmem:[%s5591_s6] sm:$0xff]  }
 0x363   : > { %v4379_v26 = vpop.f32.mrf.mxu0 }
 0x364   : > { %v1669_v43 = vadd.f32 %v1655_v15, %v1594_v41 }
 0x365   : > { %v1583_v29 = vpop.f32.mrf.mxu0 }
 0x366   : > { %v1595_v44 = vadd.f32 %v1583_v29, %v1520_v42 }
 0x367   : > { %v4394_v32 = vpop.f32.mrf.mxu0 }
 0x368   : > { %v1746_v34 = vadd.f32 %v4394_v32, %v1671_v31  ;;  %v1670_v48 = vadd.f32 %v1658_v46, %v1595_v44 }
 0x369   : > { %v1730_v37 = vpop.f32.mrf.mxu0 }
 0x36a   : > { %v1764_v40 = vadd.f32 %v1760_v36, %v1746_v34  ;;  %v1744_v45 = vadd.f32 %v1730_v37, %v1669_v43 }
 0x36b   : > { %v4395_v35 = vpop.f32.mrf.mxu0 }
 0x36c   : > { %1811 = vrot.lane.b32.xlu0 %v1764_v40, %s4541_s14  ;;  %1772 = vrot.lane.b32.xlu1 %v1764_v40, %s4542_s16  ;;  %v1762_v50 = vadd.f32 %v1750_v49, %v1744_v45 }
 0x36d   : > { %v1733_v47 = vpop.f32.mrf.mxu0 }
 0x36e   : > { %v1745_v51 = vadd.f32 %v1733_v47, %v1670_v48 }
 0x370   : > { %1828 = vrot.lane.b32.xlu0 %v1764_v40, %s5594_s17  ;;  %1785 = vrot.lane.b32.xlu1 %v1764_v40, %s4544_s19  ;;  %v1763_v53 = vadd.f32 %v1755_v52, %v1745_v51 }
 0x374   : > { %1841 = vrot.lane.b32.xlu0 %v1764_v40, %s4545_s20  ;;  %1798 = vrot.lane.b32.xlu1 %v1764_v40, %s4546_s25 }
 0x378   : > { %1768 = vrot.lane.b32.xlu0 %v1762_v50, %s4542_s16  ;;  %1854 = vrot.lane.b32.xlu1 %v1764_v40, %s4547_s26 }
 0x37c   : > { %1807 = vrot.lane.b32.xlu0 %v1762_v50, %s4541_s14  ;;  %1770 = vrot.lane.b32.xlu1 %v1763_v53, %s4542_s16  ;;  %s4552_s16 = smov 107  }
 0x380   : > { %1781 = vrot.lane.b32.xlu0 %v1762_v50, %s4544_s19  ;;  %1809 = vrot.lane.b32.xlu1 %v1763_v53, %s4541_s14 }
 0x384   : > { %1824 = vrot.lane.b32.xlu0 %v1762_v50, %s5594_s17  ;;  %1783 = vrot.lane.b32.xlu1 %v1763_v53, %s4544_s19  ;;  %s4553_s19 = smov 94  }
 0x388   : > { %1794 = vrot.lane.b32.xlu0 %v1762_v50, %s4546_s25  ;;  %1826 = vrot.lane.b32.xlu1 %v1763_v53, %s5594_s17  ;;  %s4558_s17 = smov 76  }
 0x38c   : > { %1837 = vrot.lane.b32.xlu0 %v1762_v50, %s4545_s20  ;;  %1796 = vrot.lane.b32.xlu1 %v1763_v53, %s4546_s25  ;;  %s4555_s25 = smov 92  }
 0x390   : > { %1850 = vrot.lane.b32.xlu0 %v1762_v50, %s4547_s26  ;;  %1839 = vrot.lane.b32.xlu1 %v1763_v53, %s4545_s20  ;;  %s4554_s20 = smov 93  }
 0x394   : > { %1852 = vrot.lane.b32.xlu1 %v1763_v53, %s4547_s26 }
 0x3de   : > { %v1773_v54 = vpop.permute.xlu1 %1772  ;;  %v1812_v55 = vpop.permute.xlu0 %1811 }
 0x3df   : > { %1780 = vst.msk [vmem:[#allocation3 + $0x20] sm:$0xff] %vm1777_vm9, %v1773_v54 }
 0x3e0   : > { %1823 = vst.msk [vmem:[#allocation3 + $0x28] sm:$0xff] %vm1818_vm10, %v1812_v55 }
 0x3e2   : > { %v1786_v56 = vpop.permute.xlu1 %1785  ;;  %v1829_v57 = vpop.permute.xlu0 %1828 }
 0x3e3   : > { %1793 = vst.msk [vmem:[#allocation3 + $0x20] sm:$0xff] %vm1790_vm11, %v1786_v56 }
 0x3e4   : > { %1836 = vst.msk [vmem:[#allocation3 + $0x28] sm:$0xff] %vm1833_vm12, %v1829_v57 }
 0x3e6   : > { %v1799_v58 = vpop.permute.xlu1 %1798  ;;  %v1842_v59 = vpop.permute.xlu0 %1841 }
 0x3e7   : > { %1806 = vst.msk [vmem:[#allocation3 + $0x20] sm:$0xff] %vm1803_vm13, %v1799_v58 }
 0x3e8   : > { %1849 = vst.msk [vmem:[#allocation3 + $0x28] sm:$0xff] %vm1846_vm14, %v1842_v59 }
 0x3e9   : > { %1822 = vst.msk [vmem:[#allocation3 + $0x20] sm:$0xff] %vm1816_vm15, %v1812_v55 }
 0x3ea   : > { %v1855_v60 = vpop.permute.xlu1 %1854  ;;  %v1769_v61 = vpop.permute.xlu0 %1768 }
 0x3eb   : > { %1862 = vst.msk [vmem:[#allocation3 + $0x28] sm:$0xff] %vm1859_vm0, %v1855_v60 }
 0x3ec   : > { %1778 = vst.msk [vmem:[#allocation3] sm:$0xff] %vm1777_vm9, %v1769_v61 }
 0x3ee   : > { %v1771_v62 = vpop.permute.xlu1 %1770  ;;  %v1808_v63 = vpop.permute.xlu0 %1807 }
 0x3ef   : > { %1779 = vst.msk [vmem:[#allocation3 + $0x10] sm:$0xff] %vm1777_vm9, %v1771_v62  ;;  %vm2491_vm9 = vcmask 883712  }
 0x3f0   : > { %v1871_v0 = vld [vmem:[#allocation3 + $0x20] sm:$0xff]  ;;  %1819 = vst.msk [vmem:[#allocation3 + $0x8] sm:$0xff] %vm1818_vm10, %v1808_v63 }
 0x3f1   : > { %v4875_v1 = vpack.c.bf16 %v1871_v0, %v1871_v0 }
 0x3f2   : > { %v1872_v2 = vld [vmem:[#allocation3 + $0x28] sm:$0xff]  ;;  %v1810_v3 = vpop.permute.xlu1 %1809  ;;  %v1782_v4 = vpop.permute.xlu0 %1781 }
 0x3f3   : > { %1893 = vrot.lane.b32.xlu0 %v4875_v1, %s4521_s15  ;;  %v4879_v5 = vpack.c.bf16 %v1872_v2, %v1872_v2  ;;  %1821 = vst.msk [vmem:[#allocation3 + $0x18] sm:$0xff] %vm1818_vm10, %v1810_v3  ;;  %v1965_v6 = vsel %vm1906_vm1, %v4875_v1, 0  ;;  %v1863_v2 = vld [vmem:[%s5592_s7] sm:$0xff]  ;;  %vm2568_vm10 = vcmask 875520  }
 0x3f4   : > { %1791 = vst.msk [vmem:[#allocation3] sm:$0xff] %vm1790_vm11, %v1782_v4  ;;  %v1864_v4 = vld [vmem:[%s5592_s7 + $0x8] sm:$0xff] }
 0x3f5   : > { %1895 = vrot.lane.b32.xlu1 %v4879_v5, %s4521_s15  ;;  %4095 = vmatprep.subr.msk.bf16.mxu0 %vm1906_vm1, %v4879_v5 }
 0x3f6   : > { %v1784_v7 = vpop.permute.xlu1 %1783  ;;  %1983 = vmatpush1.bf16.msra.mxu0 %v1965_v6  ;;  %v1825_v9 = vpop.permute.xlu0 %1824 }
 0x3f7   : > { %2025 = vrot.lane.b32.xlu0 %v4875_v1, %s4535_s30  ;;  %1792 = vst.msk [vmem:[#allocation3 + $0x10] sm:$0xff] %vm1790_vm11, %v1784_v7  ;;  %vm2645_vm11 = vcmask 769024  }
 0x3f8   : > { %1834 = vst.msk [vmem:[#allocation3 + $0x8] sm:$0xff] %vm1833_vm12, %v1825_v9 }
 0x3f9   : > { %2027 = vrot.lane.b32.xlu1 %v4879_v5, %s4535_s30 }
 0x3fa   : > { %v1827_v10 = vpop.permute.xlu1 %1826  ;;  %v1795_v11 = vpop.permute.xlu0 %1794 }
 0x3fb   : > { %2102 = vrot.lane.b32.xlu0 %v4875_v1, %s4548_s29  ;;  %1835 = vst.msk [vmem:[#allocation3 + $0x18] sm:$0xff] %vm1833_vm12, %v1827_v10  ;;  %vm2722_vm12 = vcmask 760832  }
 0x3fc   : > { %1804 = vst.msk [vmem:[#allocation3] sm:$0xff] %vm1803_vm13, %v1795_v11 }
 0x3fd   : > { %1817 = vst.msk [vmem:[#allocation3] sm:$0xff] %vm1816_vm15, %v1808_v63  ;;  %2104 = vrot.lane.b32.xlu1 %v4879_v5, %s4548_s29 }
 0x3fe   : > { %v1797_v12 = vpop.permute.xlu1 %1796  ;;  %v1838_v13 = vpop.permute.xlu0 %1837 }
 0x3ff   : > { %2179 = vrot.lane.b32.xlu0 %v4875_v1, %s4549_s9  ;;  %1805 = vst.msk [vmem:[#allocation3 + $0x10] sm:$0xff] %vm1803_vm13, %v1797_v12  ;;  %vm2799_vm13 = vcmask 752640  }
 0x400   : > { %1847 = vst.msk [vmem:[#allocation3 + $0x8] sm:$0xff] %vm1846_vm14, %v1838_v13 }
 0x401   : > { %1820 = vst.msk [vmem:[#allocation3 + $0x10] sm:$0xff] %vm1816_vm15, %v1810_v3  ;;  %2181 = vrot.lane.b32.xlu1 %v4879_v5, %s4549_s9  ;;  %vm2953_vm15 = vcmask 736256  }
 0x402   : > { %v1840_v14 = vpop.permute.xlu1 %1839  ;;  %v1851_v15 = vpop.permute.xlu0 %1850 }
 0x403   : > { %2256 = vrot.lane.b32.xlu0 %v4875_v1, %s4525_s23  ;;  %1848 = vst.msk [vmem:[#allocation3 + $0x18] sm:$0xff] %vm1846_vm14, %v1840_v14  ;;  %vm2876_vm14 = vcmask 744448  }
 0x404   : > { %1860 = vst.msk [vmem:[#allocation3 + $0x8] sm:$0xff] %vm1859_vm0, %v1851_v15  ;;  %v1867_v20 = vld [vmem:[#allocation3] sm:$0xff] }
 0x405   : > { %2258 = vrot.lane.b32.xlu1 %v4879_v5, %s4525_s23 }
 0x406   : > { %v1853_v16 = vpop.permute.xlu1 %1852 }
 0x407   : > { %2333 = vrot.lane.b32.xlu0 %v4875_v1, %s4550_s10  ;;  %1861 = vst.msk [vmem:[#allocation3 + $0x18] sm:$0xff] %vm1859_vm0, %v1853_v16  ;;  %vm3030_vm0 = vcmask 629760  }
 0x408   : > { %v1869_v17 = vld [vmem:[#allocation3 + $0x10] sm:$0xff] }
 0x409   : > { %2335 = vrot.lane.b32.xlu1 %v4879_v5, %s4550_s10  ;;  %v4928_v22 = vpack.c.bf16 %v1869_v17, %v1867_v20  ;;  %v4489_v17 = vld [vmem:[%s5591_s6 + $0x8] sm:$0xff]  }
 0x40b   : > { %2410 = vrot.lane.b32.xlu0 %v4875_v1, %s4551_s11  ;;  %v1868_v18 = vld [vmem:[#allocation3 + $0x8] sm:$0xff] }
 0x40d   : > { %2412 = vrot.lane.b32.xlu1 %v4879_v5, %s4551_s11 }
 0x40e   : > { %v1870_v19 = vld [vmem:[#allocation3 + $0x18] sm:$0xff] }
 0x40f   : > { %2487 = vrot.lane.b32.xlu0 %v4875_v1, %s4547_s26  ;;  %v4926_v21 = vpack.c.bf16 %v1870_v19, %v1868_v18 }
 0x411   : > { %2489 = vrot.lane.b32.xlu1 %v4879_v5, %s4547_s26  ;;  %1984 = vmatprep.subr.bf16.mxu0 %v4926_v21 }
 0x412   : > { %1985 = vmatpush1.bf16.msra.mxu0 %v4928_v22 }
 0x413   : > { %2564 = vrot.lane.b32.xlu0 %v4875_v1, %s4552_s16 }
 0x415   : > { %2566 = vrot.lane.b32.xlu1 %v4879_v5, %s4552_s16  ;;  %4096 = vmatmul.mubr.msk.bf16.vlgmr.msra.gmra.mxu0 %vm1902_vm2, %v4488_v23 }
 0x416   : > { %2152 = vmatprep.mubr.bf16.mxu0 %v4528_v8 }
 0x417   : > { %2641 = vrot.lane.b32.xlu0 %v4875_v1, %s4553_s19 }
 0x419   : > { %2643 = vrot.lane.b32.xlu1 %v4879_v5, %s4553_s19 }
 0x41b   : > { %2718 = vrot.lane.b32.xlu0 %v4875_v1, %s4554_s20 }
 0x41d   : > { %2720 = vrot.lane.b32.xlu1 %v4879_v5, %s4554_s20 }
 0x41f   : > { %2795 = vrot.lane.b32.xlu0 %v4875_v1, %s4555_s25 }
 0x421   : > { %2797 = vrot.lane.b32.xlu1 %v4879_v5, %s4555_s25 }
 0x423   : > { %2872 = vrot.lane.b32.xlu0 %v4875_v1, %s4556_s12 }
 0x425   : > { %2874 = vrot.lane.b32.xlu1 %v4879_v5, %s4556_s12 }
 0x427   : > { %2949 = vrot.lane.b32.xlu0 %v4875_v1, %s4541_s14 }
 0x429   : > { %2951 = vrot.lane.b32.xlu1 %v4879_v5, %s4541_s14 }
 0x42b   : > { %3026 = vrot.lane.b32.xlu0 %v4875_v1, %s4557_s13 }
 0x42d   : > { %3028 = vrot.lane.b32.xlu1 %v4879_v5, %s4557_s13 }
 0x42f   : > { %3103 = vrot.lane.b32.xlu0 %v4875_v1, %s4558_s17 }
 0x431   : > { %3105 = vrot.lane.b32.xlu1 %v4879_v5, %s4558_s17 }
 0x433   : > { %3180 = vrot.lane.b32.xlu0 %v4875_v1, %s5604_s24 }
 0x435   : > { %3182 = vrot.lane.b32.xlu1 %v4879_v5, %s5604_s24  ;;  %s5610_s24 = smov 59  }
 0x437   : > { %3257 = vrot.lane.b32.xlu0 %v4875_v1, %s5606_s22 }
 0x439   : > { %3259 = vrot.lane.b32.xlu1 %v4879_v5, %s5606_s22  ;;  %s4564_s22 = smov 58  }
 0x43b   : > { %3334 = vrot.lane.b32.xlu0 %v4875_v1, %s5608_s18 }
 0x43d   : > { %3336 = vrot.lane.b32.xlu1 %v4879_v5, %s5608_s18  ;;  %s4565_s18 = smov 57  }
 0x43f   : > { %3411 = vrot.lane.b32.xlu0 %v4875_v1, %s4562_s21 }
 0x441   : > { %3413 = vrot.lane.b32.xlu1 %v4879_v5, %s4562_s21 }
 0x443   : > { %3488 = vrot.lane.b32.xlu0 %v4875_v1, %s5610_s24 }
 0x445   : > { %3490 = vrot.lane.b32.xlu1 %v4879_v5, %s5610_s24  ;;  %s4566_s24 = smov 56  }
 0x447   : > { %3565 = vrot.lane.b32.xlu0 %v4875_v1, %s4564_s22 }
 0x449   : > { %3567 = vrot.lane.b32.xlu1 %v4879_v5, %s4564_s22 }
 0x44b   : > { %3642 = vrot.lane.b32.xlu0 %v4875_v1, %s4565_s18 }
 0x44d   : > { %3644 = vrot.lane.b32.xlu1 %v4879_v5, %s4565_s18 }
 0x44f   : > { %1889 = vrot.lane.b32.xlu0 %v4928_v22, %s4521_s15 }
 0x451   : > { %1891 = vrot.lane.b32.xlu1 %v4926_v21, %s4521_s15  ;;  %s5612_s15 = smov 75  }
 0x453   : > { %3719 = vrot.lane.b32.xlu0 %v4875_v1, %s4566_s24 }
 0x455   : > { %3721 = vrot.lane.b32.xlu1 %v4879_v5, %s4566_s24 }
 0x457   : > { %2021 = vrot.lane.b32.xlu0 %v4928_v22, %s4535_s30 }
 0x459   : > { %2023 = vrot.lane.b32.xlu1 %v4926_v21, %s4535_s30  ;;  %s5614_s30 = smov 73  }
 0x45b   : > { %2098 = vrot.lane.b32.xlu0 %v4928_v22, %s4548_s29 }
 0x45d   : > { %2100 = vrot.lane.b32.xlu1 %v4926_v21, %s4548_s29 }
 0x45f   : > { %2175 = vrot.lane.b32.xlu0 %v4928_v22, %s4549_s9 }
 0x461   : > { %2177 = vrot.lane.b32.xlu1 %v4926_v21, %s4549_s9 }
 0x463   : > { %2252 = vrot.lane.b32.xlu0 %v4928_v22, %s4525_s23 }
 0x465   : > { %v1894_v24 = vpop.permute.xlu0 %1893  ;;  %2254 = vrot.lane.b32.xlu1 %v4926_v21, %s4525_s23  ;;  %s5613_s23 = smov 74  }
 0x467   : > { %2329 = vrot.lane.b32.xlu0 %v4928_v22, %s4550_s10  ;;  %v1896_v25 = vpop.permute.xlu1 %1895 }
 0x468   : > { %v1899_v26 = vsel %vm313_vm8, %v1894_v24, %v1896_v25  ;;  %4092 = vmatprep.subr.msk.bf16.mxu1 %vm1906_vm1, %v1896_v25  ;;  %v4490_v25 = vld [vmem:[%s5591_s6 + $0x10] sm:$0xff]  }
 0x469   : > { %v5027_v27 = vpop.permute.xlu0 %2025  ;;  %2331 = vrot.lane.b32.xlu1 %v4926_v21, %s4550_s10  ;;  %v1908_v28 = vsel %vm1906_vm1, %v1899_v26, 0  ;;  %s5621_s10 = smov 116  }
 0x46a   : > { %1926 = vmatpush1.bf16.msra.mxu1 %v1908_v28 }
 0x46b   : > { %2406 = vrot.lane.b32.xlu0 %v4928_v22, %s4551_s11  ;;  %v5034_v29 = vpop.permute.xlu1 %2027 }
 0x46c   : > { %v2031_v18 = vsel %vm2029_vm4, %v5027_v27, %v5034_v29 }
 0x46d   : > { %v2103_v30 = vpop.permute.xlu0 %2102  ;;  %2408 = vrot.lane.b32.xlu1 %v4926_v21, %s4551_s11  ;;  %s5622_s11 = smov 112  }
 0x46f   : > { %2483 = vrot.lane.b32.xlu0 %v4928_v22, %s4547_s26  ;;  %v2105_v31 = vpop.permute.xlu1 %2104 }
 0x470   : > { %v2108_v32 = vsel %vm2106_vm3, %v2103_v30, %v2105_v31  ;;  %4105 = vmatprep.subr.msk.bf16.mxu0 %vm1906_vm1, %v2105_v31  ;;  %v4491_v31 = vld [vmem:[%s5591_s6 + $0x18] sm:$0xff]  }
 0x471   : > { %v5042_v33 = vpop.permute.xlu0 %2179  ;;  %2485 = vrot.lane.b32.xlu1 %v4926_v21, %s4547_s26  ;;  %v2115_v34 = vsel %vm1906_vm1, %v2108_v32, 0 }
 0x472   : > { %2133 = vmatpush1.bf16.msra.mxu0 %v2115_v34 }
 0x473   : > { %2560 = vrot.lane.b32.xlu0 %v4928_v22, %s4552_s16  ;;  %v5049_v36 = vpop.permute.xlu1 %2181 }
 0x474   : > { %v2185_v26 = vsel %vm2183_vm5, %v5042_v33, %v5049_v36 }
 0x475   : > { %v5051_v37 = vpop.permute.xlu0 %2256  ;;  %2562 = vrot.lane.b32.xlu1 %v4926_v21, %s4552_s16  ;;  %v2192_v30 = vsel %vm1906_vm1, %v2185_v26, 0  ;;  %s5624_s16 = smov 96  }
 0x477   : > { %2637 = vrot.lane.b32.xlu0 %v4928_v22, %s4553_s19  ;;  %v5057_v38 = vpop.permute.xlu1 %2258 }
 0x478   : > { %v2262_v32 = vsel %vm2260_vm6, %v5051_v37, %v5057_v38  ;;  %v4492_v37 = vld [vmem:[%s5591_s6 + $0x20] sm:$0xff]  }
 0x479   : > { %v5059_v39 = vpop.permute.xlu0 %2333  ;;  %2639 = vrot.lane.b32.xlu1 %v4926_v21, %s4553_s19 }
 0x47b   : > { %2714 = vrot.lane.b32.xlu0 %v4928_v22, %s4554_s20  ;;  %v5065_v40 = vpop.permute.xlu1 %2335 }
 0x47d   : > { %v5067_v35 = vpop.permute.xlu0 %2410  ;;  %2716 = vrot.lane.b32.xlu1 %v4926_v21, %s4554_s20 }
 0x47f   : > { %2791 = vrot.lane.b32.xlu0 %v4928_v22, %s4555_s25  ;;  %v5073_v41 = vpop.permute.xlu1 %2412 }
 0x481   : > { %v5075_v42 = vpop.permute.xlu0 %2487  ;;  %2793 = vrot.lane.b32.xlu1 %v4926_v21, %s4555_s25 }
 0x483   : > { %2868 = vrot.lane.b32.xlu0 %v4928_v22, %s4556_s12  ;;  %v5081_v43 = vpop.permute.xlu1 %2489 }
 0x485   : > { %v5083_v44 = vpop.permute.xlu0 %2564  ;;  %2870 = vrot.lane.b32.xlu1 %v4926_v21, %s4556_s12 }
 0x487   : > { %2945 = vrot.lane.b32.xlu0 %v4928_v22, %s4541_s14  ;;  %v5089_v45 = vpop.permute.xlu1 %2566 }
 0x488   : > { %v2570_v26 = vsel %vm2568_vm10, %v5083_v44, %v5089_v45  ;;  %v4496_v44 = vld [vmem:[%s5591_s6 + $0x40] sm:$0xff]  }
 0x489   : > { %v5091_v46 = vpop.permute.xlu0 %2641  ;;  %2947 = vrot.lane.b32.xlu1 %v4926_v21, %s4541_s14  ;;  %s5615_s14 = smov 59  }
 0x48b   : > { %3022 = vrot.lane.b32.xlu0 %v4928_v22, %s4557_s13  ;;  %v5097_v47 = vpop.permute.xlu1 %2643 }
 0x48d   : > { %v5099_v48 = vpop.permute.xlu0 %2718  ;;  %3024 = vrot.lane.b32.xlu1 %v4926_v21, %s4557_s13 }
 0x48f   : > { %3099 = vrot.lane.b32.xlu0 %v4928_v22, %s4558_s17  ;;  %v5105_v49 = vpop.permute.xlu1 %2720 }
 0x491   : > { %v5107_v50 = vpop.permute.xlu0 %2795  ;;  %3101 = vrot.lane.b32.xlu1 %v4926_v21, %s4558_s17  ;;  %s4215_s17 = sshll.u32 %s5626_s28, 5  ;;  %s4567_s28 = smov 100  }
 0x493   : > { %3176 = vrot.lane.b32.xlu0 %v4928_v22, %s5612_s15  ;;  %v5113_v51 = vpop.permute.xlu1 %2797 }
 0x495   : > { %v5115_v52 = vpop.permute.xlu0 %2872  ;;  %3178 = vrot.lane.b32.xlu1 %v4926_v21, %s5612_s15 }
 0x497   : > { %3253 = vrot.lane.b32.xlu0 %v4928_v22, %s5613_s23  ;;  %v5121_v53 = vpop.permute.xlu1 %2874 }
 0x499   : > { %v5123_v54 = vpop.permute.xlu0 %2949  ;;  %3255 = vrot.lane.b32.xlu1 %v4926_v21, %s5613_s23 }
 0x49b   : > { %3330 = vrot.lane.b32.xlu0 %v4928_v22, %s5614_s30  ;;  %v5129_v55 = vpop.permute.xlu1 %2951 }
 0x49d   : > { %v5131_v56 = vpop.permute.xlu0 %3026  ;;  %3332 = vrot.lane.b32.xlu1 %v4926_v21, %s5614_s30 }
 0x49f   : > { %3407 = vrot.lane.b32.xlu0 %v4928_v22, %s4562_s21  ;;  %v5137_v57 = vpop.permute.xlu1 %3028 }
 0x4a1   : > { %v5139_v58 = vpop.permute.xlu0 %3103  ;;  %3409 = vrot.lane.b32.xlu1 %v4926_v21, %s4562_s21 }
 0x4a3   : > { %3484 = vrot.lane.b32.xlu0 %v4928_v22, %s5615_s14  ;;  %v5145_v59 = vpop.permute.xlu1 %3105 }
 0x4a5   : > { %v5147_v60 = vpop.permute.xlu0 %3180  ;;  %3486 = vrot.lane.b32.xlu1 %v4926_v21, %s5615_s14 }
 0x4a7   : > { %3561 = vrot.lane.b32.xlu0 %v4928_v22, %s4564_s22  ;;  %v5153_v61 = vpop.permute.xlu1 %3182 }
 0x4a9   : > { %v5155_v62 = vpop.permute.xlu0 %3257  ;;  %3563 = vrot.lane.b32.xlu1 %v4926_v21, %s4564_s22 }
 0x4ab   : > { %3638 = vrot.lane.b32.xlu0 %v4928_v22, %s4565_s18  ;;  %v5161_v63 = vpop.permute.xlu1 %3259 }
 0x4ad   : > { %v5163_v0 = vpop.permute.xlu0 %3334  ;;  %3640 = vrot.lane.b32.xlu1 %v4926_v21, %s4565_s18  ;;  %s5620_s18 = smov 120  }
 0x4af   : > { %3715 = vrot.lane.b32.xlu0 %v4928_v22, %s4566_s24  ;;  %v5169_v1 = vpop.permute.xlu1 %3336 }
 0x4b1   : > { %v5174_v3 = vpop.permute.xlu0 %3411  ;;  %3717 = vrot.lane.b32.xlu1 %v4926_v21, %s4566_s24  ;;  %v2038_v21 = vsel %vm1906_vm1, %v2031_v18, 0  ;;  %s5518_s24 = scalar_lea.vmem %s5593_s8, %s4215_s17 }
 0x4b3   : > { %3786 = vperm.xlu0 %4453, %v1863_v2   ;;  %v5181_v5 = vpop.permute.xlu1 %3413  ;;  %v2269_v2 = vsel %vm1906_vm1, %v2262_v32, 0 }
 0x4b5   : > { %v5183_v6 = vpop.permute.xlu0 %3488  ;;  %3791 = vperm.xlu1 %4452, %v1864_v4   ;;  %v2339_v4 = vsel %vm2337_vm7, %v5059_v39, %v5065_v40  ;;  %v4493_v39 = vld [vmem:[%s5591_s6 + $0x28] sm:$0xff]  }
 0x4b7   : > { %v5185_v7 = vpop.permute.xlu1 %3490 }
 0x4b9   : > { %v5187_v9 = vpop.permute.xlu0 %3565 }
 0x4bb   : > { %v5189_v10 = vpop.permute.xlu1 %3567 }
 0x4bd   : > { %v5191_v11 = vpop.permute.xlu0 %3642 }
 0x4bf   : > { %v5193_v12 = vpop.permute.xlu1 %3644 }
 0x4c1   : > { %v1890_v13 = vpop.permute.xlu0 %1889 }
 0x4c3   : > { %v1892_v14 = vpop.permute.xlu1 %1891 }
 0x4c4   : > { %v1898_v15 = vsel %vm313_vm8, %v1890_v13, %v1892_v14  ;;  %1927 = vmatprep.subr.bf16.mxu1 %v1892_v14  ;;  %vm2414_vm8 = vcmask 891904  }
 0x4c5   : > { %v5196_v16 = vpop.permute.xlu0 %3719  ;;  %1928 = vmatpush1.bf16.msra.mxu1 %v1898_v15  ;;  %v2346_v15 = vsel %vm1906_vm1, %v2339_v4, 0  ;;  %v2801_v4 = vsel %vm2799_vm13, %v5107_v50, %v5113_v51  ;;  %v4499_v50 = vld [vmem:[%s5591_s6 + $0x58] sm:$0xff]  }
 0x4c6   : > { %4100 = vmatprep.subr.msk.bf16.mxu1 %vm1906_vm1, %v5034_v29 }
 0x4c7   : > { %v5206_v19 = vpop.permute.xlu1 %3721 }
 0x4c8   : > { %4093 = vmatmul.mubr.msk.bf16.vlgmr.msra.gmra.mxu1 %vm1902_vm2, %v4489_v17  ;;  %v2416_v17 = vsel %vm2414_vm8, %v5067_v35, %v5073_v41  ;;  %v4494_v35 = vld [vmem:[%s5591_s6 + $0x30] sm:$0xff]  }
 0x4c9   : > { %v2022_v20 = vpop.permute.xlu0 %2021  ;;  %2056 = vmatpush1.bf16.msra.mxu1 %v2038_v21  ;;  %2075 = vmatprep.mubr.bf16.mxu1 %v4528_v8  ;;  %v2423_v21 = vsel %vm1906_vm1, %v2416_v17, 0 }
 0x4cb   : > { %v2024_v22 = vpop.permute.xlu1 %2023 }
 0x4cc   : > { %v2030_v23 = vsel %vm2029_vm4, %v2022_v20, %v2024_v22  ;;  %2057 = vmatprep.subr.bf16.mxu1 %v2024_v22  ;;  %v2493_v22 = vsel %vm2491_vm9, %v5075_v42, %v5081_v43  ;;  %v4495_v42 = vld [vmem:[%s5591_s6 + $0x38] sm:$0xff]   ;;  %vm3184_vm4 = vcmask 613376  }
 0x4cd   : > { %v2099_v24 = vpop.permute.xlu0 %2098  ;;  %2058 = vmatpush1.bf16.msra.mxu1 %v2030_v23 }
 0x4ce   : > { %4110 = vmatprep.subr.msk.bf16.mxu1 %vm1906_vm1, %v5049_v36 }
 0x4cf   : > { %v2101_v27 = vpop.permute.xlu1 %2100 }
 0x4d0   : > { %v2107_v28 = vsel %vm2106_vm3, %v2099_v24, %v2101_v27  ;;  %4101 = vmatmul.mubr.msk.bf16.vlgmr.msra.gmra.mxu1 %vm1902_vm2, %v4490_v25  ;;  %2134 = vmatprep.subr.bf16.mxu0 %v2101_v27  ;;  %v2500_v25 = vsel %vm1906_vm1, %v2493_v22, 0  ;;  %v3032_v22 = vsel %vm3030_vm0, %v5131_v56, %v5137_v57  ;;  %vm3107_vm3 = vcmask 621568   ;;  %v4502_v56 = vld [vmem:[%s5591_s6 + $0x70] sm:$0xff]  }
 0x4d1   : > { %v2176_v29 = vpop.permute.xlu0 %2175  ;;  %2135 = vmatpush1.bf16.msra.mxu0 %v2107_v28  ;;  %2210 = vmatpush1.bf16.msra.mxu1 %v2192_v30  ;;  %v2647_v30 = vsel %vm2645_vm11, %v5091_v46, %v5097_v47  ;;  %v4497_v46 = vld [vmem:[%s5591_s6 + $0x48] sm:$0xff]  }
 0x4d2   : > { %4115 = vmatprep.subr.msk.bf16.mxu0 %vm1906_vm1, %v5057_v38  ;;  %2229 = vmatprep.mubr.bf16.mxu1 %v4528_v8 }
 0x4d3   : > { %v2178_v33 = vpop.permute.xlu1 %2177 }
 0x4d4   : > { %v2184_v34 = vsel %vm2183_vm5, %v2176_v29, %v2178_v33  ;;  %4106 = vmatmul.mubr.msk.bf16.vlgmr.msra.gmra.mxu0 %vm1902_vm2, %v4491_v31  ;;  %2211 = vmatprep.subr.bf16.mxu1 %v2178_v33  ;;  %v2577_v29 = vsel %vm1906_vm1, %v2570_v26, 0  ;;  %v2654_v33 = vsel %vm1906_vm1, %v2647_v30, 0  ;;  %vm3261_vm5 = vcmask 605184  }
 0x4d5   : > { %v2253_v36 = vpop.permute.xlu0 %2252  ;;  %2212 = vmatpush1.bf16.msra.mxu1 %v2184_v34  ;;  %2287 = vmatpush1.bf16.msra.mxu0 %v2269_v2  ;;  %v2724_v34 = vsel %vm2722_vm12, %v5099_v48, %v5105_v49  ;;  %v4498_v48 = vld [vmem:[%s5591_s6 + $0x50] sm:$0xff]   ;;  %v3263_v30 = vsel %vm3261_vm5, %v5155_v62, %v5161_v63  ;;  %v4505_v62 = vld [vmem:[%s5591_s6 + $0x88] sm:$0xff]  }
 0x4d6   : > { %4120 = vmatprep.subr.msk.bf16.mxu1 %vm1906_vm1, %v5065_v40  ;;  %2306 = vmatprep.mubr.bf16.mxu0 %v4528_v8 }
 0x4d7   : > { %v2255_v38 = vpop.permute.xlu1 %2254 }
 0x4d8   : > { %v2261_v13 = vsel %vm2260_vm6, %v2253_v36, %v2255_v38  ;;  %4111 = vmatmul.mubr.msk.bf16.vlgmr.msra.gmra.mxu1 %vm1902_vm2, %v4492_v37  ;;  %2288 = vmatprep.subr.bf16.mxu0 %v2255_v38  ;;  %v2731_v37 = vsel %vm1906_vm1, %v2724_v34, 0  ;;  %v2808_v38 = vsel %vm1906_vm1, %v2801_v4, 0  ;;  %vm3338_vm6 = vcmask 596992  }
 0x4d9   : > { %v2330_v14 = vpop.permute.xlu0 %2329  ;;  %2289 = vmatpush1.bf16.msra.mxu0 %v2261_v13  ;;  %2364 = vmatpush1.bf16.msra.mxu1 %v2346_v15  ;;  %v2878_v15 = vsel %vm2876_vm14, %v5115_v52, %v5121_v53  ;;  %v4500_v52 = vld [vmem:[%s5591_s6 + $0x60] sm:$0xff]  }
 0x4da   : > { %4125 = vmatprep.subr.msk.bf16.mxu0 %vm1906_vm1, %v5073_v41  ;;  %2383 = vmatprep.mubr.bf16.mxu1 %v4528_v8 }
 0x4db   : > { %v2332_v40 = vpop.permute.xlu1 %2331 }
 0x4dc   : > { %v2338_v18 = vsel %vm2337_vm7, %v2330_v14, %v2332_v40  ;;  %4116 = vmatmul.mubr.msk.bf16.vlgmr.msra.gmra.mxu0 %vm1902_vm2, %v4493_v39  ;;  %2365 = vmatprep.subr.bf16.mxu1 %v2332_v40  ;;  %v2885_v39 = vsel %vm1906_vm1, %v2878_v15, 0  ;;  %vm3415_vm7 = vcmask 490496  }
 0x4dd   : > { %v2407_v20 = vpop.permute.xlu0 %2406  ;;  %2366 = vmatpush1.bf16.msra.mxu1 %v2338_v18  ;;  %2441 = vmatpush1.bf16.msra.mxu0 %v2423_v21  ;;  %v2955_v18 = vsel %vm2953_vm15, %v5123_v54, %v5129_v55  ;;  %v4501_v54 = vld [vmem:[%s5591_s6 + $0x68] sm:$0xff]  }
 0x4de   : > { %4130 = vmatprep.subr.msk.bf16.mxu1 %vm1906_vm1, %v5081_v43  ;;  %2460 = vmatprep.mubr.bf16.mxu0 %v4528_v8 }
 0x4df   : > { %v2409_v41 = vpop.permute.xlu1 %2408 }
 0x4e0   : > { %v2415_v23 = vsel %vm2414_vm8, %v2407_v20, %v2409_v41  ;;  %4121 = vmatmul.mubr.msk.bf16.vlgmr.msra.gmra.mxu1 %vm1902_vm2, %v4494_v35  ;;  %2442 = vmatprep.subr.bf16.mxu0 %v2409_v41  ;;  %v2962_v20 = vsel %vm1906_vm1, %v2955_v18, 0  ;;  %v3039_v41 = vsel %vm1906_vm1, %v3032_v22, 0  ;;  %vm3492_vm8 = vcmask 482304   ;;  %v2004_v22 = vpop.f32.mrf.mxu0 }
 0x4e1   : > { %v2484_v24 = vpop.permute.xlu0 %2483  ;;  %2443 = vmatpush1.bf16.msra.mxu0 %v2415_v23  ;;  %2518 = vmatpush1.bf16.msra.mxu1 %v2500_v25  ;;  %v3109_v25 = vsel %vm3107_vm3, %v5139_v58, %v5145_v59  ;;  %v4503_v58 = vld [vmem:[%s5591_s6 + $0x78] sm:$0xff]   ;;  %v3494_v4 = vsel %vm3492_vm8, %v5183_v6, %v5185_v7  ;;  %v4508_v6 = vld [vmem:[%s5591_s6 + $0xa0] sm:$0xff]  }
 0x4e2   : > { %4135 = vmatprep.subr.msk.bf16.mxu0 %vm1906_vm1, %v5089_v45  ;;  %2537 = vmatprep.mubr.bf16.mxu1 %v4528_v8 }
 0x4e3   : > { %v2486_v43 = vpop.permute.xlu1 %2485 }
 0x4e4   : > { %v2492_v27 = vsel %vm2491_vm9, %v2484_v24, %v2486_v43  ;;  %4126 = vmatmul.mubr.msk.bf16.vlgmr.msra.gmra.mxu0 %vm1902_vm2, %v4495_v42  ;;  %2519 = vmatprep.subr.bf16.mxu1 %v2486_v43  ;;  %v3116_v42 = vsel %vm1906_vm1, %v3109_v25, 0  ;;  %vm3569_vm9 = vcmask 474112  }
 0x4e5   : > { %v2561_v28 = vpop.permute.xlu0 %2560  ;;  %2520 = vmatpush1.bf16.msra.mxu1 %v2492_v27  ;;  %2595 = vmatpush1.bf16.msra.mxu0 %v2577_v29  ;;  %v3186_v27 = vsel %vm3184_vm4, %v5147_v60, %v5153_v61  ;;  %v4504_v60 = vld [vmem:[%s5591_s6 + $0x80] sm:$0xff]  }
 0x4e6   : > { %4140 = vmatprep.subr.msk.bf16.mxu1 %vm1906_vm1, %v5097_v47  ;;  %2614 = vmatprep.mubr.bf16.mxu0 %v4528_v8 }
 0x4e7   : > { %v2563_v45 = vpop.permute.xlu1 %2562 }
 0x4e8   : > { %v2569_v31 = vsel %vm2568_vm10, %v2561_v28, %v2563_v45  ;;  %4131 = vmatmul.mubr.msk.bf16.vlgmr.msra.gmra.mxu1 %vm1902_vm2, %v4496_v44  ;;  %2596 = vmatprep.subr.bf16.mxu0 %v2563_v45  ;;  %v3193_v28 = vsel %vm1906_vm1, %v3186_v27, 0  ;;  %v3270_v45 = vsel %vm1906_vm1, %v3263_v30, 0  ;;  %vm3646_vm10 = vcmask 465920  }
 0x4e9   : > { %v2638_v32 = vpop.permute.xlu0 %2637  ;;  %2597 = vmatpush1.bf16.msra.mxu0 %v2569_v31  ;;  %2672 = vmatpush1.bf16.msra.mxu1 %v2654_v33  ;;  %v3340_v33 = vsel %vm3338_vm6, %v5163_v0, %v5169_v1  ;;  %v4506_v0 = vld [vmem:[%s5591_s6 + $0x90] sm:$0xff]  }
 0x4ea   : > { %4145 = vmatprep.subr.msk.bf16.mxu0 %vm1906_vm1, %v5105_v49  ;;  %2691 = vmatprep.mubr.bf16.mxu1 %v4528_v8 }
 0x4eb   : > { %v2640_v47 = vpop.permute.xlu1 %2639 }
 0x4ec   : > { %v2646_v36 = vsel %vm2645_vm11, %v2638_v32, %v2640_v47  ;;  %4136 = vmatmul.mubr.msk.bf16.vlgmr.msra.gmra.mxu0 %vm1902_vm2, %v4497_v46  ;;  %2673 = vmatprep.subr.bf16.mxu1 %v2640_v47  ;;  %v3347_v46 = vsel %vm1906_vm1, %v3340_v33, 0  ;;  %vm3723_vm11 = vcmask 457728  }
 0x4ed   : > { %v2715_v2 = vpop.permute.xlu0 %2714  ;;  %2674 = vmatpush1.bf16.msra.mxu1 %v2646_v36  ;;  %2749 = vmatpush1.bf16.msra.mxu0 %v2731_v37  ;;  %v3417_v36 = vsel %vm3415_vm7, %v5174_v3, %v5181_v5  ;;  %v4507_v3 = vld [vmem:[%s5591_s6 + $0x98] sm:$0xff]  }
 0x4ee   : > { %4150 = vmatprep.subr.msk.bf16.mxu1 %vm1906_vm1, %v5113_v51  ;;  %2768 = vmatprep.mubr.bf16.mxu0 %v4528_v8 }
 0x4ef   : > { %v2717_v49 = vpop.permute.xlu1 %2716 }
 0x4f0   : > { %v2723_v13 = vsel %vm2722_vm12, %v2715_v2, %v2717_v49  ;;  %4141 = vmatmul.mubr.msk.bf16.vlgmr.msra.gmra.mxu1 %vm1902_vm2, %v4498_v48  ;;  %2750 = vmatprep.subr.bf16.mxu0 %v2717_v49  ;;  %v3424_v2 = vsel %vm1906_vm1, %v3417_v36, 0  ;;  %v3501_v49 = vsel %vm1906_vm1, %v3494_v4, 0  ;;  %vm3818_vm12 = vcmask 318672  }
 0x4f1   : > { %v2792_v14 = vpop.permute.xlu0 %2791  ;;  %2751 = vmatpush1.bf16.msra.mxu0 %v2723_v13  ;;  %2826 = vmatpush1.bf16.msra.mxu1 %v2808_v38 }
 0x4f2   : > { %4155 = vmatprep.subr.msk.bf16.mxu0 %vm1906_vm1, %v5121_v53  ;;  %2845 = vmatprep.mubr.bf16.mxu1 %v4528_v8 }
 0x4f3   : > { %v2794_v51 = vpop.permute.xlu1 %2793 }
 0x4f4   : > { %v2800_v17 = vsel %vm2799_vm13, %v2792_v14, %v2794_v51  ;;  %4146 = vmatmul.mubr.msk.bf16.vlgmr.msra.gmra.mxu0 %vm1902_vm2, %v4499_v50  ;;  %2827 = vmatprep.subr.bf16.mxu1 %v2794_v51  ;;  %v3571_v14 = vsel %vm3569_vm9, %v5187_v9, %v5189_v10  ;;  %v4509_v9 = vld [vmem:[%s5591_s6 + $0xa8] sm:$0xff]   ;;  %vm3827_vm13 = vcmask 425272  }
 0x4f5   : > { %v2869_v40 = vpop.permute.xlu0 %2868  ;;  %2828 = vmatpush1.bf16.msra.mxu1 %v2800_v17  ;;  %2903 = vmatpush1.bf16.msra.mxu0 %v2885_v39  ;;  %v3578_v50 = vsel %vm1906_vm1, %v3571_v14, 0  ;;  %v3648_v39 = vsel %vm3646_vm10, %v5191_v11, %v5193_v12  ;;  %v4510_v11 = vld [vmem:[%s5591_s6 + $0xb0] sm:$0xff]  }
 0x4f6   : > { %4160 = vmatprep.subr.msk.bf16.mxu1 %vm1906_vm1, %v5129_v55  ;;  %2922 = vmatprep.mubr.bf16.mxu0 %v4528_v8  ;;  %v3655_v17 = vsel %vm1906_vm1, %v3648_v39, 0 }
 0x4f7   : > { %v2871_v53 = vpop.permute.xlu1 %2870 }
 0x4f8   : > { %v2877_v21 = vsel %vm2876_vm14, %v2869_v40, %v2871_v53  ;;  %4151 = vmatmul.mubr.msk.bf16.vlgmr.msra.gmra.mxu1 %vm1902_vm2, %v4500_v52  ;;  %2904 = vmatprep.subr.bf16.mxu0 %v2871_v53  ;;  %v3725_v52 = vsel %vm3723_vm11, %v5196_v16, %v5206_v19  ;;  %v4511_v16 = vld [vmem:[%s5591_s6 + $0xb8] sm:$0xff]   ;;  %vm3836_vm14 = vcmask 531872  }
 0x4f9   : > { %v2946_v35 = vpop.permute.xlu0 %2945  ;;  %2905 = vmatpush1.bf16.msra.mxu0 %v2877_v21  ;;  %2980 = vmatpush1.bf16.msra.mxu1 %v2962_v20  ;;  %v3732_v53 = vsel %vm1906_vm1, %v3725_v52, 0 }
 0x4fa   : > { %4165 = vmatprep.subr.msk.bf16.mxu0 %vm1906_vm1, %v5137_v57  ;;  %2999 = vmatprep.mubr.bf16.mxu1 %v4528_v8 }
 0x4fb   : > { %v2948_v55 = vpop.permute.xlu1 %2947 }
 0x4fc   : > { %v2954_v23 = vsel %vm2953_vm15, %v2946_v35, %v2948_v55  ;;  %4156 = vmatmul.mubr.msk.bf16.vlgmr.msra.gmra.mxu0 %vm1902_vm2, %v4501_v54  ;;  %2981 = vmatprep.subr.bf16.mxu1 %v2948_v55  ;;  %v4512_v54 = vld [vmem:[%s5591_s6 + $0xc0] sm:$0xff]   ;;  %v2006_v55 = vpop.f32.mrf.mxu0  ;;  %vm3845_vm15 = vcmask 638472  }
 0x4fd   : > { %v3023_v24 = vpop.permute.xlu0 %3022  ;;  %2982 = vmatpush1.bf16.msra.mxu1 %v2954_v23  ;;  %3057 = vmatpush1.bf16.msra.mxu0 %v3039_v41 }
 0x4fe   : > { %4170 = vmatprep.subr.msk.bf16.mxu1 %vm1906_vm1, %v5145_v59  ;;  %3076 = vmatprep.mubr.bf16.mxu0 %v4528_v8  ;;  %v2008_v23 = vpop.f32.mrf.mxu0 }
 0x4ff   : > { %v3025_v57 = vpop.permute.xlu1 %3024 }
 0x500   : > { %v3031_v26 = vsel %vm3030_vm0, %v3023_v24, %v3025_v57  ;;  %4161 = vmatmul.mubr.msk.bf16.vlgmr.msra.gmra.mxu1 %vm1902_vm2, %v4502_v56  ;;  %3058 = vmatprep.subr.bf16.mxu0 %v3025_v57  ;;  %v2010_v56 = vpop.f32.mrf.mxu0  ;;  %vm3854_vm0 = vcmask 745072  }
 0x501   : > { %v3100_v43 = vpop.permute.xlu0 %3099  ;;  %3059 = vmatpush1.bf16.msra.mxu0 %v3031_v26  ;;  %3134 = vmatpush1.bf16.msra.mxu1 %v3116_v42 }
 0x502   : > { %4175 = vmatprep.subr.msk.bf16.mxu0 %vm1906_vm1, %v5153_v61  ;;  %3153 = vmatprep.mubr.bf16.mxu1 %v4528_v8 }
 0x503   : > { %v3102_v59 = vpop.permute.xlu1 %3101 }
 0x504   : > { %v3108_v29 = vsel %vm3107_vm3, %v3100_v43, %v3102_v59  ;;  %4166 = vmatmul.mubr.msk.bf16.vlgmr.msra.gmra.mxu0 %vm1902_vm2, %v4503_v58  ;;  %3135 = vmatprep.subr.bf16.mxu1 %v3102_v59  ;;  %vm3867_vm3 = vcmask 818176  }
 0x505   : > { %v3177_v44 = vpop.permute.xlu0 %3176  ;;  %3136 = vmatpush1.bf16.msra.mxu1 %v3108_v29  ;;  %3211 = vmatpush1.bf16.msra.mxu0 %v3193_v28 }
 0x506   : > { %4180 = vmatprep.subr.msk.bf16.mxu1 %vm1906_vm1, %v5161_v63  ;;  %3230 = vmatprep.mubr.bf16.mxu0 %v4528_v8 }
 0x507   : > { %v3179_v61 = vpop.permute.xlu1 %3178 }
 0x508   : > { %v3185_v31 = vsel %vm3184_vm4, %v3177_v44, %v3179_v61  ;;  %4171 = vmatmul.mubr.msk.bf16.vlgmr.msra.gmra.mxu1 %vm1902_vm2, %v4504_v60  ;;  %3212 = vmatprep.subr.bf16.mxu0 %v3179_v61  ;;  %vm3872_vm4 = vcmask 851672  }
 0x509   : > { %v3254_v32 = vpop.permute.xlu0 %3253  ;;  %3213 = vmatpush1.bf16.msra.mxu0 %v3185_v31  ;;  %3288 = vmatpush1.bf16.msra.mxu1 %v3270_v45 }
 0x50a   : > { %4185 = vmatprep.subr.msk.bf16.mxu0 %vm1906_vm1, %v5169_v1  ;;  %3307 = vmatprep.mubr.bf16.mxu1 %v4528_v8 }
 0x50b   : > { %v3256_v63 = vpop.permute.xlu1 %3255 }
 0x50c   : > { %v3262_v34 = vsel %vm3261_vm5, %v3254_v32, %v3256_v63  ;;  %4176 = vmatmul.mubr.msk.bf16.vlgmr.msra.gmra.mxu0 %vm1902_vm2, %v4505_v62  ;;  %3289 = vmatprep.subr.bf16.mxu1 %v3256_v63  ;;  %vm3881_vm5 = vcmask 958272  }
 0x50d   : > { %v3331_v47 = vpop.permute.xlu0 %3330  ;;  %3290 = vmatpush1.bf16.msra.mxu1 %v3262_v34  ;;  %3365 = vmatpush1.bf16.msra.mxu0 %v3347_v46 }
 0x50e   : > { %4190 = vmatprep.subr.msk.bf16.mxu1 %vm1906_vm1, %v5181_v5  ;;  %3384 = vmatprep.mubr.bf16.mxu0 %v4528_v8 }
 0x50f   : > { %v3333_v1 = vpop.permute.xlu1 %3332 }
 0x510   : > { %v3339_v37 = vsel %vm3338_vm6, %v3331_v47, %v3333_v1  ;;  %4181 = vmatmul.mubr.msk.bf16.vlgmr.msra.gmra.mxu1 %vm1902_vm2, %v4506_v0  ;;  %3366 = vmatprep.subr.bf16.mxu0 %v3333_v1  ;;  %vm3890_vm6 = vcmask 1048488  }
 0x511   : > { %v3408_v48 = vpop.permute.xlu0 %3407  ;;  %3367 = vmatpush1.bf16.msra.mxu0 %v3339_v37  ;;  %3442 = vmatpush1.bf16.msra.mxu1 %v3424_v2 }
 0x512   : > { %4195 = vmatprep.subr.msk.bf16.mxu0 %vm1906_vm1, %v5185_v7  ;;  %3461 = vmatprep.mubr.bf16.mxu1 %v4528_v8 }
 0x513   : > { %v3410_v5 = vpop.permute.xlu1 %3409 }
 0x514   : > { %v3416_v38 = vsel %vm3415_vm7, %v3408_v48, %v3410_v5  ;;  %4186 = vmatmul.mubr.msk.bf16.vlgmr.msra.gmra.mxu0 %vm1902_vm2, %v4507_v3  ;;  %3443 = vmatprep.subr.bf16.mxu1 %v3410_v5  ;;  %vm3892_vm7 = vcmask 15360  }
 0x515   : > { %v3485_v13 = vpop.permute.xlu0 %3484  ;;  %3444 = vmatpush1.bf16.msra.mxu1 %v3416_v38  ;;  %3519 = vmatpush1.bf16.msra.mxu0 %v3501_v49 }
 0x516   : > { %4200 = vmatprep.subr.msk.bf16.mxu1 %vm1906_vm1, %v5189_v10  ;;  %3538 = vmatprep.mubr.bf16.mxu0 %v4528_v8 }
 0x517   : > { %v3487_v7 = vpop.permute.xlu1 %3486 }
 0x518   : > { %v3493_v15 = vsel %vm3492_vm8, %v3485_v13, %v3487_v7  ;;  %4191 = vmatmul.mubr.msk.bf16.vlgmr.msra.gmra.mxu1 %vm1902_vm2, %v4508_v6  ;;  %3520 = vmatprep.subr.bf16.mxu0 %v3487_v7  ;;  %vm3902_vm8 = vcmask 121872  }
 0x519   : > { %v3562_v51 = vpop.permute.xlu0 %3561  ;;  %3521 = vmatpush1.bf16.msra.mxu0 %v3493_v15  ;;  %3596 = vmatpush1.bf16.msra.mxu1 %v3578_v50 }
 0x51a   : > { %4205 = vmatprep.subr.msk.bf16.mxu0 %vm1906_vm1, %v5193_v12  ;;  %3615 = vmatprep.mubr.bf16.mxu1 %v4528_v8 }
 0x51b   : > { %v3564_v10 = vpop.permute.xlu1 %3563 }
 0x51c   : > { %v3570_v40 = vsel %vm3569_vm9, %v3562_v51, %v3564_v10  ;;  %4196 = vmatmul.mubr.msk.bf16.vlgmr.msra.gmra.mxu0 %vm1902_vm2, %v4509_v9  ;;  %3597 = vmatprep.subr.bf16.mxu1 %v3564_v10 }
 0x51d   : > { %v3639_v18 = vpop.permute.xlu0 %3638  ;;  %3598 = vmatpush1.bf16.msra.mxu1 %v3570_v40  ;;  %3673 = vmatpush1.bf16.msra.mxu0 %v3655_v17 }
 0x51e   : > { %4210 = vmatprep.subr.msk.bf16.mxu1 %vm1906_vm1, %v5206_v19  ;;  %3692 = vmatprep.mubr.bf16.mxu0 %v4528_v8  ;;  %vm3798_vm1 = vcmask 105472  }
 0x51f   : > { %v3641_v12 = vpop.permute.xlu1 %3640 }
 0x520   : > { %v3647_v20 = vsel %vm3646_vm10, %v3639_v18, %v3641_v12  ;;  %4201 = vmatmul.mubr.msk.bf16.vlgmr.msra.gmra.mxu1 %vm1902_vm2, %v4510_v11  ;;  %3674 = vmatprep.subr.bf16.mxu0 %v3641_v12 }
 0x521   : > { %3675 = vmatpush1.bf16.msra.mxu0 %v3647_v20  ;;  %3750 = vmatpush1.bf16.msra.mxu1 %v3732_v53  ;;  %v3716_v21 = vpop.permute.xlu0 %3715 }
 0x522   : > { %3769 = vmatprep.mubr.bf16.mxu1 %v4528_v8 }
 0x523   : > { %v3718_v19 = vpop.permute.xlu1 %3717 }
 0x524   : > { %v3724_v35 = vsel %vm3723_vm11, %v3716_v21, %v3718_v19  ;;  %4206 = vmatmul.mubr.msk.bf16.vlgmr.msra.gmra.mxu0 %vm1902_vm2, %v4511_v16  ;;  %3751 = vmatprep.subr.bf16.mxu1 %v3718_v19 }
 0x525   : > { %3752 = vmatpush1.bf16.msra.mxu1 %v3724_v35 }
 0x528   : > { %4211 = vmatmul.mubr.msk.bf16.vlgmr.msra.gmra.mxu1 %vm1902_vm2, %v4512_v54  ;;  %vm3809_vm2 = vcmask 212072  }
 0x588   : > { %v1947_v41 = vpop.f32.mrf.mxu1 }
 0x589   : > { %v2005_v52 = vadd.f32 %v2004_v22, %v1947_v41 }
 0x58a   : > { %v1949_v24 = vpop.f32.mrf.mxu1 }
 0x58b   : > { %v2007_v53 = vadd.f32 %v2006_v55, %v1949_v24 }
 0x58c   : > { %v1951_v8 = vpop.f32.mrf.mxu1 }
 0x58d   : > { %v2009_v19 = vadd.f32 %v2008_v23, %v1951_v8 }
 0x58e   : > { %v1953_v25 = vpop.f32.mrf.mxu1 }
 0x58f   : > { %v2011_v57 = vadd.f32 %v2010_v56, %v1953_v25 }
 0x590   : > { %v2077_v42 = vpop.f32.mrf.mxu1 }
 0x591   : > { %v2086_v20 = vadd.f32 %v2077_v42, %v2005_v52 }
 0x592   : > { %v2079_v26 = vpop.f32.mrf.mxu1 }
 0x593   : > { %v2087_v35 = vadd.f32 %v2079_v26, %v2007_v53 }
 0x594   : > { %v2081_v43 = vpop.f32.mrf.mxu1  ;;  %v2154_v58 = vpop.f32.mrf.mxu0 }
 0x595   : > { %v2163_v54 = vadd.f32 %v2154_v58, %v2086_v20 }
 0x596   : > { %v2083_v27 = vpop.f32.mrf.mxu1  ;;  %v2156_v59 = vpop.f32.mrf.mxu0 }
 0x597   : > { %v2089_v28 = vadd.f32 %v2083_v27, %v2011_v57  ;;  %v2088_v57 = vadd.f32 %v2081_v43, %v2009_v19  ;;  %v2164_v27 = vadd.f32 %v2156_v59, %v2087_v35 }
 0x598   : > { %v2158_v29 = vpop.f32.mrf.mxu0  ;;  %v2231_v44 = vpop.f32.mrf.mxu1 }
 0x59a   : > { %v2160_v60 = vpop.f32.mrf.mxu0  ;;  %v2233_v30 = vpop.f32.mrf.mxu1 }
 0x59b   : > { %v2166_v61 = vadd.f32 %v2160_v60, %v2089_v28  ;;  %v2240_v28 = vadd.f32 %v2231_v44, %v2163_v54  ;;  %v2241_v22 = vadd.f32 %v2233_v30, %v2164_v27 }
 0x59c   : > { %v2235_v45 = vpop.f32.mrf.mxu1  ;;  %v2308_v31 = vpop.f32.mrf.mxu0 }
 0x59d   : > { %v2317_v41 = vadd.f32 %v2308_v31, %v2240_v28 }
 0x59e   : > { %v2237_v32 = vpop.f32.mrf.mxu1  ;;  %v2310_v62 = vpop.f32.mrf.mxu0 }
 0x59f   : > { %v5473_v33 = vadd.f32 %v2237_v32, %v2166_v61  ;;  %v2165_v32 = vadd.f32 %v2158_v29, %v2088_v57  ;;  %v2318_v42 = vadd.f32 %v2310_v62, %v2241_v22 }
 0x5a0   : > { %v2312_v63 = vpop.f32.mrf.mxu0  ;;  %v2385_v46 = vpop.f32.mrf.mxu1 }
 0x5a1   : > { %v2242_v24 = vadd.f32 %v2235_v45, %v2165_v32  ;;  %v2394_v52 = vadd.f32 %v2385_v46, %v2317_v41 }
 0x5a2   : > { %v5475_v34 = vpop.f32.mrf.mxu0  ;;  %v2387_v47 = vpop.f32.mrf.mxu1 }
 0x5a3   : > { %v2319_v8 = vadd.f32 %v2312_v63, %v2242_v24  ;;  %v2395_v26 = vadd.f32 %v2387_v47, %v2318_v42 }
 0x5a4   : > { %v2389_v0 = vpop.f32.mrf.mxu1  ;;  %v2462_v36 = vpop.f32.mrf.mxu0 }
 0x5a5   : > { %v2471_v58 = vadd.f32 %v2462_v36, %v2394_v52  ;;  %v2396_v44 = vadd.f32 %v2389_v0, %v2319_v8 }
 0x5a6   : > { %v5477_v1 = vpop.f32.mrf.mxu1  ;;  %v2464_v2 = vpop.f32.mrf.mxu0 }
 0x5a7   : > { %v2472_v53 = vadd.f32 %v2464_v2, %v2395_v26 }
 0x5a8   : > { %v2466_v37 = vpop.f32.mrf.mxu0  ;;  %v2539_v48 = vpop.f32.mrf.mxu1 }
 0x5a9   : > { %v2548_v20 = vadd.f32 %v2539_v48, %v2471_v58  ;;  %v2473_v30 = vadd.f32 %v2466_v37, %v2396_v44 }
 0x5aa   : > { %v5479_v3 = vpop.f32.mrf.mxu0  ;;  %v2541_v4 = vpop.f32.mrf.mxu1 }
 0x5ab   : > { %v2549_v31 = vadd.f32 %v2541_v4, %v2472_v53 }
 0x5ac   : > { %v2543_v5 = vpop.f32.mrf.mxu1  ;;  %v2616_v49 = vpop.f32.mrf.mxu0 }
 0x5ad   : > { %v2625_v35 = vadd.f32 %v2616_v49, %v2548_v20  ;;  %v2550_v46 = vadd.f32 %v2543_v5, %v2473_v30 }
 0x5ae   : > { %v5481_v38 = vpop.f32.mrf.mxu1  ;;  %v2618_v13 = vpop.f32.mrf.mxu0 }
 0x5af   : > { %v2626_v54 = vadd.f32 %v2618_v13, %v2549_v31 }
 0x5b0   : > { %v2620_v6 = vpop.f32.mrf.mxu0  ;;  %v2693_v14 = vpop.f32.mrf.mxu1 }
 0x5b1   : > { %v2702_v57 = vadd.f32 %v2693_v14, %v2625_v35  ;;  %v2627_v47 = vadd.f32 %v2620_v6, %v2550_v46 }
 0x5b2   : > { %v5483_v7 = vpop.f32.mrf.mxu0  ;;  %v2695_v50 = vpop.f32.mrf.mxu1 }
 0x5b3   : > { %v2703_v36 = vadd.f32 %v2695_v50, %v2626_v54 }
 0x5b4   : > { %v2697_v15 = vpop.f32.mrf.mxu1  ;;  %v2770_v51 = vpop.f32.mrf.mxu0 }
 0x5b5   : > { %v2779_v28 = vadd.f32 %v2770_v51, %v2702_v57  ;;  %v2704_v48 = vadd.f32 %v2697_v15, %v2627_v47 }
 0x5b6   : > { %v5485_v9 = vpop.f32.mrf.mxu1  ;;  %v2772_v39 = vpop.f32.mrf.mxu0 }
 0x5b7   : > { %v2780_v32 = vadd.f32 %v2772_v39, %v2703_v36 }
 0x5b8   : > { %v2774_v10 = vpop.f32.mrf.mxu0  ;;  %v2847_v17 = vpop.f32.mrf.mxu1 }
 0x5b9   : > { %v2856_v22 = vadd.f32 %v2847_v17, %v2779_v28  ;;  %v2781_v4 = vadd.f32 %v2774_v10, %v2704_v48 }
 0x5ba   : > { %v5487_v40 = vpop.f32.mrf.mxu0  ;;  %v2849_v11 = vpop.f32.mrf.mxu1 }
 0x5bb   : > { %5616 = vst [vmem:[#allocation4_spill] sm:$0xff] %v5487_v40  ;;  %v2857_v49 = vadd.f32 %v2849_v11, %v2780_v32 }
 0x5bc   : > { %v2851_v18 = vpop.f32.mrf.mxu1  ;;  %v2924_v12 = vpop.f32.mrf.mxu0 }
 0x5bd   : > { %v2933_v24 = vadd.f32 %v2924_v12, %v2856_v22  ;;  %v2858_v14 = vadd.f32 %v2851_v18, %v2781_v4 }
 0x5be   : > { %v5489_v16 = vpop.f32.mrf.mxu1  ;;  %v2926_v21 = vpop.f32.mrf.mxu0 }
 0x5bf   : > { %5617 = vst [vmem:[#allocation5_spill] sm:$0xff] %v5489_v16  ;;  %v2934_v42 = vadd.f32 %v2926_v21, %v2857_v49 }
 0x5c0   : > { %v2928_v56 = vpop.f32.mrf.mxu0  ;;  %v3001_v25 = vpop.f32.mrf.mxu1 }
 0x5c1   : > { %v3010_v52 = vadd.f32 %v3001_v25, %v2933_v24  ;;  %v2935_v50 = vadd.f32 %v2928_v56, %v2858_v14 }
 0x5c2   : > { %v5491_v60 = vpop.f32.mrf.mxu0  ;;  %v3003_v61 = vpop.f32.mrf.mxu1 }
 0x5c3   : > { %v3011_v51 = vadd.f32 %v3003_v61, %v2934_v42  ;;  %v2320_v61 = vadd.f32 %v5475_v34, %v5473_v33 }
 0x5c4   : > { %v3005_v40 = vpop.f32.mrf.mxu1  ;;  %v3078_v55 = vpop.f32.mrf.mxu0 }
 0x5c5   : > { %v3087_v26 = vadd.f32 %v3078_v55, %v3010_v52  ;;  %v3012_v17 = vadd.f32 %v3005_v40, %v2935_v50 }
 0x5c6   : > { %v5493_v16 = vpop.f32.mrf.mxu1  ;;  %v3080_v23 = vpop.f32.mrf.mxu0 }
 0x5c7   : > { %v3088_v58 = vadd.f32 %v3080_v23, %v3011_v51 }
 0x5c8   : > { %v3082_v43 = vpop.f32.mrf.mxu0  ;;  %v3155_v59 = vpop.f32.mrf.mxu1 }
 0x5c9   : > { %v3164_v44 = vadd.f32 %v3155_v59, %v3087_v26  ;;  %v3089_v11 = vadd.f32 %v3082_v43, %v3012_v17  ;;  %v2397_v43 = vadd.f32 %v5477_v1, %v2320_v61 }
 0x5ca   : > { %v5495_v19 = vpop.f32.mrf.mxu0  ;;  %v3157_v29 = vpop.f32.mrf.mxu1 }
 0x5cb   : > { %v3165_v12 = vadd.f32 %v3157_v29, %v3088_v58 }
 0x5cc   : > { %v3159_v45 = vpop.f32.mrf.mxu1  ;;  %v3232_v62 = vpop.f32.mrf.mxu0 }
 0x5cd   : > { %v3241_v20 = vadd.f32 %v3232_v62, %v3164_v44  ;;  %v3166_v25 = vadd.f32 %v3159_v45, %v3089_v11 }
 0x5ce   : > { %v5497_v27 = vpop.f32.mrf.mxu1  ;;  %v3234_v63 = vpop.f32.mrf.mxu0 }
 0x5cf   : > { %v3242_v30 = vadd.f32 %v3234_v63, %v3165_v12  ;;  %v2474_v63 = vadd.f32 %v5479_v3, %v2397_v43 }
 0x5d0   : > { %v3236_v0 = vpop.f32.mrf.mxu0  ;;  %v3309_v2 = vpop.f32.mrf.mxu1 }
 0x5d1   : > { %v3318_v31 = vadd.f32 %v3309_v2, %v3241_v20  ;;  %v3243_v40 = vadd.f32 %v3236_v0, %v3166_v25  ;;  %v2551_v34 = vadd.f32 %v5481_v38, %v2474_v63  ;;  %v3787_v38 = vpop.permute.xlu0 %3786 }
 0x5d2   : > { %v5499_v41 = vpop.f32.mrf.mxu0  ;;  %v3311_v37 = vpop.f32.mrf.mxu1 }
 0x5d3   : > { %v3319_v55 = vadd.f32 %v3311_v37, %v3242_v30  ;;  %v2628_v37 = vadd.f32 %v5483_v7, %v2551_v34  ;;  %v5618_v7 = vld [vmem:[#allocation4_spill] sm:$0xff] }
 0x5d4   : > { %v3313_v5 = vpop.f32.mrf.mxu1  ;;  %v3386_v13 = vpop.f32.mrf.mxu0 }
 0x5d5   : > { %v3395_v23 = vadd.f32 %v3386_v13, %v3318_v31  ;;  %v3320_v29 = vadd.f32 %v3313_v5, %v3243_v40  ;;  %v2705_v13 = vadd.f32 %v5485_v9, %v2628_v37  ;;  %v5619_v9 = vld [vmem:[#allocation5_spill] sm:$0xff] }
 0x5d6   : > { %v5501_v8 = vpop.f32.mrf.mxu1  ;;  %v3388_v6 = vpop.f32.mrf.mxu0 }
 0x5d7   : > { %v3396_v62 = vadd.f32 %v3388_v6, %v3319_v55  ;;  %v2782_v50 = vadd.f32 %v5618_v7, %v2705_v13 }
 0x5d8   : > { %v3390_v15 = vpop.f32.mrf.mxu0  ;;  %v3463_v39 = vpop.f32.mrf.mxu1 }
 0x5d9   : > { %v3472_v54 = vadd.f32 %v3463_v39, %v3395_v23  ;;  %v3397_v47 = vadd.f32 %v3390_v15, %v3320_v29  ;;  %v2859_v17 = vadd.f32 %v5619_v9, %v2782_v50 }
 0x5da   : > { %v5503_v53 = vpop.f32.mrf.mxu0  ;;  %v3465_v10 = vpop.f32.mrf.mxu1 }
 0x5db   : > { %v3473_v36 = vadd.f32 %v3465_v10, %v3396_v62  ;;  %v3792_v10 = vpop.permute.xlu1 %3791  ;;  %v2936_v11 = vadd.f32 %v5491_v60, %v2859_v17 }
 0x5dc   : > { %v3467_v18 = vpop.f32.mrf.mxu1  ;;  %v3540_v21 = vpop.f32.mrf.mxu0 }
 0x5dd   : > { %v3549_v28 = vadd.f32 %v3540_v21, %v3472_v54  ;;  %v3474_v0 = vadd.f32 %v3467_v18, %v3397_v47  ;;  %v3013_v20 = vadd.f32 %v5493_v16, %v2936_v11 }
 0x5de   : > { %v5505_v35 = vpop.f32.mrf.mxu1  ;;  %v3542_v56 = vpop.f32.mrf.mxu0 }
 0x5df   : > { %v3550_v48 = vadd.f32 %v3542_v56, %v3473_v36  ;;  %v3090_v18 = vadd.f32 %v5495_v19, %v3013_v20 }
 0x5e0   : > { %v3544_v59 = vpop.f32.mrf.mxu0  ;;  %v3617_v46 = vpop.f32.mrf.mxu1 }
 0x5e1   : > { %v3626_v32 = vadd.f32 %v3617_v46, %v3549_v28  ;;  %v3551_v4 = vadd.f32 %v3544_v59, %v3474_v0  ;;  %v3167_v21 = vadd.f32 %v5497_v27, %v3090_v18 }
 0x5e2   : > { %v3546_v45 = vpop.f32.mrf.mxu0  ;;  %v3619_v57 = vpop.f32.mrf.mxu1 }
 0x5e3   : > { %v3627_v49 = vadd.f32 %v3619_v57, %v3550_v48  ;;  %v3244_v60 = vadd.f32 %v5499_v41, %v3167_v21 }
 0x5e4   : > { %v3621_v2 = vpop.f32.mrf.mxu1  ;;  %v3694_v33 = vpop.f32.mrf.mxu0 }
 0x5e5   : > { %v3703_v24 = vadd.f32 %v3694_v33, %v3626_v32  ;;  %v3628_v14 = vadd.f32 %v3621_v2, %v3551_v4  ;;  %v3321_v25 = vadd.f32 %v5501_v8, %v3244_v60 }
 0x5e6   : > { %v3623_v22 = vpop.f32.mrf.mxu1  ;;  %v3696_v1 = vpop.f32.mrf.mxu0 }
 0x5e7   : > { %v3704_v42 = vadd.f32 %v3696_v1, %v3627_v49  ;;  %v3398_v16 = vadd.f32 %v5503_v53, %v3321_v25 }
 0x5e8   : > { %v3698_v5 = vpop.f32.mrf.mxu0  ;;  %v3771_v3 = vpop.f32.mrf.mxu1 }
 0x5e9   : > { %v3780_v52 = vadd.f32 %v3771_v3, %v3703_v24  ;;  %v3705_v51 = vadd.f32 %v3698_v5, %v3628_v14  ;;  %v3475_v19 = vadd.f32 %v5505_v35, %v3398_v16 }
 0x5ea   : > { %v3773_v6 = vpop.f32.mrf.mxu1  ;;  %v3700_v27 = vpop.f32.mrf.mxu0 }
 0x5eb   : > { %v3794_v26 = vadd.f32 %v3787_v38, %v3780_v52  ;;  %v3781_v15 = vadd.f32 %v3773_v6, %v3704_v42  ;;  %v3552_v30 = vadd.f32 %v3546_v45, %v3475_v19 }
 0x5ec   : > { %v3775_v39 = vpop.f32.mrf.mxu1 }
 0x5ed   : > { %v3795_v58 = vadd.f32 %v3787_v38, %v3781_v15  ;;  %v3782_v44 = vadd.f32 %v3775_v39, %v3705_v51  ;;  %3803 = vrot.lane.b32.xlu0 %v3794_v26, %s4549_s9  ;;  %3799 = vst.msk [vmem:[%s5518_s24] sm:$0xff] %vm3798_vm1, %v3794_v26  ;;  %v3629_v31 = vadd.f32 %v3623_v22, %v3552_v30 }
 0x5ee   : > { %v3777_v41 = vpop.f32.mrf.mxu1 }
 0x5ef   : > { %v3796_v12 = vadd.f32 %v3792_v10, %v3782_v44  ;;  %3861 = vrot.lane.b32.xlu1 %v3795_v58, %s4567_s28  ;;  %v3706_v56 = vadd.f32 %v3700_v27, %v3629_v31 }
 0x5f1   : > { %3812 = vrot.lane.b32.xlu0 %v3794_v26, %s5620_s18  ;;  %3800 = vst.msk [vmem:[%s5518_s24 + $0x10] sm:$0xff] %vm3798_vm1, %v3796_v12  ;;  %v3783_v8 = vadd.f32 %v3777_v41, %v3706_v56 }
 0x5f3   : > { %3805 = vrot.lane.b32.xlu1 %v3796_v12, %s4549_s9  ;;  %s5623_s9 = smov 104   ;;  %v3797_v53 = vadd.f32 %v3792_v10, %v3783_v8 }
 0x5f5   : > { %3821 = vrot.lane.b32.xlu0 %v3794_v26, %s5621_s10 }
 0x5f7   : > { %3814 = vrot.lane.b32.xlu1 %v3796_v12, %s5620_s18 }
 0x5f9   : > { %3830 = vrot.lane.b32.xlu0 %v3794_v26, %s5622_s11 }
 0x5fb   : > { %3823 = vrot.lane.b32.xlu1 %v3796_v12, %s5621_s10 }
 0x5fd   : > { %3839 = vrot.lane.b32.xlu0 %v3794_v26, %s4547_s26 }
 0x5ff   : > { %3832 = vrot.lane.b32.xlu1 %v3796_v12, %s5622_s11 }
 0x601   : > { %3848 = vrot.lane.b32.xlu0 %v3794_v26, %s5623_s9 }
 0x603   : > { %3841 = vrot.lane.b32.xlu1 %v3796_v12, %s4547_s26  ;;  %s4568_s26 = smov 88  }
 0x605   : > { %3859 = vrot.lane.b32.xlu0 %v3794_v26, %s4567_s28 }
 0x607   : > { %3850 = vrot.lane.b32.xlu1 %v3796_v12, %s5623_s9 }
 0x609   : > { %3875 = vrot.lane.b32.xlu0 %v3795_v58, %s5624_s16 }
 0x60b   : > { %3865 = vrot.lane.b32.xlu1 %v3797_v53, %s4567_s28 }
 0x60d   : > { %3884 = vrot.lane.b32.xlu0 %v3795_v58, %s4555_s25 }
 0x60f   : > { %3877 = vrot.lane.b32.xlu1 %v3797_v53, %s5624_s16 }
 0x611   : > { %3863 = vrot.lane.b32.xlu0 %v3796_v12, %s4567_s28 }
 0x613   : > { %3886 = vrot.lane.b32.xlu1 %v3797_v53, %s4555_s25 }
 0x615   : > { %3896 = vrot.lane.b32.xlu0 %v3795_v58, %s4568_s26 }
 0x617   : > { %3898 = vrot.lane.b32.xlu1 %v3797_v53, %s4568_s26 }
 0x65f   : > { %v3804_v35 = vpop.permute.xlu0 %3803 }
 0x660   : > { %3810 = vst.msk [vmem:[%s5518_s24] sm:$0xff] %vm3809_vm2, %v3804_v35 }
 0x661   : > { %v3862_v61 = vpop.permute.xlu1 %3861 }
 0x663   : > { %v3813_v40 = vpop.permute.xlu0 %3812 }
 0x664   : > { %3819 = vst.msk [vmem:[%s5518_s24] sm:$0xff] %vm3818_vm12, %v3813_v40 }
 0x665   : > { %v3806_v55 = vpop.permute.xlu1 %3805 }
 0x666   : > { %3811 = vst.msk [vmem:[%s5518_s24 + $0x10] sm:$0xff] %vm3809_vm2, %v3806_v55 }
 0x667   : > { %v3822_v23 = vpop.permute.xlu0 %3821 }
 0x668   : > { %3828 = vst.msk [vmem:[%s5518_s24] sm:$0xff] %vm3827_vm13, %v3822_v23 }
 0x669   : > { %v3815_v59 = vpop.permute.xlu1 %3814 }
 0x66a   : > { %3820 = vst.msk [vmem:[%s5518_s24 + $0x10] sm:$0xff] %vm3818_vm12, %v3815_v59 }
 0x66b   : > { %v3831_v46 = vpop.permute.xlu0 %3830 }
 0x66c   : > { %3837 = vst.msk [vmem:[%s5518_s24] sm:$0xff] %vm3836_vm14, %v3831_v46 }
 0x66d   : > { %v3824_v43 = vpop.permute.xlu1 %3823 }
 0x66e   : > { %3829 = vst.msk [vmem:[%s5518_s24 + $0x10] sm:$0xff] %vm3827_vm13, %v3824_v43 }
 0x66f   : > { %v3840_v29 = vpop.permute.xlu0 %3839 }
 0x670   : > { %3846 = vst.msk [vmem:[%s5518_s24] sm:$0xff] %vm3845_vm15, %v3840_v29 }
 0x671   : > { %v3833_v62 = vpop.permute.xlu1 %3832 }
 0x672   : > { %3838 = vst.msk [vmem:[%s5518_s24 + $0x10] sm:$0xff] %vm3836_vm14, %v3833_v62 }
 0x673   : > { %v3849_v54 = vpop.permute.xlu0 %3848 }
 0x674   : > { %3855 = vst.msk [vmem:[%s5518_s24] sm:$0xff] %vm3854_vm0, %v3849_v54 }
 0x675   : > { %v3842_v45 = vpop.permute.xlu1 %3841 }
 0x676   : > { %3847 = vst.msk [vmem:[%s5518_s24 + $0x10] sm:$0xff] %vm3845_vm15, %v3842_v45 }
 0x677   : > { %v3860_v57 = vpop.permute.xlu0 %3859 }
 0x678   : > { %v3868_v63 = vsel %vm3867_vm3, %v3860_v57, %v3862_v61 }
 0x679   : > { %3873 = vst.msk [vmem:[%s5518_s24] sm:$0xff] %vm3872_vm4, %v3868_v63  ;;  %v3851_v47 = vpop.permute.xlu1 %3850 }
 0x67a   : > { %3856 = vst.msk [vmem:[%s5518_s24 + $0x10] sm:$0xff] %vm3854_vm0, %v3851_v47 }
 0x67b   : > { %v3876_v36 = vpop.permute.xlu0 %3875 }
 0x67c   : > { %3882 = vst.msk [vmem:[%s5518_s24] sm:$0xff] %vm3881_vm5, %v3876_v36 }
 0x67d   : > { %v3866_v28 = vpop.permute.xlu1 %3865 }
 0x67f   : > { %v3885_v2 = vpop.permute.xlu0 %3884 }
 0x680   : > { %3891 = vst.msk [vmem:[%s5518_s24] sm:$0xff] %vm3890_vm6, %v3885_v2 }
 0x681   : > { %3893 = vst.msk [vmem:[%s5518_s24 + $0x8] sm:$0xff] %vm3892_vm7, %v3885_v2  ;;  %v3878_v33 = vpop.permute.xlu1 %3877 }
 0x683   : > { %v3864_v34 = vpop.permute.xlu0 %3863 }
 0x684   : > { %v3869_v0 = vsel %vm3867_vm3, %v3864_v34, %v3866_v28 }
 0x685   : > { %3874 = vst.msk [vmem:[%s5518_s24 + $0x10] sm:$0xff] %vm3872_vm4, %v3869_v0  ;;  %v3887_v48 = vpop.permute.xlu1 %3886 }
 0x686   : > { %3883 = vst.msk [vmem:[%s5518_s24 + $0x10] sm:$0xff] %vm3881_vm5, %v3878_v33 }
 0x687   : > { %3895 = vst.msk [vmem:[%s5518_s24 + $0x18] sm:$0xff] %vm3892_vm7, %v3887_v48  ;;  %v3897_v32 = vpop.permute.xlu0 %3896 }
 0x688   : > { %3894 = vst.msk [vmem:[%s5518_s24 + $0x10] sm:$0xff] %vm3890_vm6, %v3887_v48 }
 0x689   : > { %3903 = vst.msk [vmem:[%s5518_s24 + $0x8] sm:$0xff] %vm3902_vm8, %v3897_v32  ;;  %v3899_v22 = vpop.permute.xlu1 %3898 }
 0x68a   : > { %3904 = vst.msk [vmem:[%s5518_s24 + $0x18] sm:$0xff] %vm3902_vm8, %v3899_v22 }
 0x68b PF: > { %s18_s27 = sadd.s32 1, %s4519_s27  }
 0x68c   : > { %p15_p4 = scmp.ge.s32.totalorder %s18_s27, 4  }
 0x68e   :  { %17 = sbr.rel (!%p15_p4) target bundleno = 1 (0x1), region = 121 }

</bundles_post_ra>
